<compile_context>
chip_gen: v7x
topology: tpu7x:2x2x1
jax: 0.10.0
libtpu: 0.0.40
codegen_flags: <defaults>
</compile_context>

<pallas_src>
import math
from functools import partial

import jax
import jax.numpy as jnp
from jax.experimental import pallas as pl
from jax.experimental.pallas import tpu as pltpu


_VMEM_LIMIT = 64 * 1024 * 1024


def _round_up(x, m):
    return ((x + m - 1) // m) * m


def _pick_time_chunk(T, max_chunk=8):
    for c in range(min(T, max_chunk), 0, -1):
        if T % c == 0:
            return c
    return 1


def _pick_row_tile(R, max_rows=1024):
    if R <= max_rows:
        return R
    for c in (1024, 512, 256, 128, 64, 32, 16, 8):
        if R % c == 0:
            return c
    return R


# ----------------------------------------------------------------------------
# Pallas kernels
# ----------------------------------------------------------------------------
def input_proj_kernel(x_ref, w_ref, b_ref, o_ref):
    """gi = X @ W_ih_fused^T + b_ih for a tile of rows (rows = flattened T*B)."""
    o_ref[...] = (jnp.dot(x_ref[...].astype(w_ref.dtype), w_ref[...],
                          preferred_element_type=jnp.float32)
                  + b_ref[...])


def _gru_chunk_body(gi_ref, whh_ref, bhh_ref, out_ref, h_scratch, *, H_pad, Tc):
    """Run Tc recurrent steps on the current chunk; h carried as a loop value."""
    @pl.when(pl.program_id(0) == 0)
    def _():
        h_scratch[...] = jnp.zeros(h_scratch.shape, h_scratch.dtype)

    cdt = whh_ref.dtype

    def step(t, h):
        gi_t = gi_ref[t]                                       # (B, 3*H_pad) f32
        gh = (jnp.dot(h.astype(cdt), whh_ref[...],
                      preferred_element_type=jnp.float32)
              + bhh_ref[...])                                  # fused r|z|n, f32
        r = jax.nn.sigmoid(gi_t[:, :H_pad] + gh[:, :H_pad])
        z = jax.nn.sigmoid(gi_t[:, H_pad:2 * H_pad] + gh[:, H_pad:2 * H_pad])
        n = jnp.tanh(gi_t[:, 2 * H_pad:] + r * gh[:, 2 * H_pad:])
        h_new = (1.0 - z) * n + z * h
        if out_ref is not None:
            out_ref[t] = h_new.astype(out_ref.dtype)
        return h_new

    h0 = h_scratch[...]
    h_final = jax.lax.fori_loop(0, Tc, step, h0, unroll=True)
    h_scratch[...] = h_final


def gru_seq_kernel(gi_ref, whh_ref, bhh_ref, out_ref, h_scratch, *, H_pad, Tc):
    """Intermediate GRU layer: emits the full hidden sequence for the next layer."""
    _gru_chunk_body(gi_ref, whh_ref, bhh_ref, out_ref, h_scratch, H_pad=H_pad, Tc=Tc)


def gru_last_kernel(gi_ref, whh_ref, bhh_ref, wfc_ref, bfc_ref, y_ref, h_scratch,
                    *, H_pad, Tc):
    """Last GRU layer with the fc fused into the final chunk (no sequence output)."""
    _gru_chunk_body(gi_ref, whh_ref, bhh_ref, None, h_scratch, H_pad=H_pad, Tc=Tc)

    @pl.when(pl.program_id(0) == pl.num_programs(0) - 1)
    def _():
        h = h_scratch[...]
        y_ref[...] = (jnp.dot(h.astype(wfc_ref.dtype), wfc_ref[...],
                              preferred_element_type=jnp.float32)
                      + bfc_ref[...]).astype(y_ref.dtype)


# ----------------------------------------------------------------------------
# pallas_call wrappers
# ----------------------------------------------------------------------------
def _input_projection(x2d, w_t, b):
    """x2d: (R, I); w_t: (I, G); b: (1, G) -> (R, G) f32."""
    R, I = x2d.shape
    G = w_t.shape[1]
    rt = _pick_row_tile(R)
    return pl.pallas_call(
        input_proj_kernel,
        out_shape=jax.ShapeDtypeStruct((R, G), jnp.float32),
        grid_spec=pltpu.PrefetchScalarGridSpec(
            num_scalar_prefetch=0,
            grid=(R // rt,),
            in_specs=[
                pl.BlockSpec((rt, I), lambda i: (i, 0)),
                pl.BlockSpec((I, G), lambda i: (0, 0)),
                pl.BlockSpec((1, G), lambda i: (0, 0)),
            ],
            out_specs=pl.BlockSpec((rt, G), lambda i: (i, 0)),
        ),
        compiler_params=pltpu.CompilerParams(
            dimension_semantics=("parallel",),
            vmem_limit_bytes=_VMEM_LIMIT),
    )(x2d, w_t, b)


def _gru_recurrence_seq(gi, whh_t, bhh, act_dtype):
    """gi: (T, B_pad, 3*H_pad) f32 -> hidden sequence (T, B_pad, H_pad) in act_dtype."""
    T, B, G = gi.shape
    H_pad = G // 3
    Tc = _pick_time_chunk(T)
    kernel = partial(gru_seq_kernel, H_pad=H_pad, Tc=Tc)
    return pl.pallas_call(
        kernel,
        out_shape=jax.ShapeDtypeStruct((T, B, H_pad), act_dtype),
        grid_spec=pltpu.PrefetchScalarGridSpec(
            num_scalar_prefetch=0,
            grid=(T // Tc,),
            in_specs=[
                pl.BlockSpec((Tc, B, G), lambda c: (c, 0, 0)),   # gi chunk
                pl.BlockSpec((H_pad, G), lambda c: (0, 0)),      # fused W_hh^T (resident)
                pl.BlockSpec((1, G), lambda c: (0, 0)),          # fused b_hh
            ],
            out_specs=pl.BlockSpec((Tc, B, H_pad), lambda c: (c, 0, 0)),
            scratch_shapes=[pltpu.VMEM((B, H_pad), jnp.float32)],
        ),
        compiler_params=pltpu.CompilerParams(
            dimension_semantics=("arbitrary",),                  # serial recurrence
            vmem_limit_bytes=_VMEM_LIMIT),
    )(gi, whh_t, bhh)


def _gru_recurrence_last(gi, whh_t, bhh, wfc_t, bfc):
    """Last layer: recurrence + fused fc; returns (B_pad, C) f32."""
    T, B, G = gi.shape
    H_pad = G // 3
    C = wfc_t.shape[1]
    Tc = _pick_time_chunk(T)
    kernel = partial(gru_last_kernel, H_pad=H_pad, Tc=Tc)
    return pl.pallas_call(
        kernel,
        out_shape=jax.ShapeDtypeStruct((B, C), jnp.float32),
        grid_spec=pltpu.PrefetchScalarGridSpec(
            num_scalar_prefetch=0,
            grid=(T // Tc,),
            in_specs=[
                pl.BlockSpec((Tc, B, G), lambda c: (c, 0, 0)),
                pl.BlockSpec((H_pad, G), lambda c: (0, 0)),
                pl.BlockSpec((1, G), lambda c: (0, 0)),
                pl.BlockSpec((H_pad, C), lambda c: (0, 0)),      # fc weight
                pl.BlockSpec((1, C), lambda c: (0, 0)),          # fc bias
            ],
            out_specs=pl.BlockSpec((B, C), lambda c: (0, 0)),
            scratch_shapes=[pltpu.VMEM((B, H_pad), jnp.float32)],
        ),
        compiler_params=pltpu.CompilerParams(
            dimension_semantics=("arbitrary",),
            vmem_limit_bytes=_VMEM_LIMIT),
    )(gi, whh_t, bhh, wfc_t, bfc)


# ----------------------------------------------------------------------------
# Parameter prep (PyTorch layout -> fused / transposed / padded Pallas layout)
# ----------------------------------------------------------------------------
def _pack_gates_t(w, H, H_pad, in_real, in_pad):
    """w: (3H, in_real) PyTorch gate stack (r,z,n) -> (in_pad, 3*H_pad) transposed."""
    out = jnp.zeros((in_pad, 3 * H_pad), jnp.float32)
    for g in range(3):
        out = out.at[:in_real, g * H_pad:g * H_pad + H].set(w[g * H:(g + 1) * H, :].T)
    return out


def _pack_gate_bias(b, H, H_pad):
    out = jnp.zeros((1, 3 * H_pad), jnp.float32)
    for g in range(3):
        out = out.at[0, g * H_pad:g * H_pad + H].set(b[g * H:(g + 1) * H])
    return out


def preprocess_params(params, num_classes, hidden_size, compute_dtype):
    H = hidden_size
    H_pad = _round_up(H, 128)
    layers = []
    in_real, in_pad = num_classes, num_classes
    for (w_ih, w_hh, b_ih, b_hh) in params["gru"]:
        wih_t = _pack_gates_t(w_ih, H, H_pad, in_real, in_pad).astype(compute_dtype)
        bih = _pack_gate_bias(b_ih, H, H_pad)
        whh_t = _pack_gates_t(w_hh, H, H_pad, H, H_pad).astype(compute_dtype)
        bhh = _pack_gate_bias(b_hh, H, H_pad)
        layers.append((wih_t, bih, whh_t, bhh))
        in_real, in_pad = H, H_pad
    wfc_t = (jnp.zeros((H_pad, num_classes), jnp.float32)
             .at[:H, :].set(params["fc"]["w"].T)).astype(compute_dtype)
    bfc = params["fc"]["b"].reshape(1, -1).astype(jnp.float32)
    return layers, wfc_t, bfc, H_pad


def init_params(key, num_classes, hidden_size, num_layers):
    """PyTorch-style uniform(-1/sqrt(H), 1/sqrt(H)) init for GRU + Linear."""
    k = 1.0 / math.sqrt(hidden_size)
    params = {"gru": [], "fc": {}}
    for layer in range(num_layers):
        in_size = num_classes if layer == 0 else hidden_size
        key, k1, k2, k3, k4 = jax.random.split(key, 5)
        w_ih = jax.random.uniform(k1, (3 * hidden_size, in_size), jnp.float32, -k, k)
        w_hh = jax.random.uniform(k2, (3 * hidden_size, hidden_size), jnp.float32, -k, k)
        b_ih = jax.random.uniform(k3, (3 * hidden_size,), jnp.float32, -k, k)
        b_hh = jax.random.uniform(k4, (3 * hidden_size,), jnp.float32, -k, k)
        params["gru"].append((w_ih, w_hh, b_ih, b_hh))
    key, k1, k2 = jax.random.split(key, 3)
    params["fc"]["w"] = jax.random.uniform(k1, (num_classes, hidden_size), jnp.float32, -k, k)
    params["fc"]["b"] = jax.random.uniform(k2, (num_classes,), jnp.float32, -k, k)
    return params


# ----------------------------------------------------------------------------
# Forward
# ----------------------------------------------------------------------------
def gru_predictor_forward(params, x_btc, hidden_size, *, compute_dtype=jnp.bfloat16):
    """x_btc: (batch, seq, num_classes), batch_first like the PyTorch module."""
    B, T, C = x_btc.shape
    B_pad = _round_up(max(B, 8), 8)                 # sublane-dense batch
    layers, wfc_t, bfc, H_pad = preprocess_params(params, C, hidden_size, compute_dtype)

    x = jnp.transpose(x_btc, (1, 0, 2)).astype(jnp.float32)    # (T, B, C) time-major
    x = jnp.pad(x, ((0, 0), (0, B_pad - B), (0, 0)))           # (T, B_pad, C)
    act = x.reshape(T * B_pad, C)

    num_layers = len(layers)
    y = None
    for li, (wih_t, bih, whh_t, bhh) in enumerate(layers):
        # Hoisted input projection for all T steps at once (one big MXU matmul).
        gi = _input_projection(act, wih_t, bih).reshape(T, B_pad, 3 * H_pad)
        if li == num_layers - 1:
            y = _gru_recurrence_last(gi, whh_t, bhh, wfc_t, bfc)     # (B_pad, C)
        else:
            out_seq = _gru_recurrence_seq(gi, whh_t, bhh, compute_dtype)
            act = out_seq.reshape(T * B_pad, H_pad)                  # inter-layer activations
    return y[:B]


# Pure-JAX reference for sanity checking.
def gru_predictor_reference(params, x_btc, hidden_size):
    H = hidden_size
    x = jnp.transpose(x_btc, (1, 0, 2)).astype(jnp.float32)
    T, B, _ = x.shape
    last_h = None
    for (w_ih, w_hh, b_ih, b_hh) in params["gru"]:
        h = jnp.zeros((B, H), jnp.float32)
        outs = []
        for t in range(T):
            gi = x[t] @ w_ih.T + b_ih
            gh = h @ w_hh.T + b_hh
            r = jax.nn.sigmoid(gi[:, 0:H] + gh[:, 0:H])
            z = jax.nn.sigmoid(gi[:, H:2 * H] + gh[:, H:2 * H])
            n = jnp.tanh(gi[:, 2 * H:] + r * gh[:, 2 * H:])
            h = (1.0 - z) * n + z * h
            outs.append(h)
        x = jnp.stack(outs, axis=0)
        last_h = h
    return last_h @ params["fc"]["w"].T + params["fc"]["b"]


if __name__ == "__main__":
    num_classes = 4
    hidden_size = 32
    batch_size = 2
    seq_len = 8
    num_layers = 2

    key = jax.random.PRNGKey(0)
    key, pkey, xkey = jax.random.split(key, 3)
    params = init_params(pkey, num_classes, hidden_size, num_layers)
    x = jax.random.normal(xkey, (batch_size, seq_len, num_classes), jnp.float32)

    fwd_f32 = jax.jit(lambda p, a: gru_predictor_forward(p, a, hidden_size,
                                                         compute_dtype=jnp.float32))
    fwd_bf16 = jax.jit(lambda p, a: gru_predictor_forward(p, a, hidden_size,
                                                          compute_dtype=jnp.bfloat16))

    y_ref = gru_predictor_reference(params, x, hidden_size)

    # Structural correctness in f32 (tight tolerance).
    y_f32 = jax.block_until_ready(fwd_f32(params, x))
    assert y_f32.shape == (batch_size, num_classes)
    assert jnp.allclose(y_f32, y_ref, atol=1e-4, rtol=1e-4), "f32 mismatch vs reference"

    # Production bf16-matmul path (loose tolerance for bf16 MXU inputs).
    y_bf16 = jax.block_until_ready(fwd_bf16(params, x))
    assert y_bf16.shape == (batch_size, num_classes)
    assert jnp.allclose(y_bf16, y_ref, atol=1e-1, rtol=1e-1), "bf16 mismatch vs reference"

    print("KERNEL_OK")
</pallas_src>

<mosaic_0001>
module attributes {stable_mosaic.version = 11 : i64} {
  func.func @input_proj_kernel(%arg0: i32, %arg1: memref<64x4xf32, #tpu.memory_space<vmem>>, %arg2: memref<4x384xf32, #tpu.memory_space<vmem>>, %arg3: memref<1x384xf32, #tpu.memory_space<vmem>>, %arg4: memref<64x384xf32, #tpu.memory_space<vmem>>) attributes {dimension_semantics = [#tpu.dimension_semantics<parallel>], iteration_bounds = array<i64: 1>, scalar_prefetch = 0 : i64, scratch_operands = 0 : i64, tpu.core_type = #tpu.core_type<tc>, window_params = [{transform_indices = @transform_0, window_bounds = array<i64: 64, 4>}, {pipeline_mode = #tpu.pipeline_mode<synchronous>, transform_indices = @transform_1, window_bounds = array<i64: 4, 384>}, {pipeline_mode = #tpu.pipeline_mode<synchronous>, transform_indices = @transform_2, window_bounds = array<i64: 1, 384>}, {transform_indices = @transform_3, window_bounds = array<i64: 64, 384>}]} {
    %c0 = arith.constant 0 : index
    %c0_0 = arith.constant 0 : index
    %0 = vector.load %arg1[%c0, %c0_0] : memref<64x4xf32, #tpu.memory_space<vmem>>, vector<64x4xf32>
    %c0_1 = arith.constant 0 : index
    %c0_2 = arith.constant 0 : index
    %1 = vector.load %arg2[%c0_1, %c0_2] : memref<4x384xf32, #tpu.memory_space<vmem>>, vector<4x384xf32>
    %cst = arith.constant dense<0.000000e+00> : vector<64x384xf32>
    %2 = tpu.matmul %0, %1, %cst {dimension_numbers = #tpu.dot_dimension_numbers<[1], [0], [0], [1], [0, 0, 1, 1], [], []>} : vector<64x4xf32>, vector<4x384xf32>, vector<64x384xf32> -> vector<64x384xf32>
    %c0_3 = arith.constant 0 : index
    %c0_4 = arith.constant 0 : index
    %3 = vector.load %arg3[%c0_3, %c0_4] : memref<1x384xf32, #tpu.memory_space<vmem>>, vector<1x384xf32>
    %4 = vector.broadcast %3 : vector<1x384xf32> to vector<64x384xf32>
    %5 = arith.addf %2, %4 : vector<64x384xf32>
    %c0_5 = arith.constant 0 : index
    %c0_6 = arith.constant 0 : index
    %6 = vector.load %arg4[%c0_5, %c0_6] : memref<64x384xf32, #tpu.memory_space<vmem>>, vector<64x384xf32>
    tpu.vector_store %arg4[%c0_5, %c0_6], %5 {strides = array<i32>} : memref<64x384xf32, #tpu.memory_space<vmem>>, vector<64x384xf32>,
    return
  }
  func.func @transform_0(%arg0: i32) -> (i32, i32) {
    %c0_i32 = arith.constant 0 : i32
    %c0_i32_0 = arith.constant 0 : i32
    return %arg0, %c0_i32 : i32, i32
  }
  func.func @transform_1(%arg0: i32) -> (i32, i32) {
    %c0_i32 = arith.constant 0 : i32
    %c0_i32_0 = arith.constant 0 : i32
    %c0_i32_1 = arith.constant 0 : i32
    return %c0_i32, %c0_i32_0 : i32, i32
  }
  func.func @transform_2(%arg0: i32) -> (i32, i32) {
    %c0_i32 = arith.constant 0 : i32
    %c0_i32_0 = arith.constant 0 : i32
    %c0_i32_1 = arith.constant 0 : i32
    return %c0_i32, %c0_i32_0 : i32, i32
  }
  func.func @transform_3(%arg0: i32) -> (i32, i32) {
    %c0_i32 = arith.constant 0 : i32
    %c0_i32_0 = arith.constant 0 : i32
    return %arg0, %c0_i32 : i32, i32
  }
}

module attributes {stable_mosaic.version = 11 : i64} {
  func.func @gru_seq_kernel(%arg0: i32, %arg1: memref<8x8x384xf32, #tpu.memory_space<vmem>>, %arg2: memref<128x384xf32, #tpu.memory_space<vmem>>, %arg3: memref<1x384xf32, #tpu.memory_space<vmem>>, %arg4: memref<8x8x128xf32, #tpu.memory_space<vmem>>, %arg5: memref<8x128xf32, #tpu.memory_space<vmem>>) attributes {dimension_semantics = [#tpu.dimension_semantics<arbitrary>], iteration_bounds = array<i64: 1>, scalar_prefetch = 0 : i64, scratch_operands = 1 : i64, tpu.core_type = #tpu.core_type<tc>, window_params = [{transform_indices = @transform_0, window_bounds = array<i64: 8, 8, 384>}, {pipeline_mode = #tpu.pipeline_mode<synchronous>, transform_indices = @transform_1, window_bounds = array<i64: 128, 384>}, {pipeline_mode = #tpu.pipeline_mode<synchronous>, transform_indices = @transform_2, window_bounds = array<i64: 1, 384>}, {transform_indices = @transform_3, window_bounds = array<i64: 8, 8, 128>}]} {
    %c0_i32 = arith.constant 0 : i32
    %0 = arith.cmpi eq, %arg0, %c0_i32 : i32
    %1 = arith.extui %0 : i1 to i32
    %c0_i32_0 = arith.constant 0 : i32
    %2 = arith.cmpi ne, %1, %c0_i32_0 : i32
    scf.if %2 {
      %cst_100 = arith.constant 0.000000e+00 : f32
      %309 = vector.broadcast %cst_100 : f32 to vector<8x128xf32>
      %c0_101 = arith.constant 0 : index
      %c0_102 = arith.constant 0 : index
      %310 = vector.load %arg5[%c0_101, %c0_102] : memref<8x128xf32, #tpu.memory_space<vmem>>, vector<8x128xf32>
      tpu.vector_store %arg5[%c0_101, %c0_102], %309 {strides = array<i32>} : memref<8x128xf32, #tpu.memory_space<vmem>>, vector<8x128xf32>,
    } else {
    }
    %c0 = arith.constant 0 : index
    %c0_1 = arith.constant 0 : index
    %3 = vector.load %arg5[%c0, %c0_1] : memref<8x128xf32, #tpu.memory_space<vmem>>, vector<8x128xf32>
    %c0_i32_2 = arith.constant 0 : i32
    %4 = arith.index_cast %c0_i32_2 : i32 to index
    %c0_3 = arith.constant 0 : index
    %c0_4 = arith.constant 0 : index
    %5 = vector.load %arg1[%4, %c0_3, %c0_4] : memref<8x8x384xf32, #tpu.memory_space<vmem>>, vector<1x8x384xf32>
    %6 = vector.shape_cast %5 : vector<1x8x384xf32> to vector<8x384xf32>
    %c0_5 = arith.constant 0 : index
    %c0_6 = arith.constant 0 : index
    %7 = vector.load %arg2[%c0_5, %c0_6] : memref<128x384xf32, #tpu.memory_space<vmem>>, vector<128x384xf32>
    %cst = arith.constant dense<0.000000e+00> : vector<8x384xf32>
    %8 = tpu.matmul %3, %7, %cst {dimension_numbers = #tpu.dot_dimension_numbers<[1], [0], [0], [1], [0, 0, 1, 1], [], []>} : vector<8x128xf32>, vector<128x384xf32>, vector<8x384xf32> -> vector<8x384xf32>
    %c0_7 = arith.constant 0 : index
    %c0_8 = arith.constant 0 : index
    %9 = vector.load %arg3[%c0_7, %c0_8] : memref<1x384xf32, #tpu.memory_space<vmem>>, vector<1x384xf32>
    %10 = vector.broadcast %9 : vector<1x384xf32> to vector<8x384xf32>
    %11 = arith.addf %8, %10 : vector<8x384xf32>
    %12 = vector.extract_strided_slice %6 {offsets = [0, 0], sizes = [8, 128], strides = [1, 1]} : vector<8x384xf32> to vector<8x128xf32>
    %13 = vector.extract_strided_slice %11 {offsets = [0, 0], sizes = [8, 128], strides = [1, 1]} : vector<8x384xf32> to vector<8x128xf32>
    %14 = arith.addf %12, %13 : vector<8x128xf32>
    %15 = arith.negf %14 : vector<8x128xf32>
    %16 = math.exp %15 : vector<8x128xf32>
    %cst_9 = arith.constant 1.000000e+00 : f32
    %17 = vector.broadcast %cst_9 : f32 to vector<8x128xf32>
    %18 = arith.addf %17, %16 : vector<8x128xf32>
    %19 = arith.divf %17, %18 : vector<8x128xf32>
    %20 = vector.extract_strided_slice %6 {offsets = [0, 128], sizes = [8, 128], strides = [1, 1]} : vector<8x384xf32> to vector<8x128xf32>
    %21 = vector.extract_strided_slice %11 {offsets = [0, 128], sizes = [8, 128], strides = [1, 1]} : vector<8x384xf32> to vector<8x128xf32>
    %22 = arith.addf %20, %21 : vector<8x128xf32>
    %23 = arith.negf %22 : vector<8x128xf32>
    %24 = math.exp %23 : vector<8x128xf32>
    %cst_10 = arith.constant 1.000000e+00 : f32
    %25 = vector.broadcast %cst_10 : f32 to vector<8x128xf32>
    %26 = arith.addf %25, %24 : vector<8x128xf32>
    %27 = arith.divf %25, %26 : vector<8x128xf32>
    %28 = vector.extract_strided_slice %6 {offsets = [0, 256], sizes = [8, 128], strides = [1, 1]} : vector<8x384xf32> to vector<8x128xf32>
    %29 = vector.extract_strided_slice %11 {offsets = [0, 256], sizes = [8, 128], strides = [1, 1]} : vector<8x384xf32> to vector<8x128xf32>
    %30 = arith.mulf %19, %29 : vector<8x128xf32>
    %31 = arith.addf %28, %30 : vector<8x128xf32>
    %32 = math.tanh %31 : vector<8x128xf32>
    %cst_11 = arith.constant 1.000000e+00 : f32
    %33 = vector.broadcast %cst_11 : f32 to vector<8x128xf32>
    %34 = arith.subf %33, %27 : vector<8x128xf32>
    %35 = arith.mulf %34, %32 : vector<8x128xf32>
    %36 = arith.mulf %27, %3 : vector<8x128xf32>
    %37 = arith.addf %35, %36 : vector<8x128xf32>
    %38 = arith.index_cast %c0_i32_2 : i32 to index
    %c0_12 = arith.constant 0 : index
    %c0_13 = arith.constant 0 : index
    %39 = vector.load %arg4[%38, %c0_12, %c0_13] : memref<8x8x128xf32, #tpu.memory_space<vmem>>, vector<1x8x128xf32>
    %40 = vector.shape_cast %39 : vector<1x8x128xf32> to vector<8x128xf32>
    %41 = vector.shape_cast %37 : vector<8x128xf32> to vector<1x8x128xf32>
    tpu.vector_store %arg4[%38, %c0_12, %c0_13], %41 {strides = array<i32>} : memref<8x8x128xf32, #tpu.memory_space<vmem>>, vector<1x8x128xf32>,
    %c1_i32 = arith.constant 1 : i32
    %42 = arith.index_cast %c1_i32 : i32 to index
    %c0_14 = arith.constant 0 : index
    %c0_15 = arith.constant 0 : index
    %43 = vector.load %arg1[%42, %c0_14, %c0_15] : memref<8x8x384xf32, #tpu.memory_space<vmem>>, vector<1x8x384xf32>
    %44 = vector.shape_cast %43 : vector<1x8x384xf32> to vector<8x384xf32>
    %c0_16 = arith.constant 0 : index
    %c0_17 = arith.constant 0 : index
    %45 = vector.load %arg2[%c0_16, %c0_17] : memref<128x384xf32, #tpu.memory_space<vmem>>, vector<128x384xf32>
    %cst_18 = arith.constant dense<0.000000e+00> : vector<8x384xf32>
    %46 = tpu.matmul %37, %45, %cst_18 {dimension_numbers = #tpu.dot_dimension_numbers<[1], [0], [0], [1], [0, 0, 1, 1], [], []>} : vector<8x128xf32>, vector<128x384xf32>, vector<8x384xf32> -> vector<8x384xf32>
    %c0_19 = arith.constant 0 : index
    %c0_20 = arith.constant 0 : index
    %47 = vector.load %arg3[%c0_19, %c0_20] : memref<1x384xf32, #tpu.memory_space<vmem>>, vector<1x384xf32>
    %48 = vector.broadcast %47 : vector<1x384xf32> to vector<8x384xf32>
    %49 = arith.addf %46, %48 : vector<8x384xf32>
    %50 = vector.extract_strided_slice %44 {offsets = [0, 0], sizes = [8, 128], strides = [1, 1]} : vector<8x384xf32> to vector<8x128xf32>
    %51 = vector.extract_strided_slice %49 {offsets = [0, 0], sizes = [8, 128], strides = [1, 1]} : vector<8x384xf32> to vector<8x128xf32>
    %52 = arith.addf %50, %51 : vector<8x128xf32>
    %53 = arith.negf %52 : vector<8x128xf32>
    %54 = math.exp %53 : vector<8x128xf32>
    %cst_21 = arith.constant 1.000000e+00 : f32
    %55 = vector.broadcast %cst_21 : f32 to vector<8x128xf32>
    %56 = arith.addf %55, %54 : vector<8x128xf32>
    %57 = arith.divf %55, %56 : vector<8x128xf32>
    %58 = vector.extract_strided_slice %44 {offsets = [0, 128], sizes = [8, 128], strides = [1, 1]} : vector<8x384xf32> to vector<8x128xf32>
    %59 = vector.extract_strided_slice %49 {offsets = [0, 128], sizes = [8, 128], strides = [1, 1]} : vector<8x384xf32> to vector<8x128xf32>
    %60 = arith.addf %58, %59 : vector<8x128xf32>
    %61 = arith.negf %60 : vector<8x128xf32>
    %62 = math.exp %61 : vector<8x128xf32>
    %cst_22 = arith.constant 1.000000e+00 : f32
    %63 = vector.broadcast %cst_22 : f32 to vector<8x128xf32>
    %64 = arith.addf %63, %62 : vector<8x128xf32>
    %65 = arith.divf %63, %64 : vector<8x128xf32>
    %66 = vector.extract_strided_slice %44 {offsets = [0, 256], sizes = [8, 128], strides = [1, 1]} : vector<8x384xf32> to vector<8x128xf32>
    %67 = vector.extract_strided_slice %49 {offsets = [0, 256], sizes = [8, 128], strides = [1, 1]} : vector<8x384xf32> to vector<8x128xf32>
    %68 = arith.mulf %57, %67 : vector<8x128xf32>
    %69 = arith.addf %66, %68 : vector<8x128xf32>
    %70 = math.tanh %69 : vector<8x128xf32>
    %cst_23 = arith.constant 1.000000e+00 : f32
    %71 = vector.broadcast %cst_23 : f32 to vector<8x128xf32>
    %72 = arith.subf %71, %65 : vector<8x128xf32>
    %73 = arith.mulf %72, %70 : vector<8x128xf32>
    %74 = arith.mulf %65, %37 : vector<8x128xf32>
    %75 = arith.addf %73, %74 : vector<8x128xf32>
    %76 = arith.index_cast %c1_i32 : i32 to index
    %c0_24 = arith.constant 0 : index
    %c0_25 = arith.constant 0 : index
    %77 = vector.load %arg4[%76, %c0_24, %c0_25] : memref<8x8x128xf32, #tpu.memory_space<vmem>>, vector<1x8x128xf32>
    %78 = vector.shape_cast %77 : vector<1x8x128xf32> to vector<8x128xf32>
    %79 = vector.shape_cast %75 : vector<8x128xf32> to vector<1x8x128xf32>
    tpu.vector_store %arg4[%76, %c0_24, %c0_25], %79 {strides = array<i32>} : memref<8x8x128xf32, #tpu.memory_space<vmem>>, vector<1x8x128xf32>,
    %c2_i32 = arith.constant 2 : i32
    %80 = arith.index_cast %c2_i32 : i32 to index
    %c0_26 = arith.constant 0 : index
    %c0_27 = arith.constant 0 : index
    %81 = vector.load %arg1[%80, %c0_26, %c0_27] : memref<8x8x384xf32, #tpu.memory_space<vmem>>, vector<1x8x384xf32>
    %82 = vector.shape_cast %81 : vector<1x8x384xf32> to vector<8x384xf32>
    %c0_28 = arith.constant 0 : index
    %c0_29 = arith.constant 0 : index
    %83 = vector.load %arg2[%c0_28, %c0_29] : memref<128x384xf32, #tpu.memory_space<vmem>>, vector<128x384xf32>
    %cst_30 = arith.constant dense<0.000000e+00> : vector<8x384xf32>
    %84 = tpu.matmul %75, %83, %cst_30 {dimension_numbers = #tpu.dot_dimension_numbers<[1], [0], [0], [1], [0, 0, 1, 1], [], []>} : vector<8x128xf32>, vector<128x384xf32>, vector<8x384xf32> -> vector<8x384xf32>
    %c0_31 = arith.constant 0 : index
    %c0_32 = arith.constant 0 : index
    %85 = vector.load %arg3[%c0_31, %c0_32] : memref<1x384xf32, #tpu.memory_space<vmem>>, vector<1x384xf32>
    %86 = vector.broadcast %85 : vector<1x384xf32> to vector<8x384xf32>
    %87 = arith.addf %84, %86 : vector<8x384xf32>
    %88 = vector.extract_strided_slice %82 {offsets = [0, 0], sizes = [8, 128], strides = [1, 1]} : vector<8x384xf32> to vector<8x128xf32>
    %89 = vector.extract_strided_slice %87 {offsets = [0, 0], sizes = [8, 128], strides = [1, 1]} : vector<8x384xf32> to vector<8x128xf32>
    %90 = arith.addf %88, %89 : vector<8x128xf32>
    %91 = arith.negf %90 : vector<8x128xf32>
    %92 = math.exp %91 : vector<8x128xf32>
    %cst_33 = arith.constant 1.000000e+00 : f32
    %93 = vector.broadcast %cst_33 : f32 to vector<8x128xf32>
    %94 = arith.addf %93, %92 : vector<8x128xf32>
    %95 = arith.divf %93, %94 : vector<8x128xf32>
    %96 = vector.extract_strided_slice %82 {offsets = [0, 128], sizes = [8, 128], strides = [1, 1]} : vector<8x384xf32> to vector<8x128xf32>
    %97 = vector.extract_strided_slice %87 {offsets = [0, 128], sizes = [8, 128], strides = [1, 1]} : vector<8x384xf32> to vector<8x128xf32>
    %98 = arith.addf %96, %97 : vector<8x128xf32>
    %99 = arith.negf %98 : vector<8x128xf32>
    %100 = math.exp %99 : vector<8x128xf32>
    %cst_34 = arith.constant 1.000000e+00 : f32
    %101 = vector.broadcast %cst_34 : f32 to vector<8x128xf32>
    %102 = arith.addf %101, %100 : vector<8x128xf32>
    %103 = arith.divf %101, %102 : vector<8x128xf32>
    %104 = vector.extract_strided_slice %82 {offsets = [0, 256], sizes = [8, 128], strides = [1, 1]} : vector<8x384xf32> to vector<8x128xf32>
    %105 = vector.extract_strided_slice %87 {offsets = [0, 256], sizes = [8, 128], strides = [1, 1]} : vector<8x384xf32> to vector<8x128xf32>
    %106 = arith.mulf %95, %105 : vector<8x128xf32>
    %107 = arith.addf %104, %106 : vector<8x128xf32>
    %108 = math.tanh %107 : vector<8x128xf32>
    %cst_35 = arith.constant 1.000000e+00 : f32
    %109 = vector.broadcast %cst_35 : f32 to vector<8x128xf32>
    %110 = arith.subf %109, %103 : vector<8x128xf32>
    %111 = arith.mulf %110, %108 : vector<8x128xf32>
    %112 = arith.mulf %103, %75 : vector<8x128xf32>
    %113 = arith.addf %111, %112 : vector<8x128xf32>
    %114 = arith.index_cast %c2_i32 : i32 to index
    %c0_36 = arith.constant 0 : index
    %c0_37 = arith.constant 0 : index
    %115 = vector.load %arg4[%114, %c0_36, %c0_37] : memref<8x8x128xf32, #tpu.memory_space<vmem>>, vector<1x8x128xf32>
    %116 = vector.shape_cast %115 : vector<1x8x128xf32> to vector<8x128xf32>
    %117 = vector.shape_cast %113 : vector<8x128xf32> to vector<1x8x128xf32>
    tpu.vector_store %arg4[%114, %c0_36, %c0_37], %117 {strides = array<i32>} : memref<8x8x128xf32, #tpu.memory_space<vmem>>, vector<1x8x128xf32>,
    %c3_i32 = arith.constant 3 : i32
    %118 = arith.index_cast %c3_i32 : i32 to index
    %c0_38 = arith.constant 0 : index
    %c0_39 = arith.constant 0 : index
    %119 = vector.load %arg1[%118, %c0_38, %c0_39] : memref<8x8x384xf32, #tpu.memory_space<vmem>>, vector<1x8x384xf32>
    %120 = vector.shape_cast %119 : vector<1x8x384xf32> to vector<8x384xf32>
    %c0_40 = arith.constant 0 : index
    %c0_41 = arith.constant 0 : index
    %121 = vector.load %arg2[%c0_40, %c0_41] : memref<128x384xf32, #tpu.memory_space<vmem>>, vector<128x384xf32>
    %cst_42 = arith.constant dense<0.000000e+00> : vector<8x384xf32>
    %122 = tpu.matmul %113, %121, %cst_42 {dimension_numbers = #tpu.dot_dimension_numbers<[1], [0], [0], [1], [0, 0, 1, 1], [], []>} : vector<8x128xf32>, vector<128x384xf32>, vector<8x384xf32> -> vector<8x384xf32>
    %c0_43 = arith.constant 0 : index
    %c0_44 = arith.constant 0 : index
    %123 = vector.load %arg3[%c0_43, %c0_44] : memref<1x384xf32, #tpu.memory_space<vmem>>, vector<1x384xf32>
    %124 = vector.broadcast %123 : vector<1x384xf32> to vector<8x384xf32>
    %125 = arith.addf %122, %124 : vector<8x384xf32>
    %126 = vector.extract_strided_slice %120 {offsets = [0, 0], sizes = [8, 128], strides = [1, 1]} : vector<8x384xf32> to vector<8x128xf32>
    %127 = vector.extract_strided_slice %125 {offsets = [0, 0], sizes = [8, 128], strides = [1, 1]} : vector<8x384xf32> to vector<8x128xf32>
    %128 = arith.addf %126, %127 : vector<8x128xf32>
    %129 = arith.negf %128 : vector<8x128xf32>
    %130 = math.exp %129 : vector<8x128xf32>
    %cst_45 = arith.constant 1.000000e+00 : f32
    %131 = vector.broadcast %cst_45 : f32 to vector<8x128xf32>
    %132 = arith.addf %131, %130 : vector<8x128xf32>
    %133 = arith.divf %131, %132 : vector<8x128xf32>
    %134 = vector.extract_strided_slice %120 {offsets = [0, 128], sizes = [8, 128], strides = [1, 1]} : vector<8x384xf32> to vector<8x128xf32>
    %135 = vector.extract_strided_slice %125 {offsets = [0, 128], sizes = [8, 128], strides = [1, 1]} : vector<8x384xf32> to vector<8x128xf32>
    %136 = arith.addf %134, %135 : vector<8x128xf32>
    %137 = arith.negf %136 : vector<8x128xf32>
    %138 = math.exp %137 : vector<8x128xf32>
    %cst_46 = arith.constant 1.000000e+00 : f32
    %139 = vector.broadcast %cst_46 : f32 to vector<8x128xf32>
    %140 = arith.addf %139, %138 : vector<8x128xf32>
    %141 = arith.divf %139, %140 : vector<8x128xf32>
    %142 = vector.extract_strided_slice %120 {offsets = [0, 256], sizes = [8, 128], strides = [1, 1]} : vector<8x384xf32> to vector<8x128xf32>
    %143 = vector.extract_strided_slice %125 {offsets = [0, 256], sizes = [8, 128], strides = [1, 1]} : vector<8x384xf32> to vector<8x128xf32>
    %144 = arith.mulf %133, %143 : vector<8x128xf32>
    %145 = arith.addf %142, %144 : vector<8x128xf32>
    %146 = math.tanh %145 : vector<8x128xf32>
    %cst_47 = arith.constant 1.000000e+00 : f32
    %147 = vector.broadcast %cst_47 : f32 to vector<8x128xf32>
    %148 = arith.subf %147, %141 : vector<8x128xf32>
    %149 = arith.mulf %148, %146 : vector<8x128xf32>
    %150 = arith.mulf %141, %113 : vector<8x128xf32>
    %151 = arith.addf %149, %150 : vector<8x128xf32>
    %152 = arith.index_cast %c3_i32 : i32 to index
    %c0_48 = arith.constant 0 : index
    %c0_49 = arith.constant 0 : index
    %153 = vector.load %arg4[%152, %c0_48, %c0_49] : memref<8x8x128xf32, #tpu.memory_space<vmem>>, vector<1x8x128xf32>
    %154 = vector.shape_cast %153 : vector<1x8x128xf32> to vector<8x128xf32>
    %155 = vector.shape_cast %151 : vector<8x128xf32> to vector<1x8x128xf32>
    tpu.vector_store %arg4[%152, %c0_48, %c0_49], %155 {strides = array<i32>} : memref<8x8x128xf32, #tpu.memory_space<vmem>>, vector<1x8x128xf32>,
    %c4_i32 = arith.constant 4 : i32
    %156 = arith.index_cast %c4_i32 : i32 to index
    %c0_50 = arith.constant 0 : index
    %c0_51 = arith.constant 0 : index
    %157 = vector.load %arg1[%156, %c0_50, %c0_51] : memref<8x8x384xf32, #tpu.memory_space<vmem>>, vector<1x8x384xf32>
    %158 = vector.shape_cast %157 : vector<1x8x384xf32> to vector<8x384xf32>
    %c0_52 = arith.constant 0 : index
    %c0_53 = arith.constant 0 : index
    %159 = vector.load %arg2[%c0_52, %c0_53] : memref<128x384xf32, #tpu.memory_space<vmem>>, vector<128x384xf32>
    %cst_54 = arith.constant dense<0.000000e+00> : vector<8x384xf32>
    %160 = tpu.matmul %151, %159, %cst_54 {dimension_numbers = #tpu.dot_dimension_numbers<[1], [0], [0], [1], [0, 0, 1, 1], [], []>} : vector<8x128xf32>, vector<128x384xf32>, vector<8x384xf32> -> vector<8x384xf32>
    %c0_55 = arith.constant 0 : index
    %c0_56 = arith.constant 0 : index
    %161 = vector.load %arg3[%c0_55, %c0_56] : memref<1x384xf32, #tpu.memory_space<vmem>>, vector<1x384xf32>
    %162 = vector.broadcast %161 : vector<1x384xf32> to vector<8x384xf32>
    %163 = arith.addf %160, %162 : vector<8x384xf32>
    %164 = vector.extract_strided_slice %158 {offsets = [0, 0], sizes = [8, 128], strides = [1, 1]} : vector<8x384xf32> to vector<8x128xf32>
    %165 = vector.extract_strided_slice %163 {offsets = [0, 0], sizes = [8, 128], strides = [1, 1]} : vector<8x384xf32> to vector<8x128xf32>
    %166 = arith.addf %164, %165 : vector<8x128xf32>
    %167 = arith.negf %166 : vector<8x128xf32>
    %168 = math.exp %167 : vector<8x128xf32>
    %cst_57 = arith.constant 1.000000e+00 : f32
    %169 = vector.broadcast %cst_57 : f32 to vector<8x128xf32>
    %170 = arith.addf %169, %168 : vector<8x128xf32>
    %171 = arith.divf %169, %170 : vector<8x128xf32>
    %172 = vector.extract_strided_slice %158 {offsets = [0, 128], sizes = [8, 128], strides = [1, 1]} : vector<8x384xf32> to vector<8x128xf32>
    %173 = vector.extract_strided_slice %163 {offsets = [0, 128], sizes = [8, 128], strides = [1, 1]} : vector<8x384xf32> to vector<8x128xf32>
    %174 = arith.addf %172, %173 : vector<8x128xf32>
    %175 = arith.negf %174 : vector<8x128xf32>
    %176 = math.exp %175 : vector<8x128xf32>
    %cst_58 = arith.constant 1.000000e+00 : f32
    %177 = vector.broadcast %cst_58 : f32 to vector<8x128xf32>
    %178 = arith.addf %177, %176 : vector<8x128xf32>
    %179 = arith.divf %177, %178 : vector<8x128xf32>
    %180 = vector.extract_strided_slice %158 {offsets = [0, 256], sizes = [8, 128], strides = [1, 1]} : vector<8x384xf32> to vector<8x128xf32>
    %181 = vector.extract_strided_slice %163 {offsets = [0, 256], sizes = [8, 128], strides = [1, 1]} : vector<8x384xf32> to vector<8x128xf32>
    %182 = arith.mulf %171, %181 : vector<8x128xf32>
    %183 = arith.addf %180, %182 : vector<8x128xf32>
    %184 = math.tanh %183 : vector<8x128xf32>
    %cst_59 = arith.constant 1.000000e+00 : f32
    %185 = vector.broadcast %cst_59 : f32 to vector<8x128xf32>
    %186 = arith.subf %185, %179 : vector<8x128xf32>
    %187 = arith.mulf %186, %184 : vector<8x128xf32>
    %188 = arith.mulf %179, %151 : vector<8x128xf32>
    %189 = arith.addf %187, %188 : vector<8x128xf32>
    %190 = arith.index_cast %c4_i32 : i32 to index
    %c0_60 = arith.constant 0 : index
    %c0_61 = arith.constant 0 : index
    %191 = vector.load %arg4[%190, %c0_60, %c0_61] : memref<8x8x128xf32, #tpu.memory_space<vmem>>, vector<1x8x128xf32>
    %192 = vector.shape_cast %191 : vector<1x8x128xf32> to vector<8x128xf32>
    %193 = vector.shape_cast %189 : vector<8x128xf32> to vector<1x8x128xf32>
    tpu.vector_store %arg4[%190, %c0_60, %c0_61], %193 {strides = array<i32>} : memref<8x8x128xf32, #tpu.memory_space<vmem>>, vector<1x8x128xf32>,
    %c5_i32 = arith.constant 5 : i32
    %194 = arith.index_cast %c5_i32 : i32 to index
    %c0_62 = arith.constant 0 : index
    %c0_63 = arith.constant 0 : index
    %195 = vector.load %arg1[%194, %c0_62, %c0_63] : memref<8x8x384xf32, #tpu.memory_space<vmem>>, vector<1x8x384xf32>
    %196 = vector.shape_cast %195 : vector<1x8x384xf32> to vector<8x384xf32>
    %c0_64 = arith.constant 0 : index
    %c0_65 = arith.constant 0 : index
    %197 = vector.load %arg2[%c0_64, %c0_65] : memref<128x384xf32, #tpu.memory_space<vmem>>, vector<128x384xf32>
    %cst_66 = arith.constant dense<0.000000e+00> : vector<8x384xf32>
    %198 = tpu.matmul %189, %197, %cst_66 {dimension_numbers = #tpu.dot_dimension_numbers<[1], [0], [0], [1], [0, 0, 1, 1], [], []>} : vector<8x128xf32>, vector<128x384xf32>, vector<8x384xf32> -> vector<8x384xf32>
    %c0_67 = arith.constant 0 : index
    %c0_68 = arith.constant 0 : index
    %199 = vector.load %arg3[%c0_67, %c0_68] : memref<1x384xf32, #tpu.memory_space<vmem>>, vector<1x384xf32>
    %200 = vector.broadcast %199 : vector<1x384xf32> to vector<8x384xf32>
    %201 = arith.addf %198, %200 : vector<8x384xf32>
    %202 = vector.extract_strided_slice %196 {offsets = [0, 0], sizes = [8, 128], strides = [1, 1]} : vector<8x384xf32> to vector<8x128xf32>
    %203 = vector.extract_strided_slice %201 {offsets = [0, 0], sizes = [8, 128], strides = [1, 1]} : vector<8x384xf32> to vector<8x128xf32>
    %204 = arith.addf %202, %203 : vector<8x128xf32>
    %205 = arith.negf %204 : vector<8x128xf32>
    %206 = math.exp %205 : vector<8x128xf32>
    %cst_69 = arith.constant 1.000000e+00 : f32
    %207 = vector.broadcast %cst_69 : f32 to vector<8x128xf32>
    %208 = arith.addf %207, %206 : vector<8x128xf32>
    %209 = arith.divf %207, %208 : vector<8x128xf32>
    %210 = vector.extract_strided_slice %196 {offsets = [0, 128], sizes = [8, 128], strides = [1, 1]} : vector<8x384xf32> to vector<8x128xf32>
    %211 = vector.extract_strided_slice %201 {offsets = [0, 128], sizes = [8, 128], strides = [1, 1]} : vector<8x384xf32> to vector<8x128xf32>
    %212 = arith.addf %210, %211 : vector<8x128xf32>
    %213 = arith.negf %212 : vector<8x128xf32>
    %214 = math.exp %213 : vector<8x128xf32>
    %cst_70 = arith.constant 1.000000e+00 : f32
    %215 = vector.broadcast %cst_70 : f32 to vector<8x128xf32>
    %216 = arith.addf %215, %214 : vector<8x128xf32>
    %217 = arith.divf %215, %216 : vector<8x128xf32>
    %218 = vector.extract_strided_slice %196 {offsets = [0, 256], sizes = [8, 128], strides = [1, 1]} : vector<8x384xf32> to vector<8x128xf32>
    %219 = vector.extract_strided_slice %201 {offsets = [0, 256], sizes = [8, 128], strides = [1, 1]} : vector<8x384xf32> to vector<8x128xf32>
    %220 = arith.mulf %209, %219 : vector<8x128xf32>
    %221 = arith.addf %218, %220 : vector<8x128xf32>
    %222 = math.tanh %221 : vector<8x128xf32>
    %cst_71 = arith.constant 1.000000e+00 : f32
    %223 = vector.broadcast %cst_71 : f32 to vector<8x128xf32>
    %224 = arith.subf %223, %217 : vector<8x128xf32>
    %225 = arith.mulf %224, %222 : vector<8x128xf32>
    %226 = arith.mulf %217, %189 : vector<8x128xf32>
    %227 = arith.addf %225, %226 : vector<8x128xf32>
    %228 = arith.index_cast %c5_i32 : i32 to index
    %c0_72 = arith.constant 0 : index
    %c0_73 = arith.constant 0 : index
    %229 = vector.load %arg4[%228, %c0_72, %c0_73] : memref<8x8x128xf32, #tpu.memory_space<vmem>>, vector<1x8x128xf32>
    %230 = vector.shape_cast %229 : vector<1x8x128xf32> to vector<8x128xf32>
    %231 = vector.shape_cast %227 : vector<8x128xf32> to vector<1x8x128xf32>
    tpu.vector_store %arg4[%228, %c0_72, %c0_73], %231 {strides = array<i32>} : memref<8x8x128xf32, #tpu.memory_space<vmem>>, vector<1x8x128xf32>,
    %c6_i32 = arith.constant 6 : i32
    %232 = arith.index_cast %c6_i32 : i32 to index
    %c0_74 = arith.constant 0 : index
    %c0_75 = arith.constant 0 : index
    %233 = vector.load %arg1[%232, %c0_74, %c0_75] : memref<8x8x384xf32, #tpu.memory_space<vmem>>, vector<1x8x384xf32>
    %234 = vector.shape_cast %233 : vector<1x8x384xf32> to vector<8x384xf32>
    %c0_76 = arith.constant 0 : index
    %c0_77 = arith.constant 0 : index
    %235 = vector.load %arg2[%c0_76, %c0_77] : memref<128x384xf32, #tpu.memory_space<vmem>>, vector<128x384xf32>
    %cst_78 = arith.constant dense<0.000000e+00> : vector<8x384xf32>
    %236 = tpu.matmul %227, %235, %cst_78 {dimension_numbers = #tpu.dot_dimension_numbers<[1], [0], [0], [1], [0, 0, 1, 1], [], []>} : vector<8x128xf32>, vector<128x384xf32>, vector<8x384xf32> -> vector<8x384xf32>
    %c0_79 = arith.constant 0 : index
    %c0_80 = arith.constant 0 : index
    %237 = vector.load %arg3[%c0_79, %c0_80] : memref<1x384xf32, #tpu.memory_space<vmem>>, vector<1x384xf32>
    %238 = vector.broadcast %237 : vector<1x384xf32> to vector<8x384xf32>
    %239 = arith.addf %236, %238 : vector<8x384xf32>
    %240 = vector.extract_strided_slice %234 {offsets = [0, 0], sizes = [8, 128], strides = [1, 1]} : vector<8x384xf32> to vector<8x128xf32>
    %241 = vector.extract_strided_slice %239 {offsets = [0, 0], sizes = [8, 128], strides = [1, 1]} : vector<8x384xf32> to vector<8x128xf32>
    %242 = arith.addf %240, %241 : vector<8x128xf32>
    %243 = arith.negf %242 : vector<8x128xf32>
    %244 = math.exp %243 : vector<8x128xf32>
    %cst_81 = arith.constant 1.000000e+00 : f32
    %245 = vector.broadcast %cst_81 : f32 to vector<8x128xf32>
    %246 = arith.addf %245, %244 : vector<8x128xf32>
    %247 = arith.divf %245, %246 : vector<8x128xf32>
    %248 = vector.extract_strided_slice %234 {offsets = [0, 128], sizes = [8, 128], strides = [1, 1]} : vector<8x384xf32> to vector<8x128xf32>
    %249 = vector.extract_strided_slice %239 {offsets = [0, 128], sizes = [8, 128], strides = [1, 1]} : vector<8x384xf32> to vector<8x128xf32>
    %250 = arith.addf %248, %249 : vector<8x128xf32>
    %251 = arith.negf %250 : vector<8x128xf32>
    %252 = math.exp %251 : vector<8x128xf32>
    %cst_82 = arith.constant 1.000000e+00 : f32
    %253 = vector.broadcast %cst_82 : f32 to vector<8x128xf32>
    %254 = arith.addf %253, %252 : vector<8x128xf32>
    %255 = arith.divf %253, %254 : vector<8x128xf32>
    %256 = vector.extract_strided_slice %234 {offsets = [0, 256], sizes = [8, 128], strides = [1, 1]} : vector<8x384xf32> to vector<8x128xf32>
    %257 = vector.extract_strided_slice %239 {offsets = [0, 256], sizes = [8, 128], strides = [1, 1]} : vector<8x384xf32> to vector<8x128xf32>
    %258 = arith.mulf %247, %257 : vector<8x128xf32>
    %259 = arith.addf %256, %258 : vector<8x128xf32>
    %260 = math.tanh %259 : vector<8x128xf32>
    %cst_83 = arith.constant 1.000000e+00 : f32
    %261 = vector.broadcast %cst_83 : f32 to vector<8x128xf32>
    %262 = arith.subf %261, %255 : vector<8x128xf32>
    %263 = arith.mulf %262, %260 : vector<8x128xf32>
    %264 = arith.mulf %255, %227 : vector<8x128xf32>
    %265 = arith.addf %263, %264 : vector<8x128xf32>
    %266 = arith.index_cast %c6_i32 : i32 to index
    %c0_84 = arith.constant 0 : index
    %c0_85 = arith.constant 0 : index
    %267 = vector.load %arg4[%266, %c0_84, %c0_85] : memref<8x8x128xf32, #tpu.memory_space<vmem>>, vector<1x8x128xf32>
    %268 = vector.shape_cast %267 : vector<1x8x128xf32> to vector<8x128xf32>
    %269 = vector.shape_cast %265 : vector<8x128xf32> to vector<1x8x128xf32>
    tpu.vector_store %arg4[%266, %c0_84, %c0_85], %269 {strides = array<i32>} : memref<8x8x128xf32, #tpu.memory_space<vmem>>, vector<1x8x128xf32>,
    %c7_i32 = arith.constant 7 : i32
    %270 = arith.index_cast %c7_i32 : i32 to index
    %c0_86 = arith.constant 0 : index
    %c0_87 = arith.constant 0 : index
    %271 = vector.load %arg1[%270, %c0_86, %c0_87] : memref<8x8x384xf32, #tpu.memory_space<vmem>>, vector<1x8x384xf32>
    %272 = vector.shape_cast %271 : vector<1x8x384xf32> to vector<8x384xf32>
    %c0_88 = arith.constant 0 : index
    %c0_89 = arith.constant 0 : index
    %273 = vector.load %arg2[%c0_88, %c0_89] : memref<128x384xf32, #tpu.memory_space<vmem>>, vector<128x384xf32>
    %cst_90 = arith.constant dense<0.000000e+00> : vector<8x384xf32>
    %274 = tpu.matmul %265, %273, %cst_90 {dimension_numbers = #tpu.dot_dimension_numbers<[1], [0], [0], [1], [0, 0, 1, 1], [], []>} : vector<8x128xf32>, vector<128x384xf32>, vector<8x384xf32> -> vector<8x384xf32>
    %c0_91 = arith.constant 0 : index
    %c0_92 = arith.constant 0 : index
    %275 = vector.load %arg3[%c0_91, %c0_92] : memref<1x384xf32, #tpu.memory_space<vmem>>, vector<1x384xf32>
    %276 = vector.broadcast %275 : vector<1x384xf32> to vector<8x384xf32>
    %277 = arith.addf %274, %276 : vector<8x384xf32>
    %278 = vector.extract_strided_slice %272 {offsets = [0, 0], sizes = [8, 128], strides = [1, 1]} : vector<8x384xf32> to vector<8x128xf32>
    %279 = vector.extract_strided_slice %277 {offsets = [0, 0], sizes = [8, 128], strides = [1, 1]} : vector<8x384xf32> to vector<8x128xf32>
    %280 = arith.addf %278, %279 : vector<8x128xf32>
    %281 = arith.negf %280 : vector<8x128xf32>
    %282 = math.exp %281 : vector<8x128xf32>
    %cst_93 = arith.constant 1.000000e+00 : f32
    %283 = vector.broadcast %cst_93 : f32 to vector<8x128xf32>
    %284 = arith.addf %283, %282 : vector<8x128xf32>
    %285 = arith.divf %283, %284 : vector<8x128xf32>
    %286 = vector.extract_strided_slice %272 {offsets = [0, 128], sizes = [8, 128], strides = [1, 1]} : vector<8x384xf32> to vector<8x128xf32>
    %287 = vector.extract_strided_slice %277 {offsets = [0, 128], sizes = [8, 128], strides = [1, 1]} : vector<8x384xf32> to vector<8x128xf32>
    %288 = arith.addf %286, %287 : vector<8x128xf32>
    %289 = arith.negf %288 : vector<8x128xf32>
    %290 = math.exp %289 : vector<8x128xf32>
    %cst_94 = arith.constant 1.000000e+00 : f32
    %291 = vector.broadcast %cst_94 : f32 to vector<8x128xf32>
    %292 = arith.addf %291, %290 : vector<8x128xf32>
    %293 = arith.divf %291, %292 : vector<8x128xf32>
    %294 = vector.extract_strided_slice %272 {offsets = [0, 256], sizes = [8, 128], strides = [1, 1]} : vector<8x384xf32> to vector<8x128xf32>
    %295 = vector.extract_strided_slice %277 {offsets = [0, 256], sizes = [8, 128], strides = [1, 1]} : vector<8x384xf32> to vector<8x128xf32>
    %296 = arith.mulf %285, %295 : vector<8x128xf32>
    %297 = arith.addf %294, %296 : vector<8x128xf32>
    %298 = math.tanh %297 : vector<8x128xf32>
    %cst_95 = arith.constant 1.000000e+00 : f32
    %299 = vector.broadcast %cst_95 : f32 to vector<8x128xf32>
    %300 = arith.subf %299, %293 : vector<8x128xf32>
    %301 = arith.mulf %300, %298 : vector<8x128xf32>
    %302 = arith.mulf %293, %265 : vector<8x128xf32>
    %303 = arith.addf %301, %302 : vector<8x128xf32>
    %304 = arith.index_cast %c7_i32 : i32 to index
    %c0_96 = arith.constant 0 : index
    %c0_97 = arith.constant 0 : index
    %305 = vector.load %arg4[%304, %c0_96, %c0_97] : memref<8x8x128xf32, #tpu.memory_space<vmem>>, vector<1x8x128xf32>
    %306 = vector.shape_cast %305 : vector<1x8x128xf32> to vector<8x128xf32>
    %307 = vector.shape_cast %303 : vector<8x128xf32> to vector<1x8x128xf32>
    tpu.vector_store %arg4[%304, %c0_96, %c0_97], %307 {strides = array<i32>} : memref<8x8x128xf32, #tpu.memory_space<vmem>>, vector<1x8x128xf32>,
    %c8_i32 = arith.constant 8 : i32
    %c0_98 = arith.constant 0 : index
    %c0_99 = arith.constant 0 : index
    %308 = vector.load %arg5[%c0_98, %c0_99] : memref<8x128xf32, #tpu.memory_space<vmem>>, vector<8x128xf32>
    tpu.vector_store %arg5[%c0_98, %c0_99], %303 {strides = array<i32>} : memref<8x128xf32, #tpu.memory_space<vmem>>, vector<8x128xf32>,
    return
  }
  func.func @transform_0(%arg0: i32) -> (i32, i32, i32) {
    %c0_i32 = arith.constant 0 : i32
    %c0_i32_0 = arith.constant 0 : i32
    %c0_i32_1 = arith.constant 0 : i32
    return %arg0, %c0_i32, %c0_i32_0 : i32, i32, i32
  }
  func.func @transform_1(%arg0: i32) -> (i32, i32) {
    %c0_i32 = arith.constant 0 : i32
    %c0_i32_0 = arith.constant 0 : i32
    %c0_i32_1 = arith.constant 0 : i32
    return %c0_i32, %c0_i32_0 : i32, i32
  }
  func.func @transform_2(%arg0: i32) -> (i32, i32) {
    %c0_i32 = arith.constant 0 : i32
    %c0_i32_0 = arith.constant 0 : i32
    %c0_i32_1 = arith.constant 0 : i32
    return %c0_i32, %c0_i32_0 : i32, i32
  }
  func.func @transform_3(%arg0: i32) -> (i32, i32, i32) {
    %c0_i32 = arith.constant 0 : i32
    %c0_i32_0 = arith.constant 0 : i32
    %c0_i32_1 = arith.constant 0 : i32
    return %arg0, %c0_i32, %c0_i32_0 : i32, i32, i32
  }
}

module attributes {stable_mosaic.version = 11 : i64} {
  func.func @input_proj_kernel(%arg0: i32, %arg1: memref<64x128xf32, #tpu.memory_space<vmem>>, %arg2: memref<128x384xf32, #tpu.memory_space<vmem>>, %arg3: memref<1x384xf32, #tpu.memory_space<vmem>>, %arg4: memref<64x384xf32, #tpu.memory_space<vmem>>) attributes {dimension_semantics = [#tpu.dimension_semantics<parallel>], iteration_bounds = array<i64: 1>, scalar_prefetch = 0 : i64, scratch_operands = 0 : i64, tpu.core_type = #tpu.core_type<tc>, window_params = [{transform_indices = @transform_0, window_bounds = array<i64: 64, 128>}, {pipeline_mode = #tpu.pipeline_mode<synchronous>, transform_indices = @transform_1, window_bounds = array<i64: 128, 384>}, {pipeline_mode = #tpu.pipeline_mode<synchronous>, transform_indices = @transform_2, window_bounds = array<i64: 1, 384>}, {transform_indices = @transform_3, window_bounds = array<i64: 64, 384>}]} {
    %c0 = arith.constant 0 : index
    %c0_0 = arith.constant 0 : index
    %0 = vector.load %arg1[%c0, %c0_0] : memref<64x128xf32, #tpu.memory_space<vmem>>, vector<64x128xf32>
    %c0_1 = arith.constant 0 : index
    %c0_2 = arith.constant 0 : index
    %1 = vector.load %arg2[%c0_1, %c0_2] : memref<128x384xf32, #tpu.memory_space<vmem>>, vector<128x384xf32>
    %cst = arith.constant dense<0.000000e+00> : vector<64x384xf32>
    %2 = tpu.matmul %0, %1, %cst {dimension_numbers = #tpu.dot_dimension_numbers<[1], [0], [0], [1], [0, 0, 1, 1], [], []>} : vector<64x128xf32>, vector<128x384xf32>, vector<64x384xf32> -> vector<64x384xf32>
    %c0_3 = arith.constant 0 : index
    %c0_4 = arith.constant 0 : index
    %3 = vector.load %arg3[%c0_3, %c0_4] : memref<1x384xf32, #tpu.memory_space<vmem>>, vector<1x384xf32>
    %4 = vector.broadcast %3 : vector<1x384xf32> to vector<64x384xf32>
    %5 = arith.addf %2, %4 : vector<64x384xf32>
    %c0_5 = arith.constant 0 : index
    %c0_6 = arith.constant 0 : index
    %6 = vector.load %arg4[%c0_5, %c0_6] : memref<64x384xf32, #tpu.memory_space<vmem>>, vector<64x384xf32>
    tpu.vector_store %arg4[%c0_5, %c0_6], %5 {strides = array<i32>} : memref<64x384xf32, #tpu.memory_space<vmem>>, vector<64x384xf32>,
    return
  }
  func.func @transform_0(%arg0: i32) -> (i32, i32) {
    %c0_i32 = arith.constant 0 : i32
    %c0_i32_0 = arith.constant 0 : i32
    return %arg0, %c0_i32 : i32, i32
  }
  func.func @transform_1(%arg0: i32) -> (i32, i32) {
    %c0_i32 = arith.constant 0 : i32
    %c0_i32_0 = arith.constant 0 : i32
    %c0_i32_1 = arith.constant 0 : i32
    return %c0_i32, %c0_i32_0 : i32, i32
  }
  func.func @transform_2(%arg0: i32) -> (i32, i32) {
    %c0_i32 = arith.constant 0 : i32
    %c0_i32_0 = arith.constant 0 : i32
    %c0_i32_1 = arith.constant 0 : i32
    return %c0_i32, %c0_i32_0 : i32, i32
  }
  func.func @transform_3(%arg0: i32) -> (i32, i32) {
    %c0_i32 = arith.constant 0 : i32
    %c0_i32_0 = arith.constant 0 : i32
    return %arg0, %c0_i32 : i32, i32
  }
}

module attributes {stable_mosaic.version = 11 : i64} {
  func.func @gru_last_kernel(%arg0: i32, %arg1: memref<8x8x384xf32, #tpu.memory_space<vmem>>, %arg2: memref<128x384xf32, #tpu.memory_space<vmem>>, %arg3: memref<1x384xf32, #tpu.memory_space<vmem>>, %arg4: memref<128x4xf32, #tpu.memory_space<vmem>>, %arg5: memref<1x4xf32, #tpu.memory_space<vmem>>, %arg6: memref<8x4xf32, #tpu.memory_space<vmem>>, %arg7: memref<8x128xf32, #tpu.memory_space<vmem>>) attributes {dimension_semantics = [#tpu.dimension_semantics<arbitrary>], iteration_bounds = array<i64: 1>, scalar_prefetch = 0 : i64, scratch_operands = 1 : i64, tpu.core_type = #tpu.core_type<tc>, window_params = [{transform_indices = @transform_0, window_bounds = array<i64: 8, 8, 384>}, {pipeline_mode = #tpu.pipeline_mode<synchronous>, transform_indices = @transform_1, window_bounds = array<i64: 128, 384>}, {pipeline_mode = #tpu.pipeline_mode<synchronous>, transform_indices = @transform_2, window_bounds = array<i64: 1, 384>}, {pipeline_mode = #tpu.pipeline_mode<synchronous>, transform_indices = @transform_3, window_bounds = array<i64: 128, 4>}, {pipeline_mode = #tpu.pipeline_mode<synchronous>, transform_indices = @transform_4, window_bounds = array<i64: 1, 4>}, {pipeline_mode = #tpu.pipeline_mode<synchronous>, transform_indices = @transform_5, window_bounds = array<i64: 8, 4>}]} {
    %c0_i32 = arith.constant 0 : i32
    %0 = arith.cmpi eq, %arg0, %c0_i32 : i32
    %1 = arith.extui %0 : i1 to i32
    %c0_i32_0 = arith.constant 0 : i32
    %2 = arith.cmpi ne, %1, %c0_i32_0 : i32
    scf.if %2 {
      %cst_86 = arith.constant 0.000000e+00 : f32
      %280 = vector.broadcast %cst_86 : f32 to vector<8x128xf32>
      %c0_87 = arith.constant 0 : index
      %c0_88 = arith.constant 0 : index
      %281 = vector.load %arg7[%c0_87, %c0_88] : memref<8x128xf32, #tpu.memory_space<vmem>>, vector<8x128xf32>
      tpu.vector_store %arg7[%c0_87, %c0_88], %280 {strides = array<i32>} : memref<8x128xf32, #tpu.memory_space<vmem>>, vector<8x128xf32>,
    } else {
    }
    %c0 = arith.constant 0 : index
    %c0_1 = arith.constant 0 : index
    %3 = vector.load %arg7[%c0, %c0_1] : memref<8x128xf32, #tpu.memory_space<vmem>>, vector<8x128xf32>
    %c0_i32_2 = arith.constant 0 : i32
    %4 = arith.index_cast %c0_i32_2 : i32 to index
    %c0_3 = arith.constant 0 : index
    %c0_4 = arith.constant 0 : index
    %5 = vector.load %arg1[%4, %c0_3, %c0_4] : memref<8x8x384xf32, #tpu.memory_space<vmem>>, vector<1x8x384xf32>
    %6 = vector.shape_cast %5 : vector<1x8x384xf32> to vector<8x384xf32>
    %c0_5 = arith.constant 0 : index
    %c0_6 = arith.constant 0 : index
    %7 = vector.load %arg2[%c0_5, %c0_6] : memref<128x384xf32, #tpu.memory_space<vmem>>, vector<128x384xf32>
    %cst = arith.constant dense<0.000000e+00> : vector<8x384xf32>
    %8 = tpu.matmul %3, %7, %cst {dimension_numbers = #tpu.dot_dimension_numbers<[1], [0], [0], [1], [0, 0, 1, 1], [], []>} : vector<8x128xf32>, vector<128x384xf32>, vector<8x384xf32> -> vector<8x384xf32>
    %c0_7 = arith.constant 0 : index
    %c0_8 = arith.constant 0 : index
    %9 = vector.load %arg3[%c0_7, %c0_8] : memref<1x384xf32, #tpu.memory_space<vmem>>, vector<1x384xf32>
    %10 = vector.broadcast %9 : vector<1x384xf32> to vector<8x384xf32>
    %11 = arith.addf %8, %10 : vector<8x384xf32>
    %12 = vector.extract_strided_slice %6 {offsets = [0, 0], sizes = [8, 128], strides = [1, 1]} : vector<8x384xf32> to vector<8x128xf32>
    %13 = vector.extract_strided_slice %11 {offsets = [0, 0], sizes = [8, 128], strides = [1, 1]} : vector<8x384xf32> to vector<8x128xf32>
    %14 = arith.addf %12, %13 : vector<8x128xf32>
    %15 = arith.negf %14 : vector<8x128xf32>
    %16 = math.exp %15 : vector<8x128xf32>
    %cst_9 = arith.constant 1.000000e+00 : f32
    %17 = vector.broadcast %cst_9 : f32 to vector<8x128xf32>
    %18 = arith.addf %17, %16 : vector<8x128xf32>
    %19 = arith.divf %17, %18 : vector<8x128xf32>
    %20 = vector.extract_strided_slice %6 {offsets = [0, 128], sizes = [8, 128], strides = [1, 1]} : vector<8x384xf32> to vector<8x128xf32>
    %21 = vector.extract_strided_slice %11 {offsets = [0, 128], sizes = [8, 128], strides = [1, 1]} : vector<8x384xf32> to vector<8x128xf32>
    %22 = arith.addf %20, %21 : vector<8x128xf32>
    %23 = arith.negf %22 : vector<8x128xf32>
    %24 = math.exp %23 : vector<8x128xf32>
    %cst_10 = arith.constant 1.000000e+00 : f32
    %25 = vector.broadcast %cst_10 : f32 to vector<8x128xf32>
    %26 = arith.addf %25, %24 : vector<8x128xf32>
    %27 = arith.divf %25, %26 : vector<8x128xf32>
    %28 = vector.extract_strided_slice %6 {offsets = [0, 256], sizes = [8, 128], strides = [1, 1]} : vector<8x384xf32> to vector<8x128xf32>
    %29 = vector.extract_strided_slice %11 {offsets = [0, 256], sizes = [8, 128], strides = [1, 1]} : vector<8x384xf32> to vector<8x128xf32>
    %30 = arith.mulf %19, %29 : vector<8x128xf32>
    %31 = arith.addf %28, %30 : vector<8x128xf32>
    %32 = math.tanh %31 : vector<8x128xf32>
    %cst_11 = arith.constant 1.000000e+00 : f32
    %33 = vector.broadcast %cst_11 : f32 to vector<8x128xf32>
    %34 = arith.subf %33, %27 : vector<8x128xf32>
    %35 = arith.mulf %34, %32 : vector<8x128xf32>
    %36 = arith.mulf %27, %3 : vector<8x128xf32>
    %37 = arith.addf %35, %36 : vector<8x128xf32>
    %c1_i32 = arith.constant 1 : i32
    %38 = arith.index_cast %c1_i32 : i32 to index
    %c0_12 = arith.constant 0 : index
    %c0_13 = arith.constant 0 : index
    %39 = vector.load %arg1[%38, %c0_12, %c0_13] : memref<8x8x384xf32, #tpu.memory_space<vmem>>, vector<1x8x384xf32>
    %40 = vector.shape_cast %39 : vector<1x8x384xf32> to vector<8x384xf32>
    %c0_14 = arith.constant 0 : index
    %c0_15 = arith.constant 0 : index
    %41 = vector.load %arg2[%c0_14, %c0_15] : memref<128x384xf32, #tpu.memory_space<vmem>>, vector<128x384xf32>
    %cst_16 = arith.constant dense<0.000000e+00> : vector<8x384xf32>
    %42 = tpu.matmul %37, %41, %cst_16 {dimension_numbers = #tpu.dot_dimension_numbers<[1], [0], [0], [1], [0, 0, 1, 1], [], []>} : vector<8x128xf32>, vector<128x384xf32>, vector<8x384xf32> -> vector<8x384xf32>
    %c0_17 = arith.constant 0 : index
    %c0_18 = arith.constant 0 : index
    %43 = vector.load %arg3[%c0_17, %c0_18] : memref<1x384xf32, #tpu.memory_space<vmem>>, vector<1x384xf32>
    %44 = vector.broadcast %43 : vector<1x384xf32> to vector<8x384xf32>
    %45 = arith.addf %42, %44 : vector<8x384xf32>
    %46 = vector.extract_strided_slice %40 {offsets = [0, 0], sizes = [8, 128], strides = [1, 1]} : vector<8x384xf32> to vector<8x128xf32>
    %47 = vector.extract_strided_slice %45 {offsets = [0, 0], sizes = [8, 128], strides = [1, 1]} : vector<8x384xf32> to vector<8x128xf32>
    %48 = arith.addf %46, %47 : vector<8x128xf32>
    %49 = arith.negf %48 : vector<8x128xf32>
    %50 = math.exp %49 : vector<8x128xf32>
    %cst_19 = arith.constant 1.000000e+00 : f32
    %51 = vector.broadcast %cst_19 : f32 to vector<8x128xf32>
    %52 = arith.addf %51, %50 : vector<8x128xf32>
    %53 = arith.divf %51, %52 : vector<8x128xf32>
    %54 = vector.extract_strided_slice %40 {offsets = [0, 128], sizes = [8, 128], strides = [1, 1]} : vector<8x384xf32> to vector<8x128xf32>
    %55 = vector.extract_strided_slice %45 {offsets = [0, 128], sizes = [8, 128], strides = [1, 1]} : vector<8x384xf32> to vector<8x128xf32>
    %56 = arith.addf %54, %55 : vector<8x128xf32>
    %57 = arith.negf %56 : vector<8x128xf32>
    %58 = math.exp %57 : vector<8x128xf32>
    %cst_20 = arith.constant 1.000000e+00 : f32
    %59 = vector.broadcast %cst_20 : f32 to vector<8x128xf32>
    %60 = arith.addf %59, %58 : vector<8x128xf32>
    %61 = arith.divf %59, %60 : vector<8x128xf32>
    %62 = vector.extract_strided_slice %40 {offsets = [0, 256], sizes = [8, 128], strides = [1, 1]} : vector<8x384xf32> to vector<8x128xf32>
    %63 = vector.extract_strided_slice %45 {offsets = [0, 256], sizes = [8, 128], strides = [1, 1]} : vector<8x384xf32> to vector<8x128xf32>
    %64 = arith.mulf %53, %63 : vector<8x128xf32>
    %65 = arith.addf %62, %64 : vector<8x128xf32>
    %66 = math.tanh %65 : vector<8x128xf32>
    %cst_21 = arith.constant 1.000000e+00 : f32
    %67 = vector.broadcast %cst_21 : f32 to vector<8x128xf32>
    %68 = arith.subf %67, %61 : vector<8x128xf32>
    %69 = arith.mulf %68, %66 : vector<8x128xf32>
    %70 = arith.mulf %61, %37 : vector<8x128xf32>
    %71 = arith.addf %69, %70 : vector<8x128xf32>
    %c2_i32 = arith.constant 2 : i32
    %72 = arith.index_cast %c2_i32 : i32 to index
    %c0_22 = arith.constant 0 : index
    %c0_23 = arith.constant 0 : index
    %73 = vector.load %arg1[%72, %c0_22, %c0_23] : memref<8x8x384xf32, #tpu.memory_space<vmem>>, vector<1x8x384xf32>
    %74 = vector.shape_cast %73 : vector<1x8x384xf32> to vector<8x384xf32>
    %c0_24 = arith.constant 0 : index
    %c0_25 = arith.constant 0 : index
    %75 = vector.load %arg2[%c0_24, %c0_25] : memref<128x384xf32, #tpu.memory_space<vmem>>, vector<128x384xf32>
    %cst_26 = arith.constant dense<0.000000e+00> : vector<8x384xf32>
    %76 = tpu.matmul %71, %75, %cst_26 {dimension_numbers = #tpu.dot_dimension_numbers<[1], [0], [0], [1], [0, 0, 1, 1], [], []>} : vector<8x128xf32>, vector<128x384xf32>, vector<8x384xf32> -> vector<8x384xf32>
    %c0_27 = arith.constant 0 : index
    %c0_28 = arith.constant 0 : index
    %77 = vector.load %arg3[%c0_27, %c0_28] : memref<1x384xf32, #tpu.memory_space<vmem>>, vector<1x384xf32>
    %78 = vector.broadcast %77 : vector<1x384xf32> to vector<8x384xf32>
    %79 = arith.addf %76, %78 : vector<8x384xf32>
    %80 = vector.extract_strided_slice %74 {offsets = [0, 0], sizes = [8, 128], strides = [1, 1]} : vector<8x384xf32> to vector<8x128xf32>
    %81 = vector.extract_strided_slice %79 {offsets = [0, 0], sizes = [8, 128], strides = [1, 1]} : vector<8x384xf32> to vector<8x128xf32>
    %82 = arith.addf %80, %81 : vector<8x128xf32>
    %83 = arith.negf %82 : vector<8x128xf32>
    %84 = math.exp %83 : vector<8x128xf32>
    %cst_29 = arith.constant 1.000000e+00 : f32
    %85 = vector.broadcast %cst_29 : f32 to vector<8x128xf32>
    %86 = arith.addf %85, %84 : vector<8x128xf32>
    %87 = arith.divf %85, %86 : vector<8x128xf32>
    %88 = vector.extract_strided_slice %74 {offsets = [0, 128], sizes = [8, 128], strides = [1, 1]} : vector<8x384xf32> to vector<8x128xf32>
    %89 = vector.extract_strided_slice %79 {offsets = [0, 128], sizes = [8, 128], strides = [1, 1]} : vector<8x384xf32> to vector<8x128xf32>
    %90 = arith.addf %88, %89 : vector<8x128xf32>
    %91 = arith.negf %90 : vector<8x128xf32>
    %92 = math.exp %91 : vector<8x128xf32>
    %cst_30 = arith.constant 1.000000e+00 : f32
    %93 = vector.broadcast %cst_30 : f32 to vector<8x128xf32>
    %94 = arith.addf %93, %92 : vector<8x128xf32>
    %95 = arith.divf %93, %94 : vector<8x128xf32>
    %96 = vector.extract_strided_slice %74 {offsets = [0, 256], sizes = [8, 128], strides = [1, 1]} : vector<8x384xf32> to vector<8x128xf32>
    %97 = vector.extract_strided_slice %79 {offsets = [0, 256], sizes = [8, 128], strides = [1, 1]} : vector<8x384xf32> to vector<8x128xf32>
    %98 = arith.mulf %87, %97 : vector<8x128xf32>
    %99 = arith.addf %96, %98 : vector<8x128xf32>
    %100 = math.tanh %99 : vector<8x128xf32>
    %cst_31 = arith.constant 1.000000e+00 : f32
    %101 = vector.broadcast %cst_31 : f32 to vector<8x128xf32>
    %102 = arith.subf %101, %95 : vector<8x128xf32>
    %103 = arith.mulf %102, %100 : vector<8x128xf32>
    %104 = arith.mulf %95, %71 : vector<8x128xf32>
    %105 = arith.addf %103, %104 : vector<8x128xf32>
    %c3_i32 = arith.constant 3 : i32
    %106 = arith.index_cast %c3_i32 : i32 to index
    %c0_32 = arith.constant 0 : index
    %c0_33 = arith.constant 0 : index
    %107 = vector.load %arg1[%106, %c0_32, %c0_33] : memref<8x8x384xf32, #tpu.memory_space<vmem>>, vector<1x8x384xf32>
    %108 = vector.shape_cast %107 : vector<1x8x384xf32> to vector<8x384xf32>
    %c0_34 = arith.constant 0 : index
    %c0_35 = arith.constant 0 : index
    %109 = vector.load %arg2[%c0_34, %c0_35] : memref<128x384xf32, #tpu.memory_space<vmem>>, vector<128x384xf32>
    %cst_36 = arith.constant dense<0.000000e+00> : vector<8x384xf32>
    %110 = tpu.matmul %105, %109, %cst_36 {dimension_numbers = #tpu.dot_dimension_numbers<[1], [0], [0], [1], [0, 0, 1, 1], [], []>} : vector<8x128xf32>, vector<128x384xf32>, vector<8x384xf32> -> vector<8x384xf32>
    %c0_37 = arith.constant 0 : index
    %c0_38 = arith.constant 0 : index
    %111 = vector.load %arg3[%c0_37, %c0_38] : memref<1x384xf32, #tpu.memory_space<vmem>>, vector<1x384xf32>
    %112 = vector.broadcast %111 : vector<1x384xf32> to vector<8x384xf32>
    %113 = arith.addf %110, %112 : vector<8x384xf32>
    %114 = vector.extract_strided_slice %108 {offsets = [0, 0], sizes = [8, 128], strides = [1, 1]} : vector<8x384xf32> to vector<8x128xf32>
    %115 = vector.extract_strided_slice %113 {offsets = [0, 0], sizes = [8, 128], strides = [1, 1]} : vector<8x384xf32> to vector<8x128xf32>
    %116 = arith.addf %114, %115 : vector<8x128xf32>
    %117 = arith.negf %116 : vector<8x128xf32>
    %118 = math.exp %117 : vector<8x128xf32>
    %cst_39 = arith.constant 1.000000e+00 : f32
    %119 = vector.broadcast %cst_39 : f32 to vector<8x128xf32>
    %120 = arith.addf %119, %118 : vector<8x128xf32>
    %121 = arith.divf %119, %120 : vector<8x128xf32>
    %122 = vector.extract_strided_slice %108 {offsets = [0, 128], sizes = [8, 128], strides = [1, 1]} : vector<8x384xf32> to vector<8x128xf32>
    %123 = vector.extract_strided_slice %113 {offsets = [0, 128], sizes = [8, 128], strides = [1, 1]} : vector<8x384xf32> to vector<8x128xf32>
    %124 = arith.addf %122, %123 : vector<8x128xf32>
    %125 = arith.negf %124 : vector<8x128xf32>
    %126 = math.exp %125 : vector<8x128xf32>
    %cst_40 = arith.constant 1.000000e+00 : f32
    %127 = vector.broadcast %cst_40 : f32 to vector<8x128xf32>
    %128 = arith.addf %127, %126 : vector<8x128xf32>
    %129 = arith.divf %127, %128 : vector<8x128xf32>
    %130 = vector.extract_strided_slice %108 {offsets = [0, 256], sizes = [8, 128], strides = [1, 1]} : vector<8x384xf32> to vector<8x128xf32>
    %131 = vector.extract_strided_slice %113 {offsets = [0, 256], sizes = [8, 128], strides = [1, 1]} : vector<8x384xf32> to vector<8x128xf32>
    %132 = arith.mulf %121, %131 : vector<8x128xf32>
    %133 = arith.addf %130, %132 : vector<8x128xf32>
    %134 = math.tanh %133 : vector<8x128xf32>
    %cst_41 = arith.constant 1.000000e+00 : f32
    %135 = vector.broadcast %cst_41 : f32 to vector<8x128xf32>
    %136 = arith.subf %135, %129 : vector<8x128xf32>
    %137 = arith.mulf %136, %134 : vector<8x128xf32>
    %138 = arith.mulf %129, %105 : vector<8x128xf32>
    %139 = arith.addf %137, %138 : vector<8x128xf32>
    %c4_i32 = arith.constant 4 : i32
    %140 = arith.index_cast %c4_i32 : i32 to index
    %c0_42 = arith.constant 0 : index
    %c0_43 = arith.constant 0 : index
    %141 = vector.load %arg1[%140, %c0_42, %c0_43] : memref<8x8x384xf32, #tpu.memory_space<vmem>>, vector<1x8x384xf32>
    %142 = vector.shape_cast %141 : vector<1x8x384xf32> to vector<8x384xf32>
    %c0_44 = arith.constant 0 : index
    %c0_45 = arith.constant 0 : index
    %143 = vector.load %arg2[%c0_44, %c0_45] : memref<128x384xf32, #tpu.memory_space<vmem>>, vector<128x384xf32>
    %cst_46 = arith.constant dense<0.000000e+00> : vector<8x384xf32>
    %144 = tpu.matmul %139, %143, %cst_46 {dimension_numbers = #tpu.dot_dimension_numbers<[1], [0], [0], [1], [0, 0, 1, 1], [], []>} : vector<8x128xf32>, vector<128x384xf32>, vector<8x384xf32> -> vector<8x384xf32>
    %c0_47 = arith.constant 0 : index
    %c0_48 = arith.constant 0 : index
    %145 = vector.load %arg3[%c0_47, %c0_48] : memref<1x384xf32, #tpu.memory_space<vmem>>, vector<1x384xf32>
    %146 = vector.broadcast %145 : vector<1x384xf32> to vector<8x384xf32>
    %147 = arith.addf %144, %146 : vector<8x384xf32>
    %148 = vector.extract_strided_slice %142 {offsets = [0, 0], sizes = [8, 128], strides = [1, 1]} : vector<8x384xf32> to vector<8x128xf32>
    %149 = vector.extract_strided_slice %147 {offsets = [0, 0], sizes = [8, 128], strides = [1, 1]} : vector<8x384xf32> to vector<8x128xf32>
    %150 = arith.addf %148, %149 : vector<8x128xf32>
    %151 = arith.negf %150 : vector<8x128xf32>
    %152 = math.exp %151 : vector<8x128xf32>
    %cst_49 = arith.constant 1.000000e+00 : f32
    %153 = vector.broadcast %cst_49 : f32 to vector<8x128xf32>
    %154 = arith.addf %153, %152 : vector<8x128xf32>
    %155 = arith.divf %153, %154 : vector<8x128xf32>
    %156 = vector.extract_strided_slice %142 {offsets = [0, 128], sizes = [8, 128], strides = [1, 1]} : vector<8x384xf32> to vector<8x128xf32>
    %157 = vector.extract_strided_slice %147 {offsets = [0, 128], sizes = [8, 128], strides = [1, 1]} : vector<8x384xf32> to vector<8x128xf32>
    %158 = arith.addf %156, %157 : vector<8x128xf32>
    %159 = arith.negf %158 : vector<8x128xf32>
    %160 = math.exp %159 : vector<8x128xf32>
    %cst_50 = arith.constant 1.000000e+00 : f32
    %161 = vector.broadcast %cst_50 : f32 to vector<8x128xf32>
    %162 = arith.addf %161, %160 : vector<8x128xf32>
    %163 = arith.divf %161, %162 : vector<8x128xf32>
    %164 = vector.extract_strided_slice %142 {offsets = [0, 256], sizes = [8, 128], strides = [1, 1]} : vector<8x384xf32> to vector<8x128xf32>
    %165 = vector.extract_strided_slice %147 {offsets = [0, 256], sizes = [8, 128], strides = [1, 1]} : vector<8x384xf32> to vector<8x128xf32>
    %166 = arith.mulf %155, %165 : vector<8x128xf32>
    %167 = arith.addf %164, %166 : vector<8x128xf32>
    %168 = math.tanh %167 : vector<8x128xf32>
    %cst_51 = arith.constant 1.000000e+00 : f32
    %169 = vector.broadcast %cst_51 : f32 to vector<8x128xf32>
    %170 = arith.subf %169, %163 : vector<8x128xf32>
    %171 = arith.mulf %170, %168 : vector<8x128xf32>
    %172 = arith.mulf %163, %139 : vector<8x128xf32>
    %173 = arith.addf %171, %172 : vector<8x128xf32>
    %c5_i32 = arith.constant 5 : i32
    %174 = arith.index_cast %c5_i32 : i32 to index
    %c0_52 = arith.constant 0 : index
    %c0_53 = arith.constant 0 : index
    %175 = vector.load %arg1[%174, %c0_52, %c0_53] : memref<8x8x384xf32, #tpu.memory_space<vmem>>, vector<1x8x384xf32>
    %176 = vector.shape_cast %175 : vector<1x8x384xf32> to vector<8x384xf32>
    %c0_54 = arith.constant 0 : index
    %c0_55 = arith.constant 0 : index
    %177 = vector.load %arg2[%c0_54, %c0_55] : memref<128x384xf32, #tpu.memory_space<vmem>>, vector<128x384xf32>
    %cst_56 = arith.constant dense<0.000000e+00> : vector<8x384xf32>
    %178 = tpu.matmul %173, %177, %cst_56 {dimension_numbers = #tpu.dot_dimension_numbers<[1], [0], [0], [1], [0, 0, 1, 1], [], []>} : vector<8x128xf32>, vector<128x384xf32>, vector<8x384xf32> -> vector<8x384xf32>
    %c0_57 = arith.constant 0 : index
    %c0_58 = arith.constant 0 : index
    %179 = vector.load %arg3[%c0_57, %c0_58] : memref<1x384xf32, #tpu.memory_space<vmem>>, vector<1x384xf32>
    %180 = vector.broadcast %179 : vector<1x384xf32> to vector<8x384xf32>
    %181 = arith.addf %178, %180 : vector<8x384xf32>
    %182 = vector.extract_strided_slice %176 {offsets = [0, 0], sizes = [8, 128], strides = [1, 1]} : vector<8x384xf32> to vector<8x128xf32>
    %183 = vector.extract_strided_slice %181 {offsets = [0, 0], sizes = [8, 128], strides = [1, 1]} : vector<8x384xf32> to vector<8x128xf32>
    %184 = arith.addf %182, %183 : vector<8x128xf32>
    %185 = arith.negf %184 : vector<8x128xf32>
    %186 = math.exp %185 : vector<8x128xf32>
    %cst_59 = arith.constant 1.000000e+00 : f32
    %187 = vector.broadcast %cst_59 : f32 to vector<8x128xf32>
    %188 = arith.addf %187, %186 : vector<8x128xf32>
    %189 = arith.divf %187, %188 : vector<8x128xf32>
    %190 = vector.extract_strided_slice %176 {offsets = [0, 128], sizes = [8, 128], strides = [1, 1]} : vector<8x384xf32> to vector<8x128xf32>
    %191 = vector.extract_strided_slice %181 {offsets = [0, 128], sizes = [8, 128], strides = [1, 1]} : vector<8x384xf32> to vector<8x128xf32>
    %192 = arith.addf %190, %191 : vector<8x128xf32>
    %193 = arith.negf %192 : vector<8x128xf32>
    %194 = math.exp %193 : vector<8x128xf32>
    %cst_60 = arith.constant 1.000000e+00 : f32
    %195 = vector.broadcast %cst_60 : f32 to vector<8x128xf32>
    %196 = arith.addf %195, %194 : vector<8x128xf32>
    %197 = arith.divf %195, %196 : vector<8x128xf32>
    %198 = vector.extract_strided_slice %176 {offsets = [0, 256], sizes = [8, 128], strides = [1, 1]} : vector<8x384xf32> to vector<8x128xf32>
    %199 = vector.extract_strided_slice %181 {offsets = [0, 256], sizes = [8, 128], strides = [1, 1]} : vector<8x384xf32> to vector<8x128xf32>
    %200 = arith.mulf %189, %199 : vector<8x128xf32>
    %201 = arith.addf %198, %200 : vector<8x128xf32>
    %202 = math.tanh %201 : vector<8x128xf32>
    %cst_61 = arith.constant 1.000000e+00 : f32
    %203 = vector.broadcast %cst_61 : f32 to vector<8x128xf32>
    %204 = arith.subf %203, %197 : vector<8x128xf32>
    %205 = arith.mulf %204, %202 : vector<8x128xf32>
    %206 = arith.mulf %197, %173 : vector<8x128xf32>
    %207 = arith.addf %205, %206 : vector<8x128xf32>
    %c6_i32 = arith.constant 6 : i32
    %208 = arith.index_cast %c6_i32 : i32 to index
    %c0_62 = arith.constant 0 : index
    %c0_63 = arith.constant 0 : index
    %209 = vector.load %arg1[%208, %c0_62, %c0_63] : memref<8x8x384xf32, #tpu.memory_space<vmem>>, vector<1x8x384xf32>
    %210 = vector.shape_cast %209 : vector<1x8x384xf32> to vector<8x384xf32>
    %c0_64 = arith.constant 0 : index
    %c0_65 = arith.constant 0 : index
    %211 = vector.load %arg2[%c0_64, %c0_65] : memref<128x384xf32, #tpu.memory_space<vmem>>, vector<128x384xf32>
    %cst_66 = arith.constant dense<0.000000e+00> : vector<8x384xf32>
    %212 = tpu.matmul %207, %211, %cst_66 {dimension_numbers = #tpu.dot_dimension_numbers<[1], [0], [0], [1], [0, 0, 1, 1], [], []>} : vector<8x128xf32>, vector<128x384xf32>, vector<8x384xf32> -> vector<8x384xf32>
    %c0_67 = arith.constant 0 : index
    %c0_68 = arith.constant 0 : index
    %213 = vector.load %arg3[%c0_67, %c0_68] : memref<1x384xf32, #tpu.memory_space<vmem>>, vector<1x384xf32>
    %214 = vector.broadcast %213 : vector<1x384xf32> to vector<8x384xf32>
    %215 = arith.addf %212, %214 : vector<8x384xf32>
    %216 = vector.extract_strided_slice %210 {offsets = [0, 0], sizes = [8, 128], strides = [1, 1]} : vector<8x384xf32> to vector<8x128xf32>
    %217 = vector.extract_strided_slice %215 {offsets = [0, 0], sizes = [8, 128], strides = [1, 1]} : vector<8x384xf32> to vector<8x128xf32>
    %218 = arith.addf %216, %217 : vector<8x128xf32>
    %219 = arith.negf %218 : vector<8x128xf32>
    %220 = math.exp %219 : vector<8x128xf32>
    %cst_69 = arith.constant 1.000000e+00 : f32
    %221 = vector.broadcast %cst_69 : f32 to vector<8x128xf32>
    %222 = arith.addf %221, %220 : vector<8x128xf32>
    %223 = arith.divf %221, %222 : vector<8x128xf32>
    %224 = vector.extract_strided_slice %210 {offsets = [0, 128], sizes = [8, 128], strides = [1, 1]} : vector<8x384xf32> to vector<8x128xf32>
    %225 = vector.extract_strided_slice %215 {offsets = [0, 128], sizes = [8, 128], strides = [1, 1]} : vector<8x384xf32> to vector<8x128xf32>
    %226 = arith.addf %224, %225 : vector<8x128xf32>
    %227 = arith.negf %226 : vector<8x128xf32>
    %228 = math.exp %227 : vector<8x128xf32>
    %cst_70 = arith.constant 1.000000e+00 : f32
    %229 = vector.broadcast %cst_70 : f32 to vector<8x128xf32>
    %230 = arith.addf %229, %228 : vector<8x128xf32>
    %231 = arith.divf %229, %230 : vector<8x128xf32>
    %232 = vector.extract_strided_slice %210 {offsets = [0, 256], sizes = [8, 128], strides = [1, 1]} : vector<8x384xf32> to vector<8x128xf32>
    %233 = vector.extract_strided_slice %215 {offsets = [0, 256], sizes = [8, 128], strides = [1, 1]} : vector<8x384xf32> to vector<8x128xf32>
    %234 = arith.mulf %223, %233 : vector<8x128xf32>
    %235 = arith.addf %232, %234 : vector<8x128xf32>
    %236 = math.tanh %235 : vector<8x128xf32>
    %cst_71 = arith.constant 1.000000e+00 : f32
    %237 = vector.broadcast %cst_71 : f32 to vector<8x128xf32>
    %238 = arith.subf %237, %231 : vector<8x128xf32>
    %239 = arith.mulf %238, %236 : vector<8x128xf32>
    %240 = arith.mulf %231, %207 : vector<8x128xf32>
    %241 = arith.addf %239, %240 : vector<8x128xf32>
    %c7_i32 = arith.constant 7 : i32
    %242 = arith.index_cast %c7_i32 : i32 to index
    %c0_72 = arith.constant 0 : index
    %c0_73 = arith.constant 0 : index
    %243 = vector.load %arg1[%242, %c0_72, %c0_73] : memref<8x8x384xf32, #tpu.memory_space<vmem>>, vector<1x8x384xf32>
    %244 = vector.shape_cast %243 : vector<1x8x384xf32> to vector<8x384xf32>
    %c0_74 = arith.constant 0 : index
    %c0_75 = arith.constant 0 : index
    %245 = vector.load %arg2[%c0_74, %c0_75] : memref<128x384xf32, #tpu.memory_space<vmem>>, vector<128x384xf32>
    %cst_76 = arith.constant dense<0.000000e+00> : vector<8x384xf32>
    %246 = tpu.matmul %241, %245, %cst_76 {dimension_numbers = #tpu.dot_dimension_numbers<[1], [0], [0], [1], [0, 0, 1, 1], [], []>} : vector<8x128xf32>, vector<128x384xf32>, vector<8x384xf32> -> vector<8x384xf32>
    %c0_77 = arith.constant 0 : index
    %c0_78 = arith.constant 0 : index
    %247 = vector.load %arg3[%c0_77, %c0_78] : memref<1x384xf32, #tpu.memory_space<vmem>>, vector<1x384xf32>
    %248 = vector.broadcast %247 : vector<1x384xf32> to vector<8x384xf32>
    %249 = arith.addf %246, %248 : vector<8x384xf32>
    %250 = vector.extract_strided_slice %244 {offsets = [0, 0], sizes = [8, 128], strides = [1, 1]} : vector<8x384xf32> to vector<8x128xf32>
    %251 = vector.extract_strided_slice %249 {offsets = [0, 0], sizes = [8, 128], strides = [1, 1]} : vector<8x384xf32> to vector<8x128xf32>
    %252 = arith.addf %250, %251 : vector<8x128xf32>
    %253 = arith.negf %252 : vector<8x128xf32>
    %254 = math.exp %253 : vector<8x128xf32>
    %cst_79 = arith.constant 1.000000e+00 : f32
    %255 = vector.broadcast %cst_79 : f32 to vector<8x128xf32>
    %256 = arith.addf %255, %254 : vector<8x128xf32>
    %257 = arith.divf %255, %256 : vector<8x128xf32>
    %258 = vector.extract_strided_slice %244 {offsets = [0, 128], sizes = [8, 128], strides = [1, 1]} : vector<8x384xf32> to vector<8x128xf32>
    %259 = vector.extract_strided_slice %249 {offsets = [0, 128], sizes = [8, 128], strides = [1, 1]} : vector<8x384xf32> to vector<8x128xf32>
    %260 = arith.addf %258, %259 : vector<8x128xf32>
    %261 = arith.negf %260 : vector<8x128xf32>
    %262 = math.exp %261 : vector<8x128xf32>
    %cst_80 = arith.constant 1.000000e+00 : f32
    %263 = vector.broadcast %cst_80 : f32 to vector<8x128xf32>
    %264 = arith.addf %263, %262 : vector<8x128xf32>
    %265 = arith.divf %263, %264 : vector<8x128xf32>
    %266 = vector.extract_strided_slice %244 {offsets = [0, 256], sizes = [8, 128], strides = [1, 1]} : vector<8x384xf32> to vector<8x128xf32>
    %267 = vector.extract_strided_slice %249 {offsets = [0, 256], sizes = [8, 128], strides = [1, 1]} : vector<8x384xf32> to vector<8x128xf32>
    %268 = arith.mulf %257, %267 : vector<8x128xf32>
    %269 = arith.addf %266, %268 : vector<8x128xf32>
    %270 = math.tanh %269 : vector<8x128xf32>
    %cst_81 = arith.constant 1.000000e+00 : f32
    %271 = vector.broadcast %cst_81 : f32 to vector<8x128xf32>
    %272 = arith.subf %271, %265 : vector<8x128xf32>
    %273 = arith.mulf %272, %270 : vector<8x128xf32>
    %274 = arith.mulf %265, %241 : vector<8x128xf32>
    %275 = arith.addf %273, %274 : vector<8x128xf32>
    %c8_i32 = arith.constant 8 : i32
    %c0_82 = arith.constant 0 : index
    %c0_83 = arith.constant 0 : index
    %276 = vector.load %arg7[%c0_82, %c0_83] : memref<8x128xf32, #tpu.memory_space<vmem>>, vector<8x128xf32>
    tpu.vector_store %arg7[%c0_82, %c0_83], %275 {strides = array<i32>} : memref<8x128xf32, #tpu.memory_space<vmem>>, vector<8x128xf32>,
    %c0_i32_84 = arith.constant 0 : i32
    %277 = arith.cmpi eq, %arg0, %c0_i32_84 : i32
    %278 = arith.extui %277 : i1 to i32
    %c0_i32_85 = arith.constant 0 : i32
    %279 = arith.cmpi ne, %278, %c0_i32_85 : i32
    scf.if %279 {
      %c0_86 = arith.constant 0 : index
      %c0_87 = arith.constant 0 : index
      %280 = vector.load %arg7[%c0_86, %c0_87] : memref<8x128xf32, #tpu.memory_space<vmem>>, vector<8x128xf32>
      %c0_88 = arith.constant 0 : index
      %c0_89 = arith.constant 0 : index
      %281 = vector.load %arg4[%c0_88, %c0_89] : memref<128x4xf32, #tpu.memory_space<vmem>>, vector<128x4xf32>
      %cst_90 = arith.constant dense<0.000000e+00> : vector<8x4xf32>
      %282 = tpu.matmul %280, %281, %cst_90 {dimension_numbers = #tpu.dot_dimension_numbers<[1], [0], [0], [1], [0, 0, 1, 1], [], []>} : vector<8x128xf32>, vector<128x4xf32>, vector<8x4xf32> -> vector<8x4xf32>
      %c0_91 = arith.constant 0 : index
      %c0_92 = arith.constant 0 : index
      %283 = vector.load %arg5[%c0_91, %c0_92] : memref<1x4xf32, #tpu.memory_space<vmem>>, vector<1x4xf32>
      %284 = vector.broadcast %283 : vector<1x4xf32> to vector<8x4xf32>
      %285 = arith.addf %282, %284 : vector<8x4xf32>
      %c0_93 = arith.constant 0 : index
      %c0_94 = arith.constant 0 : index
      %286 = vector.load %arg6[%c0_93, %c0_94] : memref<8x4xf32, #tpu.memory_space<vmem>>, vector<8x4xf32>
      tpu.vector_store %arg6[%c0_93, %c0_94], %285 {strides = array<i32>} : memref<8x4xf32, #tpu.memory_space<vmem>>, vector<8x4xf32>,
    } else {
    }
    return
  }
  func.func @transform_0(%arg0: i32) -> (i32, i32, i32) {
    %c0_i32 = arith.constant 0 : i32
    %c0_i32_0 = arith.constant 0 : i32
    %c0_i32_1 = arith.constant 0 : i32
    return %arg0, %c0_i32, %c0_i32_0 : i32, i32, i32
  }
  func.func @transform_1(%arg0: i32) -> (i32, i32) {
    %c0_i32 = arith.constant 0 : i32
    %c0_i32_0 = arith.constant 0 : i32
    %c0_i32_1 = arith.constant 0 : i32
    return %c0_i32, %c0_i32_0 : i32, i32
  }
  func.func @transform_2(%arg0: i32) -> (i32, i32) {
    %c0_i32 = arith.constant 0 : i32
    %c0_i32_0 = arith.constant 0 : i32
    %c0_i32_1 = arith.constant 0 : i32
    return %c0_i32, %c0_i32_0 : i32, i32
  }
  func.func @transform_3(%arg0: i32) -> (i32, i32) {
    %c0_i32 = arith.constant 0 : i32
    %c0_i32_0 = arith.constant 0 : i32
    %c0_i32_1 = arith.constant 0 : i32
    return %c0_i32, %c0_i32_0 : i32, i32
  }
  func.func @transform_4(%arg0: i32) -> (i32, i32) {
    %c0_i32 = arith.constant 0 : i32
    %c0_i32_0 = arith.constant 0 : i32
    %c0_i32_1 = arith.constant 0 : i32
    return %c0_i32, %c0_i32_0 : i32, i32
  }
  func.func @transform_5(%arg0: i32) -> (i32, i32) {
    %c0_i32 = arith.constant 0 : i32
    %c0_i32_0 = arith.constant 0 : i32
    %c0_i32_1 = arith.constant 0 : i32
    return %c0_i32, %c0_i32_0 : i32, i32
  }
}

</mosaic_0001>

<bundles_post_ra>
// kernel: _lambda_.4
= control target key start
LH: loop header
LB: loop body
LE: loop exit
PB: predicated region body
PF: predicated region fallthrough
CT: control target
= control target key end

     0   :  { %8 = vsyncpa [#allocation3], 0  ;;  %s648_s0 = inlined_call_operand.hbm [shape: f32[64,4], index: 0, kind: input, shape index: {}]   ;;  %s649_s1 = inlined_call_operand.hbm [shape: f32[4,384], index: 1, kind: input, shape index: {}]   ;;  %s650_s2 = inlined_call_operand.hbm [shape: f32[1,384], index: 2, kind: input, shape index: {}]   ;;  %s651_s3 = inlined_call_operand.hbm [shape: f32[64,384], index: 3, kind: output, shape index: {}]  }
   0x1   :  { %9 = vsyncpa [#allocation6], 0 }
   0x2   :  { %10 = vsyncpa [#allocation4], 0  ;;  %s522_s12 = smov [#allocation5]   ;;  %s523_s14 = smov [#allocation2]  }
   0x3   :  { %s29_s13 = sshll.u32 %s522_s12, 4  ;;  %s16_s15 = sshll.u32 %s523_s14, 4  ;;  %s30_s13 = int_to_ptr.vmem [resolvable:$true] %s29_s13  ;;  %s551_s15 = int_to_ptr.vmem [resolvable:$true] %s16_s15 }
   0x4   :  { %s428_s18 = scalar_lea.hbm %s649_s1, 192 }
   0x5   :  { %p429_p0 = scmp.ne.s32.totalorder %s649_s1, %s428_s18  ;;  %p432_p1 = scmp.lt.u32.totalorder %s428_s18, %s649_s1 }
   0x7   :  { %p434_p2 = pnand %p432_p1, %p429_p0 }
   0x9   :  { %437 = shalt.err (!%p434_p2)
}
   0xa   :  { %s438_s23 = scalar_lea.vmem %s30_s13, 192  ;;  %p443_p4 = scmp.lt.s32.totalorder %s30_s13, %s30_s13 }
   0xb   :  { %p439_p3 = scmp.ne.s32.totalorder %s30_s13, %s438_s23  ;;  %p444_p5 = scmp.lt.s32.totalorder %s438_s23, %s438_s23 }
   0xd   :  { %p445_p6 = por %p444_p5, %p443_p4 }
   0xf   :  { %p446_p7 = pnand %p445_p6, %p439_p3 }
  0x11   :  { %449 = shalt.err (!%p446_p7)
}
  0x12   :  { %32 = dma.hbm_to_vmem [thread:$0]  %s649_s1, 192, %s30_s13, [#allocation6]  }
  0x13   :  { %s450_s28 = scalar_lea.hbm %s648_s0, 1024 }
  0x14   :  { %p451_p8 = scmp.ne.s32.totalorder %s648_s0, %s450_s28  ;;  %p454_p9 = scmp.lt.u32.totalorder %s450_s28, %s648_s0 }
  0x16   :  { %p456_p10 = pnand %p454_p9, %p451_p8 }
  0x18   :  { %459 = shalt.err (!%p456_p10)
}
  0x19   :  { %s460_s6 = scalar_lea.vmem %s551_s15, 1024  ;;  %p465_p12 = scmp.lt.s32.totalorder %s551_s15, %s551_s15 }
  0x1a   :  { %p461_p11 = scmp.ne.s32.totalorder %s551_s15, %s460_s6  ;;  %p466_p13 = scmp.lt.s32.totalorder %s460_s6, %s460_s6 }
  0x1c   :  { %p467_p0 = por %p466_p13, %p465_p12 }
  0x1e   :  { %p468_p1 = pnand %p467_p0, %p461_p11 }
  0x20   :  { %471 = shalt.err (!%p468_p1)
}
  0x21   :  { %s524_s1 = smov 128   ;;  %s525_s7 = smov 8  }
  0x22   :  { %22 = dma.hbm_to_vmem [thread:$0]  %s648_s0, 1024, %s551_s15, [#allocation3], %s524_s1, %s524_s1, %s525_s7  }
  0x23   :  { %s526_s10 = smov [#allocation7]   ;;  %s472_s14 = scalar_lea.hbm %s650_s2, 48 }
  0x24   :  { %s39_s11 = sshll.u32 %s526_s10, 4  ;;  %p473_p2 = scmp.ne.s32.totalorder %s650_s2, %s472_s14  ;;  %s40_s11 = int_to_ptr.vmem [resolvable:$true] %s39_s11 }
  0x25   :  { %p476_p3 = scmp.lt.u32.totalorder %s472_s14, %s650_s2 }
  0x27   :  { %p478_p4 = pnand %p476_p3, %p473_p2 }
  0x29   :  { %481 = shalt.err (!%p478_p4)
}
  0x2a   :  { %s482_s20 = scalar_lea.vmem %s40_s11, 48  ;;  %s486_s0 = scalar_lea.vmem %s40_s11, 64 }
  0x2b   :  { %p483_p5 = scmp.ne.s32.totalorder %s40_s11, %s482_s20  ;;  %p487_p6 = scmp.lt.s32.totalorder %s40_s11, %s40_s11 }
  0x2c   :  { %p488_p7 = scmp.lt.s32.totalorder %s486_s0, %s482_s20 }
  0x2e   :  { %p489_p8 = por %p488_p7, %p487_p6 }
  0x30   :  { %p490_p9 = pnand %p489_p8, %p483_p5 }
  0x32   :  { %493 = shalt.err (!%p490_p9)
}
  0x33   :  { %42 = dma.hbm_to_vmem [thread:$0]  %s650_s2, 48, %s40_s11, [#allocation6]  }
  0x34   :  { %516 = dma.done.wait [#allocation3], 1024  }
  0x35   :  { %517 = vsyncadd [#allocation3], 4294966272 }
  0x36   :  { %518 = dma.done.wait [#allocation6], 240  }
  0x37   :  { %519 = vsyncadd [#allocation6], 4294967056  ;;  %v527_v0 = vmov 0.0   ;;  %v60_v1 = vld [vmem:[#allocation5] sm:$0xff]  ;;  %vm107_vm0 = vcmask 1043456   ;;  %vm82_vm1 = vcmask 31744   ;;  %v64_v12 = vlaneseq }
  0x38   :  { %178 = vmatprep.mubr.f32.mxu0 %v527_v0  ;;  %214 = vmatprep.mubr.f32.mxu1 %v527_v0  ;;  %v81_v2 = vcombine.high %v60_v1, %v60_v1  ;;  %v52_v3 = vld [vmem:[#allocation2] sm:$0xff]  ;;  %v58_v4 = vld [vmem:[#allocation2 + $0x30] sm:$0xff]  ;;  %v61_v5 = vld [vmem:[#allocation5 + $0x8] sm:$0xf]  ;;  %s528_s2 = smov [#allocation8]  }
  0x39   :  { %v53_v6 = vld [vmem:[#allocation2 + $0x8] sm:$0xff]  ;;  %v59_v7 = vld [vmem:[#allocation2 + $0x38] sm:$0xff]  ;;  %v54_v8 = vld [vmem:[#allocation2 + $0x10] sm:$0xff]  ;;  %v65_v13 = vshrl.u32 %v64_v12, 7  ;;  %s361_s22 = sshll.u32 %s528_s2, 4  ;;  %s362_s22 = int_to_ptr.vmem [resolvable:$true] %s361_s22 }
  0x3a   :  { %374 = vmatprep.subr.msk.mxu0 %vm107_vm0, %v81_v2  ;;  %416 = vmatprep.subr.msk.mxu1 %vm107_vm0, %v81_v2  ;;  %v55_v9 = vld [vmem:[#allocation2 + $0x18] sm:$0xff]  ;;  %v56_v10 = vld [vmem:[#allocation2 + $0x20] sm:$0xff]  ;;  %v57_v11 = vld [vmem:[#allocation2 + $0x28] sm:$0xff]  ;;  %s494_s23 = scalar_lea.vmem %s362_s22, 3072  ;;  %p499_p11 = scmp.lt.s32.totalorder %s362_s22, %s362_s22 }
  0x3b   :  { %375 = vmatpush1.msk.msra.mxu0 %vm107_vm0, %v60_v1  ;;  %417 = vmatpush1.msk.msra.mxu1 %vm107_vm0, %v60_v1  ;;  %v66_v14 = vsub.s32 0, %v65_v13  ;;  %v62_v15 = vld [vmem:[#allocation7] sm:$0x7]  ;;  %v70_v16 = vsub.s32 1, %v65_v13  ;;  %v74_v25 = vsub.s32 2, %v65_v13  ;;  %p495_p10 = scmp.ne.s32.totalorder %s362_s22, %s494_s23  ;;  %p500_p12 = scmp.lt.s32.totalorder %s494_s23, %s494_s23 }
  0x3c   :  { %376 = vmatmul.mubr.msk.f32.vlgmr.msra.gmra.mrb[0].mxu0 %vm82_vm1, %v52_v3  ;;  %382 = vmatmul.mubr.msk.f32.vlgmr.msra.gmra.mrb[0].mxu1 %vm82_vm1, %v58_v4 }
  0x3d   :  { %402 = vmatprep.subr.msk.mxu1 %vm107_vm0, %v61_v5  ;;  %184 = vmatprep.mubr.f32.mxu0 %v527_v0  ;;  %v616_v17 = vrot.slane %v62_v15, %v66_v14  ;;  %v618_v18 = vrot.slane %v62_v15, %v70_v16  ;;  %v75_v34 = vrot.slane %v62_v15, %v74_v25  ;;  %p501_p13 = por %p500_p12, %p499_p11 }
  0x3e   :  { %403 = vmatpush3.msk.msra.mxu1 %vm107_vm0, %v61_v5  ;;  %220 = vmatprep.mubr.f32.mxu1 %v527_v0 }
  0x3f   :  { %p502_p0 = pnand %p501_p13, %p495_p10 }
  0x40   :  { %377 = vmatmul.mubr.msk.f32.gmra.mrb[2].mxu0 %vm82_vm1, %v53_v6  ;;  %383 = vmatmul.mubr.msk.f32.gmra.mrb[2].mxu1 %vm82_vm1, %v59_v7 }
  0x41   :  { %190 = vmatprep.mubr.f32.mxu0 %v527_v0  ;;  %404 = vmatprep.mubr.msk.f32.mxu1 %vm82_vm1, %v52_v3 }
  0x44   :  { %378 = vmatmul.mubr.msk.f32.gmra.mrb[4].mxu0 %vm82_vm1, %v54_v8  ;;  %405 = vmatmul.mubr.msk.f32.vlgmr.msra.gmra.mrb[4].mxu1 %vm82_vm1, %v53_v6 }
  0x45   :  { %196 = vmatprep.mubr.f32.mxu0 %v527_v0  ;;  %407 = vmatprep.mubr.msk.f32.mxu1 %vm82_vm1, %v54_v8 }
  0x48   :  { %379 = vmatmul.mubr.msk.f32.gmra.mrb[6].mxu0 %vm82_vm1, %v55_v9  ;;  %408 = vmatmul.mubr.msk.f32.gmra.mrb[6].mxu1 %vm82_vm1, %v55_v9 }
  0x49   :  { %202 = vmatprep.mubr.f32.mxu0 %v527_v0  ;;  %410 = vmatprep.mubr.msk.f32.mxu1 %vm82_vm1, %v56_v10 }
  0x4c   :  { %380 = vmatmul.mubr.msk.f32.gmra.mrb[8].mxu0 %vm82_vm1, %v56_v10  ;;  %411 = vmatmul.mubr.msk.f32.gmra.mrb[8].mxu1 %vm82_vm1, %v57_v11 }
  0x4d   :  { %208 = vmatprep.mubr.f32.mxu0 %v527_v0  ;;  %413 = vmatprep.mubr.msk.f32.mxu1 %vm82_vm1, %v58_v4 }
  0x50   :  { %381 = vmatmul.mubr.msk.f32.gmra.mrb[10].mxu0 %vm82_vm1, %v57_v11  ;;  %414 = vmatmul.mubr.msk.f32.gmra.mrb[10].mxu1 %vm82_vm1, %v59_v7 }
 0x10f   :  { %v180_v19 = vpop.f32.mrb[0].mxu0  ;;  %v216_v20 = vpop.f32.mrb[0].mxu1 }
 0x110   :  { %v181_v21 = vadd.f32 %v180_v19, %v616_v17  ;;  %v217_v22 = vadd.f32 %v216_v20, %v616_v17  ;;  %v182_v23 = vpop.f32.mrb[1].mxu0  ;;  %v218_v24 = vpop.f32.mrb[1].mxu1 }
 0x111   :  { %v183_v26 = vadd.f32 %v182_v23, %v618_v18  ;;  %v219_v27 = vadd.f32 %v218_v24, %v618_v18 }
 0x112   :  { %332 = vst [vmem:[#allocation8] sm:$0xff] %v181_v21  ;;  %350 = vst [vmem:[#allocation8 + $0x90] sm:$0xff] %v217_v22 }
 0x113   :  { %333 = vst [vmem:[#allocation8 + $0x8] sm:$0xff] %v183_v26  ;;  %351 = vst [vmem:[#allocation8 + $0x98] sm:$0xff] %v219_v27  ;;  %v186_v28 = vpop.f32.mrb[2].mxu0  ;;  %v222_v29 = vpop.f32.mrb[2].mxu1 }
 0x114   :  { %v187_v30 = vadd.f32 %v186_v28, %v616_v17  ;;  %v223_v31 = vadd.f32 %v222_v29, %v616_v17  ;;  %v188_v32 = vpop.f32.mrb[3].mxu0  ;;  %v224_v33 = vpop.f32.mrb[3].mxu1 }
 0x115   :  { %v189_v35 = vadd.f32 %v188_v32, %v618_v18  ;;  %v225_v36 = vadd.f32 %v224_v33, %v618_v18 }
 0x116   :  { %335 = vst [vmem:[#allocation8 + $0x18] sm:$0xff] %v187_v30  ;;  %353 = vst [vmem:[#allocation8 + $0xa8] sm:$0xff] %v223_v31 }
 0x117   :  { %336 = vst [vmem:[#allocation8 + $0x20] sm:$0xff] %v189_v35  ;;  %354 = vst [vmem:[#allocation8 + $0xb0] sm:$0xff] %v225_v36  ;;  %v192_v37 = vpop.f32.mrb[4].mxu0  ;;  %v406_v38 = vpop.f32.mrb[4].mxu1 }
 0x118   :  { %v193_v39 = vadd.f32 %v192_v37, %v616_v17  ;;  %v299_v40 = vadd.f32 %v406_v38, %v75_v34  ;;  %v194_v41 = vpop.f32.mrb[5].mxu0  ;;  %v293_v42 = vpop.f32.mrb[5].mxu1 }
 0x119   :  { %v195_v43 = vadd.f32 %v194_v41, %v618_v18  ;;  %v294_v44 = vadd.f32 %v293_v42, %v75_v34 }
 0x11a   :  { %338 = vst [vmem:[#allocation8 + $0x30] sm:$0xff] %v193_v39  ;;  %337 = vst [vmem:[#allocation8 + $0x28] sm:$0xff] %v299_v40 }
 0x11b   :  { %339 = vst [vmem:[#allocation8 + $0x38] sm:$0xff] %v195_v43  ;;  %334 = vst [vmem:[#allocation8 + $0x10] sm:$0xff] %v294_v44  ;;  %v198_v45 = vpop.f32.mrb[6].mxu0  ;;  %v409_v46 = vpop.f32.mrb[6].mxu1 }
 0x11c   :  { %v199_v47 = vadd.f32 %v198_v45, %v616_v17  ;;  %v309_v48 = vadd.f32 %v409_v46, %v75_v34  ;;  %v200_v49 = vpop.f32.mrb[7].mxu0  ;;  %v303_v50 = vpop.f32.mrb[7].mxu1 }
 0x11d   :  { %v201_v51 = vadd.f32 %v200_v49, %v618_v18  ;;  %v304_v52 = vadd.f32 %v303_v50, %v75_v34 }
 0x11e   :  { %341 = vst [vmem:[#allocation8 + $0x48] sm:$0xff] %v199_v47  ;;  %343 = vst [vmem:[#allocation8 + $0x58] sm:$0xff] %v309_v48 }
 0x11f   :  { %342 = vst [vmem:[#allocation8 + $0x50] sm:$0xff] %v201_v51  ;;  %340 = vst [vmem:[#allocation8 + $0x40] sm:$0xff] %v304_v52  ;;  %v204_v53 = vpop.f32.mrb[8].mxu0  ;;  %v412_v54 = vpop.f32.mrb[8].mxu1 }
 0x120   :  { %v205_v55 = vadd.f32 %v204_v53, %v616_v17  ;;  %v319_v56 = vadd.f32 %v412_v54, %v75_v34  ;;  %v206_v57 = vpop.f32.mrb[9].mxu0  ;;  %v313_v58 = vpop.f32.mrb[9].mxu1 }
 0x121   :  { %v207_v59 = vadd.f32 %v206_v57, %v618_v18  ;;  %v314_v60 = vadd.f32 %v313_v58, %v75_v34 }
 0x122   :  { %344 = vst [vmem:[#allocation8 + $0x60] sm:$0xff] %v205_v55  ;;  %349 = vst [vmem:[#allocation8 + $0x88] sm:$0xff] %v319_v56 }
 0x123   :  { %345 = vst [vmem:[#allocation8 + $0x68] sm:$0xff] %v207_v59  ;;  %346 = vst [vmem:[#allocation8 + $0x70] sm:$0xff] %v314_v60  ;;  %v210_v61 = vpop.f32.mrb[10].mxu0  ;;  %v415_v62 = vpop.f32.mrb[10].mxu1 }
 0x124   :  { %v211_v63 = vadd.f32 %v210_v61, %v616_v17  ;;  %v329_v0 = vadd.f32 %v415_v62, %v75_v34  ;;  %v212_v1 = vpop.f32.mrb[11].mxu0  ;;  %v323_v2 = vpop.f32.mrb[11].mxu1 }
 0x125   :  { %v213_v3 = vadd.f32 %v212_v1, %v618_v18  ;;  %v324_v4 = vadd.f32 %v323_v2, %v75_v34 }
 0x126   :  { %347 = vst [vmem:[#allocation8 + $0x78] sm:$0xff] %v211_v63  ;;  %355 = vst [vmem:[#allocation8 + $0xb8] sm:$0xff] %v329_v0 }
 0x127   :  { %348 = vst [vmem:[#allocation8 + $0x80] sm:$0xff] %v213_v3  ;;  %352 = vst [vmem:[#allocation8 + $0xa0] sm:$0xff] %v324_v4 }
 0x128   :  { %505 = shalt.err (!%p502_p0)
}
 0x129   :  { %s506_s26 = scalar_lea.hbm %s651_s3, 3072 }
 0x12a   :  { %p507_p1 = scmp.ne.s32.totalorder %s651_s3, %s506_s26  ;;  %p510_p2 = scmp.lt.u32.totalorder %s506_s26, %s651_s3 }
 0x12c   :  { %p512_p3 = pnand %p510_p2, %p507_p1 }
 0x12e   :  { %515 = shalt.err (!%p512_p3)
}
 0x12f   :  { %s529_s4 = smov 384   ;;  %s530_s5 = smov 24  }
 0x130   :  { %367 = dma.vmem_to_hbm [thread:$0]  %s362_s22, 3072, %s651_s3, [#allocation4], %s529_s4, %s529_s4, %s530_s5  }
 0x131   :  { %520 = dma.done.wait [#allocation4], 3072  }
 0x132   :  { %521 = vsyncadd [#allocation4], 4294964224 }
 0x133   :  { %371 = vsyncpa [#allocation3], 1 }
 0x134   :  { %372 = vsyncpa [#allocation6], 1 }
 0x135   :  { %373 = vsyncpa [#allocation4], 1 }

// kernel: _lambda_.6
= control target key start
LH: loop header
LB: loop body
LE: loop exit
PB: predicated region body
PF: predicated region fallthrough
CT: control target
= control target key end

     0   :  { %8 = vsyncpa [#allocation3], 0  ;;  %s733_s0 = inlined_call_operand.hbm [shape: f32[64,128], index: 0, kind: input, shape index: {}]   ;;  %s734_s1 = inlined_call_operand.hbm [shape: f32[128,384], index: 1, kind: input, shape index: {}]   ;;  %s735_s2 = inlined_call_operand.hbm [shape: f32[1,384], index: 2, kind: input, shape index: {}]   ;;  %s736_s3 = inlined_call_operand.hbm [shape: f32[64,384], index: 3, kind: output, shape index: {}]  }
   0x1   :  { %9 = vsyncpa [#allocation6], 0 }
   0x2   :  { %10 = vsyncpa [#allocation4], 0  ;;  %s622_s12 = smov [#allocation5]   ;;  %s528_s16 = scalar_lea.hbm %s734_s1, 6144 }
   0x3   :  { %s28_s13 = sshll.u32 %s622_s12, 4  ;;  %p529_p0 = scmp.ne.s32.totalorder %s734_s1, %s528_s16  ;;  %s29_s13 = int_to_ptr.vmem [resolvable:$true] %s28_s13 }
   0x4   :  { %p532_p1 = scmp.lt.u32.totalorder %s528_s16, %s734_s1 }
   0x6   :  { %p534_p2 = pnand %p532_p1, %p529_p0 }
   0x8   :  { %537 = shalt.err (!%p534_p2)
}
   0x9   :  { %s538_s21 = scalar_lea.vmem %s29_s13, 6144  ;;  %p543_p4 = scmp.lt.s32.totalorder %s29_s13, %s29_s13 }
   0xa   :  { %p539_p3 = scmp.ne.s32.totalorder %s29_s13, %s538_s21  ;;  %p544_p5 = scmp.lt.s32.totalorder %s538_s21, %s538_s21 }
   0xc   :  { %p545_p6 = por %p544_p5, %p543_p4 }
   0xe   :  { %p546_p7 = pnand %p545_p6, %p539_p3 }
  0x10   :  { %549 = shalt.err (!%p546_p7)
}
  0x11   :  { %s623_s22 = smov 384   ;;  %s624_s23 = smov 24  }
  0x12   :  { %34 = dma.hbm_to_vmem [thread:$0]  %s734_s1, 6144, %s29_s13, [#allocation6], %s623_s22, %s623_s22, %s624_s23  }
  0x13   :  { %s625_s26 = smov [#allocation2]   ;;  %s550_s30 = scalar_lea.hbm %s733_s0, 1024 }
  0x14   :  { %s16_s27 = sshll.u32 %s625_s26, 4  ;;  %p551_p8 = scmp.ne.s32.totalorder %s733_s0, %s550_s30  ;;  %s17_s27 = int_to_ptr.vmem [resolvable:$true] %s16_s27 }
  0x15   :  { %p554_p9 = scmp.lt.u32.totalorder %s550_s30, %s733_s0 }
  0x17   :  { %p556_p10 = pnand %p554_p9, %p551_p8 }
  0x19   :  { %559 = shalt.err (!%p556_p10)
}
  0x1a   :  { %s560_s8 = scalar_lea.vmem %s17_s27, 1024  ;;  %p565_p12 = scmp.lt.s32.totalorder %s17_s27, %s17_s27 }
  0x1b   :  { %p561_p11 = scmp.ne.s32.totalorder %s17_s27, %s560_s8  ;;  %p566_p13 = scmp.lt.s32.totalorder %s560_s8, %s560_s8 }
  0x1d   :  { %p567_p0 = por %p566_p13, %p565_p12 }
  0x1f   :  { %p568_p1 = pnand %p567_p0, %p561_p11 }
  0x21   :  { %571 = shalt.err (!%p568_p1)
}
  0x22   :  { %s626_s1 = smov 128   ;;  %s627_s9 = smov 8  }
  0x23   :  { %22 = dma.hbm_to_vmem [thread:$0]  %s733_s0, 1024, %s17_s27, [#allocation3], %s626_s1, %s626_s1, %s627_s9  }
  0x24   :  { %s628_s12 = smov [#allocation7]   ;;  %s572_s16 = scalar_lea.hbm %s735_s2, 48 }
  0x25   :  { %s41_s13 = sshll.u32 %s628_s12, 4  ;;  %p573_p2 = scmp.ne.s32.totalorder %s735_s2, %s572_s16  ;;  %s42_s13 = int_to_ptr.vmem [resolvable:$true] %s41_s13 }
  0x26   :  { %p576_p3 = scmp.lt.u32.totalorder %s572_s16, %s735_s2 }
  0x28   :  { %p578_p4 = pnand %p576_p3, %p573_p2 }
  0x2a   :  { %581 = shalt.err (!%p578_p4)
}
  0x2b   :  { %s582_s21 = scalar_lea.vmem %s42_s13, 48  ;;  %s586_s0 = scalar_lea.vmem %s42_s13, 64 }
  0x2c   :  { %p583_p5 = scmp.ne.s32.totalorder %s42_s13, %s582_s21  ;;  %p587_p6 = scmp.lt.s32.totalorder %s42_s13, %s42_s13 }
  0x2d   :  { %p588_p7 = scmp.lt.s32.totalorder %s586_s0, %s582_s21 }
  0x2f   :  { %p589_p8 = por %p588_p7, %p587_p6 }
  0x31   :  { %p590_p9 = pnand %p589_p8, %p583_p5 }
  0x33   :  { %593 = shalt.err (!%p590_p9)
}
  0x34   :  { %44 = dma.hbm_to_vmem [thread:$0]  %s735_s2, 48, %s42_s13, [#allocation6]  }
  0x35   :  { %616 = dma.done.wait [#allocation3], 1024  }
  0x36   :  { %617 = vsyncadd [#allocation3], 4294966272 }
  0x37   :  { %618 = dma.done.wait [#allocation6], 6192  }
  0x38   :  { %619 = vsyncadd [#allocation6], 4294961104  ;;  %v629_v0 = vmov 0.0   ;;  %v63_v1 = vld [vmem:[#allocation5 + $0x8] sm:$0xff]  ;;  %v66_v2 = vld [vmem:[#allocation5 + $0x20] sm:$0xff]  ;;  %s630_s2 = smov [#allocation8]  }
  0x39   :  { %191 = vmatprep.mubr.f32.mxu0 %v629_v0  ;;  %v62_v3 = vld [vmem:[#allocation5] sm:$0xff]  ;;  %v455_v4 = vpack.c.bf16 %v66_v2, %v63_v1  ;;  %v65_v5 = vld [vmem:[#allocation5 + $0x18] sm:$0xff]  ;;  %v72_v7 = vld [vmem:[#allocation5 + $0x50] sm:$0xff]  ;;  %s374_s26 = sshll.u32 %s630_s2, 4  ;;  %s375_s26 = int_to_ptr.vmem [resolvable:$true] %s374_s26 }
  0x3a   :  { %v69_v6 = vld [vmem:[#allocation5 + $0x38] sm:$0xff]  ;;  %v457_v8 = vpack.c.bf16 %v65_v5, %v62_v3  ;;  %v68_v10 = vld [vmem:[#allocation5 + $0x30] sm:$0xff]  ;;  %v71_v11 = vld [vmem:[#allocation5 + $0x48] sm:$0xff]  ;;  %s594_s27 = scalar_lea.vmem %s375_s26, 3072  ;;  %p599_p11 = scmp.lt.s32.totalorder %s375_s26, %s375_s26 }
  0x3b   :  { %v459_v9 = vpack.c.bf16 %v72_v7, %v69_v6  ;;  %v75_v12 = vld [vmem:[#allocation5 + $0x68] sm:$0xff]  ;;  %456 = vmatprep.subr.bf16.mxu0 %v455_v4  ;;  %v78_v13 = vld [vmem:[#allocation5 + $0x80] sm:$0xff]  ;;  %v461_v14 = vpack.c.bf16 %v71_v11, %v68_v10  ;;  %v77_v17 = vld [vmem:[#allocation5 + $0x78] sm:$0xff]  ;;  %p595_p10 = scmp.ne.s32.totalorder %s375_s26, %s594_s27  ;;  %p600_p12 = scmp.lt.s32.totalorder %s594_s27, %s594_s27 }
  0x3c   :  { %458 = vmatpush1.bf16.msra.mxu0 %v457_v8  ;;  %v74_v15 = vld [vmem:[#allocation5 + $0x60] sm:$0xff]  ;;  %v463_v16 = vpack.c.bf16 %v78_v13, %v75_v12  ;;  %v64_v18 = vld [vmem:[#allocation5 + $0x10] sm:$0xff]  ;;  %v67_v19 = vld [vmem:[#allocation5 + $0x28] sm:$0xff] }
  0x3d   :  { %460 = vmatprep.subr.bf16.mxu0 %v459_v9  ;;  %v81_v20 = vld [vmem:[#allocation5 + $0x98] sm:$0xff]  ;;  %v84_v21 = vld [vmem:[#allocation5 + $0xb0] sm:$0xff]  ;;  %v487_v22 = vpack.c.bf16 %v67_v19, %v64_v18  ;;  %v70_v23 = vld [vmem:[#allocation5 + $0x40] sm:$0xff]  ;;  %v465_v25 = vpack.c.bf16 %v77_v17, %v74_v15  ;;  %v112_v18 = vlaneseq  ;;  %p601_p13 = por %p600_p12, %p599_p11 }
  0x3e   :  { %v73_v24 = vld [vmem:[#allocation5 + $0x58] sm:$0xff]  ;;  %v80_v26 = vld [vmem:[#allocation5 + $0x90] sm:$0xff]  ;;  %v467_v28 = vpack.c.bf16 %v84_v21, %v81_v20  ;;  %v83_v29 = vld [vmem:[#allocation5 + $0xa8] sm:$0xff] }
  0x3f   :  { %488 = vmatprep.subr.bf16.mxu1 %v487_v22  ;;  %v491_v27 = vpack.c.bf16 %v73_v24, %v70_v23  ;;  %v76_v30 = vld [vmem:[#allocation5 + $0x70] sm:$0xff]  ;;  %v79_v31 = vld [vmem:[#allocation5 + $0x88] sm:$0xff]  ;;  %v90_v33 = vld [vmem:[#allocation5 + $0xe0] sm:$0xff]  ;;  %v469_v37 = vpack.c.bf16 %v83_v29, %v80_v26  ;;  %v113_v19 = vshrl.u32 %v112_v18, 7  ;;  %p602_p0 = pnand %p601_p13, %p595_p10 }
  0x40   :  { %462 = vmatpush1.bf16.msra.mxu0 %v461_v14  ;;  %490 = vmatpush3.bf16.msra.mxu1 %v487_v22  ;;  %v87_v32 = vld [vmem:[#allocation5 + $0xc8] sm:$0xff]  ;;  %v495_v34 = vpack.c.bf16 %v79_v31, %v76_v30  ;;  %v82_v35 = vld [vmem:[#allocation5 + $0xa0] sm:$0xff]  ;;  %v85_v36 = vld [vmem:[#allocation5 + $0xb8] sm:$0xff] }
  0x41   :  { %464 = vmatprep.subr.bf16.mxu0 %v463_v16  ;;  %492 = vmatprep.subr.bf16.mxu1 %v491_v27  ;;  %v471_v38 = vpack.c.bf16 %v90_v33, %v87_v32  ;;  %v86_v39 = vld [vmem:[#allocation5 + $0xc0] sm:$0xff]  ;;  %v89_v40 = vld [vmem:[#allocation5 + $0xd8] sm:$0xff]  ;;  %v96_v42 = vld [vmem:[#allocation5 + $0x110] sm:$0xff]  ;;  %v499_v43 = vpack.c.bf16 %v85_v36, %v82_v35  ;;  %v114_v20 = vsub.s32 0, %v113_v19  ;;  %v118_v22 = vsub.s32 1, %v113_v19 }
  0x42   :  { %v93_v41 = vld [vmem:[#allocation5 + $0xf8] sm:$0xff]  ;;  %v54_v44 = vld [vmem:[#allocation2] sm:$0xff]  ;;  %v88_v45 = vld [vmem:[#allocation5 + $0xd0] sm:$0xff]  ;;  %v473_v47 = vpack.c.bf16 %v89_v40, %v86_v39 }
  0x43   :  { %v91_v46 = vld [vmem:[#allocation5 + $0xe8] sm:$0xff]  ;;  %443 = vmatprep.mubr.f32.mxu1 %v54_v44  ;;  %v475_v48 = vpack.c.bf16 %v96_v42, %v93_v41  ;;  %v92_v49 = vld [vmem:[#allocation5 + $0xf0] sm:$0xff]  ;;  %v102_v52 = vld [vmem:[#allocation5 + $0x140] sm:$0xff] }
  0x44   :  { %466 = vmatpush1.bf16.msra.mxu0 %v465_v25  ;;  %494 = vmatpush3.bf16.msra.mxu1 %v491_v27  ;;  %v95_v50 = vld [vmem:[#allocation5 + $0x108] sm:$0xff]  ;;  %v503_v53 = vpack.c.bf16 %v91_v46, %v88_v45  ;;  %v94_v54 = vld [vmem:[#allocation5 + $0x100] sm:$0xff]  ;;  %v97_v55 = vld [vmem:[#allocation5 + $0x118] sm:$0xff]  ;;  %v122_v25 = vsub.s32 2, %v113_v19 }
  0x45   :  { %468 = vmatprep.subr.bf16.mxu0 %v467_v28  ;;  %496 = vmatprep.subr.bf16.mxu1 %v495_v34  ;;  %v99_v51 = vld [vmem:[#allocation5 + $0x128] sm:$0xff]  ;;  %v477_v56 = vpack.c.bf16 %v95_v50, %v92_v49  ;;  %v98_v58 = vld [vmem:[#allocation5 + $0x120] sm:$0xff]  ;;  %v101_v59 = vld [vmem:[#allocation5 + $0x138] sm:$0xff]  ;;  %v507_v62 = vpack.c.bf16 %v97_v55, %v94_v54 }
  0x46   :  { %v479_v57 = vpack.c.bf16 %v102_v52, %v99_v51  ;;  %v105_v60 = vld [vmem:[#allocation5 + $0x158] sm:$0xff]  ;;  %v108_v61 = vld [vmem:[#allocation5 + $0x170] sm:$0xff]  ;;  %v103_v1 = vld [vmem:[#allocation5 + $0x148] sm:$0xff]  ;;  %v481_v2 = vpack.c.bf16 %v101_v59, %v98_v58 }
  0x47   :  { %v100_v63 = vld [vmem:[#allocation5 + $0x130] sm:$0xff]  ;;  %v483_v3 = vpack.c.bf16 %v108_v61, %v105_v60  ;;  %v107_v5 = vld [vmem:[#allocation5 + $0x168] sm:$0xff]  ;;  %v106_v7 = vld [vmem:[#allocation5 + $0x160] sm:$0xff] }
  0x48   :  { %470 = vmatpush1.bf16.msra.mxu0 %v469_v37  ;;  %498 = vmatpush3.bf16.msra.mxu1 %v495_v34  ;;  %v104_v4 = vld [vmem:[#allocation5 + $0x150] sm:$0xff]  ;;  %v511_v6 = vpack.c.bf16 %v103_v1, %v100_v63  ;;  %v109_v8 = vld [vmem:[#allocation5 + $0x178] sm:$0xff]  ;;  %v55_v11 = vld [vmem:[#allocation2 + $0x8] sm:$0xff] }
  0x49   :  { %472 = vmatprep.subr.bf16.mxu0 %v471_v38  ;;  %500 = vmatprep.subr.bf16.mxu1 %v499_v43  ;;  %v485_v9 = vpack.c.bf16 %v107_v5, %v104_v4  ;;  %v515_v10 = vpack.c.bf16 %v109_v8, %v106_v7  ;;  %v56_v12 = vld [vmem:[#allocation2 + $0x10] sm:$0xff]  ;;  %v57_v13 = vld [vmem:[#allocation2 + $0x18] sm:$0xff]  ;;  %v58_v14 = vld [vmem:[#allocation2 + $0x20] sm:$0xff] }
  0x4a   :  { %v59_v15 = vld [vmem:[#allocation2 + $0x28] sm:$0xff]  ;;  %v60_v16 = vld [vmem:[#allocation2 + $0x30] sm:$0xff]  ;;  %v61_v17 = vld [vmem:[#allocation2 + $0x38] sm:$0xff] }
  0x4b   :  { %v110_v21 = vld [vmem:[#allocation7] sm:$0x7] }
  0x4c   :  { %474 = vmatpush1.bf16.msra.mxu0 %v473_v47  ;;  %502 = vmatpush3.bf16.msra.mxu1 %v499_v43  ;;  %v698_v23 = vrot.slane %v110_v21, %v114_v20  ;;  %v700_v24 = vrot.slane %v110_v21, %v118_v22  ;;  %v123_v30 = vrot.slane %v110_v21, %v122_v25 }
  0x4d   :  { %476 = vmatprep.subr.bf16.mxu0 %v475_v48  ;;  %504 = vmatprep.subr.bf16.mxu1 %v503_v53 }
  0x50   :  { %478 = vmatpush1.bf16.msra.mxu0 %v477_v56  ;;  %506 = vmatpush3.bf16.msra.mxu1 %v503_v53 }
  0x51   :  { %480 = vmatprep.subr.bf16.mxu0 %v479_v57  ;;  %508 = vmatprep.subr.bf16.mxu1 %v507_v62 }
  0x54   :  { %482 = vmatpush1.bf16.msra.mxu0 %v481_v2  ;;  %510 = vmatpush3.bf16.msra.mxu1 %v507_v62 }
  0x55   :  { %484 = vmatprep.subr.bf16.mxu0 %v483_v3  ;;  %512 = vmatprep.subr.bf16.mxu1 %v511_v6 }
  0x58   :  { %486 = vmatpush1.bf16.msra.mxu0 %v485_v9  ;;  %514 = vmatpush3.bf16.msra.mxu1 %v511_v6 }
  0x59   :  { %516 = vmatprep.subr.bf16.mxu1 %v515_v10 }
  0x5b   :  { %192 = vmatmul.mubr.f32.vlgmr.msra.gmra.mrb[0].mxu0 %v54_v44 }
  0x5c   :  { %197 = vmatprep.mubr.f32.mxu0 %v629_v0  ;;  %518 = vmatpush3.bf16.msra.mxu1 %v515_v10 }
  0x5f   :  { %198 = vmatmul.mubr.f32.gmra.mrb[2].mxu0 %v55_v11  ;;  %444 = vmatmul.mubr.f32.vlgmr.msra.gmra.mrb[0].mxu1 %v55_v11 }
  0x60   :  { %203 = vmatprep.mubr.f32.mxu0 %v629_v0  ;;  %446 = vmatprep.mubr.f32.mxu1 %v56_v12 }
  0x63   :  { %204 = vmatmul.mubr.f32.gmra.mrb[4].mxu0 %v56_v12  ;;  %447 = vmatmul.mubr.f32.gmra.mrb[2].mxu1 %v57_v13 }
  0x64   :  { %209 = vmatprep.mubr.f32.mxu0 %v629_v0  ;;  %449 = vmatprep.mubr.f32.mxu1 %v58_v14 }
  0x67   :  { %210 = vmatmul.mubr.f32.gmra.mrb[6].mxu0 %v57_v13  ;;  %450 = vmatmul.mubr.f32.gmra.mrb[4].mxu1 %v59_v15 }
  0x68   :  { %215 = vmatprep.mubr.f32.mxu0 %v629_v0  ;;  %452 = vmatprep.mubr.f32.mxu1 %v60_v16 }
  0x6b   :  { %216 = vmatmul.mubr.f32.gmra.mrb[8].mxu0 %v58_v14  ;;  %453 = vmatmul.mubr.f32.gmra.mrb[6].mxu1 %v61_v17 }
  0x6c   :  { %221 = vmatprep.mubr.f32.mxu0 %v629_v0 }
  0x6f   :  { %222 = vmatmul.mubr.f32.gmra.mrb[10].mxu0 %v59_v15 }
  0x70   :  { %227 = vmatprep.mubr.f32.mxu0 %v629_v0 }
  0x73   :  { %228 = vmatmul.mubr.f32.gmra.mrb[12].mxu0 %v60_v16 }
  0x74   :  { %233 = vmatprep.mubr.f32.mxu0 %v629_v0 }
  0x77   :  { %234 = vmatmul.mubr.f32.gmra.mrb[14].mxu0 %v61_v17 }
 0x12e   :  { %v193_v26 = vpop.f32.mrb[0].mxu0 }
 0x12f   :  { %v194_v27 = vadd.f32 %v193_v26, %v698_v23  ;;  %v195_v28 = vpop.f32.mrb[1].mxu0 }
 0x130   :  { %v196_v29 = vadd.f32 %v195_v28, %v700_v24 }
 0x131   :  { %345 = vst [vmem:[#allocation8] sm:$0xff] %v194_v27 }
 0x132   :  { %346 = vst [vmem:[#allocation8 + $0x8] sm:$0xff] %v196_v29  ;;  %v199_v0 = vpop.f32.mrb[2].mxu0  ;;  %v445_v33 = vpop.f32.mrb[0].mxu1 }
 0x133   :  { %v200_v31 = vadd.f32 %v199_v0, %v698_v23  ;;  %v201_v32 = vpop.f32.mrb[3].mxu0  ;;  %v312_v35 = vadd.f32 %v445_v33, %v123_v30  ;;  %v306_v36 = vpop.f32.mrb[1].mxu1 }
 0x134   :  { %v202_v34 = vadd.f32 %v201_v32, %v700_v24  ;;  %v307_v37 = vadd.f32 %v306_v36, %v123_v30 }
 0x135   :  { %348 = vst [vmem:[#allocation8 + $0x18] sm:$0xff] %v200_v31  ;;  %350 = vst [vmem:[#allocation8 + $0x28] sm:$0xff] %v312_v35 }
 0x136   :  { %349 = vst [vmem:[#allocation8 + $0x20] sm:$0xff] %v202_v34  ;;  %v205_v38 = vpop.f32.mrb[4].mxu0  ;;  %347 = vst [vmem:[#allocation8 + $0x10] sm:$0xff] %v307_v37  ;;  %v448_v41 = vpop.f32.mrb[2].mxu1 }
 0x137   :  { %v206_v39 = vadd.f32 %v205_v38, %v698_v23  ;;  %v207_v40 = vpop.f32.mrb[5].mxu0  ;;  %v322_v43 = vadd.f32 %v448_v41, %v123_v30  ;;  %v316_v44 = vpop.f32.mrb[3].mxu1 }
 0x138   :  { %v208_v42 = vadd.f32 %v207_v40, %v700_v24  ;;  %v317_v45 = vadd.f32 %v316_v44, %v123_v30 }
 0x139   :  { %351 = vst [vmem:[#allocation8 + $0x30] sm:$0xff] %v206_v39  ;;  %356 = vst [vmem:[#allocation8 + $0x58] sm:$0xff] %v322_v43 }
 0x13a   :  { %352 = vst [vmem:[#allocation8 + $0x38] sm:$0xff] %v208_v42  ;;  %v211_v46 = vpop.f32.mrb[6].mxu0  ;;  %353 = vst [vmem:[#allocation8 + $0x40] sm:$0xff] %v317_v45  ;;  %v451_v49 = vpop.f32.mrb[4].mxu1 }
 0x13b   :  { %v212_v47 = vadd.f32 %v211_v46, %v698_v23  ;;  %v213_v48 = vpop.f32.mrb[7].mxu0  ;;  %v332_v51 = vadd.f32 %v451_v49, %v123_v30  ;;  %v326_v52 = vpop.f32.mrb[5].mxu1 }
 0x13c   :  { %v214_v50 = vadd.f32 %v213_v48, %v700_v24  ;;  %v327_v53 = vadd.f32 %v326_v52, %v123_v30 }
 0x13d   :  { %354 = vst [vmem:[#allocation8 + $0x48] sm:$0xff] %v212_v47  ;;  %362 = vst [vmem:[#allocation8 + $0x88] sm:$0xff] %v332_v51 }
 0x13e   :  { %355 = vst [vmem:[#allocation8 + $0x50] sm:$0xff] %v214_v50  ;;  %v217_v54 = vpop.f32.mrb[8].mxu0  ;;  %359 = vst [vmem:[#allocation8 + $0x70] sm:$0xff] %v327_v53  ;;  %v454_v57 = vpop.f32.mrb[6].mxu1 }
 0x13f   :  { %v218_v55 = vadd.f32 %v217_v54, %v698_v23  ;;  %v219_v56 = vpop.f32.mrb[9].mxu0  ;;  %v342_v59 = vadd.f32 %v454_v57, %v123_v30  ;;  %v336_v60 = vpop.f32.mrb[7].mxu1 }
 0x140   :  { %v220_v58 = vadd.f32 %v219_v56, %v700_v24  ;;  %v337_v61 = vadd.f32 %v336_v60, %v123_v30 }
 0x141   :  { %357 = vst [vmem:[#allocation8 + $0x60] sm:$0xff] %v218_v55  ;;  %368 = vst [vmem:[#allocation8 + $0xb8] sm:$0xff] %v342_v59 }
 0x142   :  { %358 = vst [vmem:[#allocation8 + $0x68] sm:$0xff] %v220_v58  ;;  %v223_v62 = vpop.f32.mrb[10].mxu0  ;;  %365 = vst [vmem:[#allocation8 + $0xa0] sm:$0xff] %v337_v61 }
 0x143   :  { %v224_v63 = vadd.f32 %v223_v62, %v698_v23  ;;  %v225_v1 = vpop.f32.mrb[11].mxu0 }
 0x144   :  { %v226_v2 = vadd.f32 %v225_v1, %v700_v24 }
 0x145   :  { %360 = vst [vmem:[#allocation8 + $0x78] sm:$0xff] %v224_v63 }
 0x146   :  { %361 = vst [vmem:[#allocation8 + $0x80] sm:$0xff] %v226_v2  ;;  %v229_v3 = vpop.f32.mrb[12].mxu0 }
 0x147   :  { %v230_v4 = vadd.f32 %v229_v3, %v698_v23  ;;  %v231_v5 = vpop.f32.mrb[13].mxu0 }
 0x148   :  { %v232_v6 = vadd.f32 %v231_v5, %v700_v24 }
 0x149   :  { %363 = vst [vmem:[#allocation8 + $0x90] sm:$0xff] %v230_v4 }
 0x14a   :  { %364 = vst [vmem:[#allocation8 + $0x98] sm:$0xff] %v232_v6  ;;  %v235_v7 = vpop.f32.mrb[14].mxu0 }
 0x14b   :  { %v236_v8 = vadd.f32 %v235_v7, %v698_v23  ;;  %v237_v9 = vpop.f32.mrb[15].mxu0 }
 0x14c   :  { %v238_v10 = vadd.f32 %v237_v9, %v700_v24 }
 0x14d   :  { %366 = vst [vmem:[#allocation8 + $0xa8] sm:$0xff] %v236_v8 }
 0x14e   :  { %367 = vst [vmem:[#allocation8 + $0xb0] sm:$0xff] %v238_v10 }
 0x14f   :  { %605 = shalt.err (!%p602_p0)
}
 0x150   :  { %s606_s30 = scalar_lea.hbm %s736_s3, 3072 }
 0x151   :  { %p607_p1 = scmp.ne.s32.totalorder %s736_s3, %s606_s30  ;;  %p610_p2 = scmp.lt.u32.totalorder %s606_s30, %s736_s3 }
 0x153   :  { %p612_p3 = pnand %p610_p2, %p607_p1 }
 0x155   :  { %615 = shalt.err (!%p612_p3)
}
 0x156   :  { %380 = dma.vmem_to_hbm [thread:$0]  %s375_s26, 3072, %s736_s3, [#allocation4], %s623_s22, %s623_s22, %s624_s23  }
 0x157   :  { %620 = dma.done.wait [#allocation4], 3072  }
 0x158   :  { %621 = vsyncadd [#allocation4], 4294964224 }
 0x159   :  { %384 = vsyncpa [#allocation3], 1 }
 0x15a   :  { %385 = vsyncpa [#allocation6], 1 }
 0x15b   :  { %386 = vsyncpa [#allocation4], 1 }

// kernel: _lambda_.7
= control target key start
LH: loop header
LB: loop body
LE: loop exit
PB: predicated region body
PF: predicated region fallthrough
CT: control target
= control target key end

     0   :  { %10 = vsyncpa [#allocation4], 0  ;;  %s3323_s0 = inlined_call_operand.hbm [shape: f32[8,8,384], index: 0, kind: input, shape index: {}]   ;;  %s3324_s1 = inlined_call_operand.hbm [shape: f32[128,384], index: 1, kind: input, shape index: {}]   ;;  %s3325_s2 = inlined_call_operand.hbm [shape: f32[1,384], index: 2, kind: input, shape index: {}]   ;;  %s3326_s3 = inlined_call_operand.hbm [shape: f32[128,4], index: 3, kind: input, shape index: {}]   ;;  %s3327_s4 = inlined_call_operand.hbm [shape: f32[1,4], index: 4, kind: input, shape index: {}]   ;;  %s3328_s5 = inlined_call_operand.hbm [shape: f32[8,4], index: 5, kind: output, shape index: {}]  }
   0x1   :  { %11 = vsyncpa [#allocation7], 0 }
   0x2   :  { %12 = vsyncpa [#allocation10], 0 }
   0x3   :  { %13 = vsyncpa [#allocation5], 0  ;;  %s2790_s18 = smov [#allocation6]   ;;  %s2791_s20 = smov [#allocation9]  }
   0x4   :  { %s31_s19 = sshll.u32 %s2790_s18, 4  ;;  %s53_s21 = sshll.u32 %s2791_s20, 4  ;;  %s32_s19 = int_to_ptr.vmem [resolvable:$true] %s31_s19  ;;  %s2833_s21 = int_to_ptr.vmem [resolvable:$true] %s53_s21 }
   0x5   :  { %s2650_s24 = scalar_lea.hbm %s3324_s1, 6144 }
   0x6   :  { %p2651_p0 = scmp.ne.s32.totalorder %s3324_s1, %s2650_s24  ;;  %p2654_p1 = scmp.lt.u32.totalorder %s2650_s24, %s3324_s1 }
   0x8   :  { %p2656_p2 = pnand %p2654_p1, %p2651_p0 }
   0xa   :  { %2659 = shalt.err (!%p2656_p2)
}
   0xb   :  { %s2660_s29 = scalar_lea.vmem %s32_s19, 6144  ;;  %p2665_p4 = scmp.lt.s32.totalorder %s32_s19, %s32_s19 }
   0xc   :  { %p2661_p3 = scmp.ne.s32.totalorder %s32_s19, %s2660_s29  ;;  %p2666_p5 = scmp.lt.s32.totalorder %s2660_s29, %s2660_s29 }
   0xe   :  { %p2667_p6 = por %p2666_p5, %p2665_p4 }
  0x10   :  { %p2668_p7 = pnand %p2667_p6, %p2661_p3 }
  0x12   :  { %2671 = shalt.err (!%p2668_p7)
}
  0x13   :  { %s2792_s30 = smov 384   ;;  %s2793_s6 = smov 24  }
  0x14   :  { %37 = dma.hbm_to_vmem [thread:$0]  %s3324_s1, 6144, %s32_s19, [#allocation7], %s2792_s30, %s2792_s30, %s2793_s6  }
  0x15   :  { %s2672_s11 = scalar_lea.hbm %s3326_s3, 2048 }
  0x16   :  { %p2673_p8 = scmp.ne.s32.totalorder %s3326_s3, %s2672_s11  ;;  %p2676_p9 = scmp.lt.u32.totalorder %s2672_s11, %s3326_s3 }
  0x18   :  { %p2678_p10 = pnand %p2676_p9, %p2673_p8 }
  0x1a   :  { %2681 = shalt.err (!%p2678_p10)
}
  0x1b   :  { %s2682_s16 = scalar_lea.vmem %s2833_s21, 2048  ;;  %p2687_p12 = scmp.lt.s32.totalorder %s2833_s21, %s2833_s21 }
  0x1c   :  { %p2683_p11 = scmp.ne.s32.totalorder %s2833_s21, %s2682_s16  ;;  %p2688_p13 = scmp.lt.s32.totalorder %s2682_s16, %s2682_s16 }
  0x1e   :  { %p2689_p0 = por %p2688_p13, %p2687_p12 }
  0x20   :  { %p2690_p1 = pnand %p2689_p0, %p2683_p11 }
  0x22   :  { %2693 = shalt.err (!%p2690_p1)
}
  0x23   :  { %s2794_s1 = smov 128   ;;  %s2795_s17 = smov 8  }
  0x24   :  { %59 = dma.hbm_to_vmem [thread:$0]  %s3326_s3, 2048, %s2833_s21, [#allocation10], %s2794_s1, %s2794_s1, %s2795_s17  }
  0x25   :  { %s2796_s20 = smov [#allocation3]   ;;  %s2797_s23 = smov [#allocation8]  }
  0x26   :  { %s19_s22 = sshll.u32 %s2796_s20, 4  ;;  %s44_s24 = sshll.u32 %s2797_s23, 4  ;;  %s20_s22 = int_to_ptr.vmem [resolvable:$true] %s19_s22  ;;  %s45_s24 = int_to_ptr.vmem [resolvable:$true] %s44_s24 }
  0x27   :  { %s2694_s27 = scalar_lea.hbm %s3323_s0, 3072 }
  0x28   :  { %p2695_p2 = scmp.ne.s32.totalorder %s3323_s0, %s2694_s27  ;;  %p2698_p3 = scmp.lt.u32.totalorder %s2694_s27, %s3323_s0 }
  0x2a   :  { %p2700_p4 = pnand %p2698_p3, %p2695_p2 }
  0x2c   :  { %2703 = shalt.err (!%p2700_p4)
}
  0x2d   :  { %s2704_s3 = scalar_lea.vmem %s20_s22, 3072  ;;  %p2709_p6 = scmp.lt.s32.totalorder %s20_s22, %s20_s22 }
  0x2e   :  { %p2705_p5 = scmp.ne.s32.totalorder %s20_s22, %s2704_s3  ;;  %p2710_p7 = scmp.lt.s32.totalorder %s2704_s3, %s2704_s3 }
  0x30   :  { %p2711_p8 = por %p2710_p7, %p2709_p6 }
  0x32   :  { %p2712_p9 = pnand %p2711_p8, %p2705_p5 }
  0x34   :  { %2715 = shalt.err (!%p2712_p9)
}
  0x35   :  { %25 = dma.hbm_to_vmem [thread:$0]  %s3323_s0, 3072, %s20_s22, [#allocation4], %s2792_s30, %s2792_s30, %s2793_s6  }
  0x36   :  { %s2716_s12 = scalar_lea.hbm %s3325_s2, 48 }
  0x37   :  { %p2717_p10 = scmp.ne.s32.totalorder %s3325_s2, %s2716_s12  ;;  %p2720_p11 = scmp.lt.u32.totalorder %s2716_s12, %s3325_s2 }
  0x39   :  { %p2722_p12 = pnand %p2720_p11, %p2717_p10 }
  0x3b   :  { %2725 = shalt.err (!%p2722_p12)
}
  0x3c   :  { %s2726_s1 = scalar_lea.vmem %s45_s24, 48  ;;  %s2730_s17 = scalar_lea.vmem %s45_s24, 64 }
  0x3d   :  { %p2727_p13 = scmp.ne.s32.totalorder %s45_s24, %s2726_s1  ;;  %p2731_p0 = scmp.lt.s32.totalorder %s45_s24, %s45_s24 }
  0x3e   :  { %p2732_p1 = scmp.lt.s32.totalorder %s2730_s17, %s2726_s1 }
  0x40   :  { %p2733_p2 = por %p2732_p1, %p2731_p0 }
  0x42   :  { %p2734_p3 = pnand %p2733_p2, %p2727_p13 }
  0x44   :  { %2737 = shalt.err (!%p2734_p3)
}
  0x45   :  { %47 = dma.hbm_to_vmem [thread:$0]  %s3325_s2, 48, %s45_s24, [#allocation7]  }
  0x46   :  { %s2798_s6 = smov [#allocation11]   ;;  %s2738_s22 = scalar_lea.hbm %s3327_s4, 16 }
  0x47   :  { %s66_s18 = sshll.u32 %s2798_s6, 4  ;;  %p2739_p4 = scmp.ne.s32.totalorder %s3327_s4, %s2738_s22  ;;  %s67_s18 = int_to_ptr.vmem [resolvable:$true] %s66_s18 }
  0x48   :  { %p2742_p5 = scmp.lt.u32.totalorder %s2738_s22, %s3327_s4 }
  0x4a   :  { %p2744_p6 = pnand %p2742_p5, %p2739_p4 }
  0x4c   :  { %2747 = shalt.err (!%p2744_p6)
}
  0x4d   :  { %s2748_s28 = scalar_lea.vmem %s67_s18, 16  ;;  %s2752_s2 = scalar_lea.vmem %s67_s18, 32 }
  0x4e   :  { %p2749_p7 = scmp.ne.s32.totalorder %s67_s18, %s2748_s28  ;;  %p2753_p8 = scmp.lt.s32.totalorder %s67_s18, %s67_s18 }
  0x4f   :  { %p2754_p9 = scmp.lt.s32.totalorder %s2752_s2, %s2748_s28 }
  0x51   :  { %p2755_p10 = por %p2754_p9, %p2753_p8 }
  0x53   :  { %p2756_p11 = pnand %p2755_p10, %p2749_p7 }
  0x55   :  { %2759 = shalt.err (!%p2756_p11)
}
  0x56   :  { %69 = dma.hbm_to_vmem [thread:$0]  %s3327_s4, 16, %s67_s18, [#allocation10]  }
  0x57   :  { %2782 = dma.done.wait [#allocation4], 3072  }
  0x58   :  { %2783 = vsyncadd [#allocation4], 4294964224 }
  0x59   :  { %2784 = dma.done.wait [#allocation7], 6192  }
  0x5a   :  { %2785 = vsyncadd [#allocation7], 4294961104 }
  0x5b   :  { %2786 = dma.done.wait [#allocation10], 2064  }
  0x5c   :  { %2787 = vsyncadd [#allocation10], 4294965232  ;;  %v2799_v0 = vmov 0.0|0.0   ;;  %v2800_v1 = vmov 0.0   ;;  %vm2801_vm0 = vmmov 0   ;;  %v95_v2 = vld [vmem:[#allocation6 + $0x8] sm:$0xff] }
  0x5d   :  { %2117 = vmatprep.subr.bf16.mxu1 %v2799_v0  ;;  %223 = vmatprep.mubr.f32.mxu0 %v2800_v1  ;;  %v98_v3 = vld [vmem:[#allocation6 + $0x20] sm:$0xff]  ;;  %v97_v6 = vld [vmem:[#allocation6 + $0x18] sm:$0xff]  ;;  %v104_v8 = vld [vmem:[#allocation6 + $0x50] sm:$0xff]  ;;  %s2802_s4 = smov [#allocation12]   ;;  %vm1581_vm1 = vcmask 31744  }
  0x5e   :  { %1802 = vmatprep.mubr.msk.f32.mxu1 %vm2801_vm0, %v2800_v1  ;;  %v94_v4 = vld [vmem:[#allocation6] sm:$0xff]  ;;  %v2910_v5 = vpack.c.bf16 %v98_v3, %v95_v2  ;;  %v101_v7 = vld [vmem:[#allocation6 + $0x38] sm:$0xff]  ;;  %v100_v11 = vld [vmem:[#allocation6 + $0x30] sm:$0xff]  ;;  %s1589_s7 = sshll.u32 %s2802_s4, 4  ;;  %s1590_s7 = int_to_ptr.vmem [resolvable:$true] %s1589_s7 }
  0x5f   :  { %v2912_v9 = vpack.c.bf16 %v97_v6, %v94_v4  ;;  %v2914_v10 = vpack.c.bf16 %v104_v8, %v101_v7  ;;  %v103_v12 = vld [vmem:[#allocation6 + $0x48] sm:$0xff]  ;;  %v110_v14 = vld [vmem:[#allocation6 + $0x80] sm:$0xff]  ;;  %v109_v18 = vld [vmem:[#allocation6 + $0x78] sm:$0xff]  ;;  %s2760_s8 = scalar_lea.vmem %s1590_s7, 128  ;;  %p2765_p13 = scmp.lt.s32.totalorder %s1590_s7, %s1590_s7 }
  0x60   :  { %v107_v13 = vld [vmem:[#allocation6 + $0x68] sm:$0xff]  ;;  %2086 = vmatprep.subr.bf16.mxu0 %v2910_v5  ;;  %v2918_v15 = vpack.c.bf16 %v103_v12, %v100_v11  ;;  %v106_v17 = vld [vmem:[#allocation6 + $0x60] sm:$0xff]  ;;  %v113_v19 = vld [vmem:[#allocation6 + $0x98] sm:$0xff]  ;;  %p2761_p12 = scmp.ne.s32.totalorder %s1590_s7, %s2760_s8  ;;  %p2766_p0 = scmp.lt.s32.totalorder %s2760_s8, %s2760_s8 }
  0x61   :  { %2088 = vmatpush1.bf16.msra.mxu0 %v2912_v9  ;;  %v2921_v16 = vpack.c.bf16 %v110_v14, %v107_v13  ;;  %v116_v20 = vld [vmem:[#allocation6 + $0xb0] sm:$0xff]  ;;  %v2924_v21 = vpack.c.bf16 %v109_v18, %v106_v17  ;;  %v115_v24 = vld [vmem:[#allocation6 + $0xa8] sm:$0xff]  ;;  %v122_v26 = vld [vmem:[#allocation6 + $0xe0] sm:$0xff]  ;;  %v144_v17 = vlaneseq }
  0x62   :  { %2090 = vmatprep.subr.bf16.mxu0 %v2914_v10  ;;  %v2927_v22 = vpack.c.bf16 %v116_v20, %v113_v19  ;;  %v112_v23 = vld [vmem:[#allocation6 + $0x90] sm:$0xff]  ;;  %v119_v25 = vld [vmem:[#allocation6 + $0xc8] sm:$0xff]  ;;  %v102_v30 = vld [vmem:[#allocation6 + $0x40] sm:$0xff]  ;;  %p2767_p1 = por %p2766_p0, %p2765_p13 }
  0x63   :  { %v96_v27 = vld [vmem:[#allocation6 + $0x10] sm:$0xff]  ;;  %v99_v28 = vld [vmem:[#allocation6 + $0x28] sm:$0xff]  ;;  %v105_v31 = vld [vmem:[#allocation6 + $0x58] sm:$0xff]  ;;  %v2932_v32 = vpack.c.bf16 %v115_v24, %v112_v23  ;;  %v2935_v33 = vpack.c.bf16 %v122_v26, %v119_v25  ;;  %v145_v18 = vshrl.u32 %v144_v17, 7 }
  0x64   :  { %v2929_v29 = vpack.c.bf16 %v99_v28, %v96_v27  ;;  %v118_v34 = vld [vmem:[#allocation6 + $0xc0] sm:$0xff]  ;;  %v121_v35 = vld [vmem:[#allocation6 + $0xd8] sm:$0xff]  ;;  %v2938_v37 = vpack.c.bf16 %v105_v31, %v102_v30  ;;  %v128_v38 = vld [vmem:[#allocation6 + $0x110] sm:$0xff]  ;;  %p2768_p2 = pnand %p2767_p1, %p2761_p12 }
  0x65   :  { %2092 = vmatpush1.bf16.msra.mxu0 %v2918_v15  ;;  %v125_v36 = vld [vmem:[#allocation6 + $0xf8] sm:$0xff]  ;;  %v108_v39 = vld [vmem:[#allocation6 + $0x70] sm:$0xff]  ;;  %v111_v40 = vld [vmem:[#allocation6 + $0x88] sm:$0xff]  ;;  %v2942_v41 = vpack.c.bf16 %v121_v35, %v118_v34  ;;  %v146_v19 = vsub.s32 0, %v145_v18  ;;  %v150_v23 = vsub.s32 1, %v145_v18 }
  0x66   :  { %2094 = vmatprep.subr.bf16.mxu0 %v2921_v16  ;;  %2119 = vmatpush3.bf16.msra.mxu1 %v2929_v29  ;;  %v2945_v42 = vpack.c.bf16 %v128_v38, %v125_v36  ;;  %v124_v43 = vld [vmem:[#allocation6 + $0xf0] sm:$0xff]  ;;  %v127_v44 = vld [vmem:[#allocation6 + $0x108] sm:$0xff]  ;;  %v2948_v46 = vpack.c.bf16 %v111_v40, %v108_v39  ;;  %v134_v47 = vld [vmem:[#allocation6 + $0x140] sm:$0xff] }
  0x67   :  { %2120 = vmatprep.subr.bf16.mxu1 %v2799_v0  ;;  %v131_v45 = vld [vmem:[#allocation6 + $0x128] sm:$0xff]  ;;  %v114_v48 = vld [vmem:[#allocation6 + $0xa0] sm:$0xff]  ;;  %v117_v49 = vld [vmem:[#allocation6 + $0xb8] sm:$0xff]  ;;  %v2952_v50 = vpack.c.bf16 %v127_v44, %v124_v43 }
  0x68   :  { %v2955_v51 = vpack.c.bf16 %v134_v47, %v131_v45  ;;  %v130_v52 = vld [vmem:[#allocation6 + $0x120] sm:$0xff]  ;;  %v133_v53 = vld [vmem:[#allocation6 + $0x138] sm:$0xff]  ;;  %v2958_v55 = vpack.c.bf16 %v117_v49, %v114_v48  ;;  %v140_v56 = vld [vmem:[#allocation6 + $0x170] sm:$0xff]  ;;  %v154_v47 = vsub.s32 2, %v145_v18 }
  0x69   :  { %2096 = vmatpush1.bf16.msra.mxu0 %v2924_v21  ;;  %v137_v54 = vld [vmem:[#allocation6 + $0x158] sm:$0xff]  ;;  %v120_v57 = vld [vmem:[#allocation6 + $0xd0] sm:$0xff]  ;;  %v123_v58 = vld [vmem:[#allocation6 + $0xe8] sm:$0xff]  ;;  %v2962_v59 = vpack.c.bf16 %v133_v53, %v130_v52 }
  0x6a   :  { %2098 = vmatprep.subr.bf16.mxu0 %v2927_v22  ;;  %2122 = vmatpush3.bf16.msra.mxu1 %v2938_v37  ;;  %v2965_v60 = vpack.c.bf16 %v140_v56, %v137_v54  ;;  %v136_v61 = vld [vmem:[#allocation6 + $0x150] sm:$0xff]  ;;  %v139_v62 = vld [vmem:[#allocation6 + $0x168] sm:$0xff]  ;;  %v2968_v63 = vpack.c.bf16 %v123_v58, %v120_v57  ;;  %v126_v2 = vld [vmem:[#allocation6 + $0x100] sm:$0xff] }
  0x6b   :  { %2123 = vmatprep.subr.bf16.mxu1 %v2799_v0  ;;  %v129_v3 = vld [vmem:[#allocation6 + $0x118] sm:$0xff]  ;;  %v2972_v4 = vpack.c.bf16 %v139_v62, %v136_v61  ;;  %v132_v7 = vld [vmem:[#allocation6 + $0x130] sm:$0xff]  ;;  %v135_v8 = vld [vmem:[#allocation6 + $0x148] sm:$0xff] }
  0x6c   :  { %v2976_v6 = vpack.c.bf16 %v129_v3, %v126_v2  ;;  %v2981_v11 = vpack.c.bf16 %v135_v8, %v132_v7  ;;  %v138_v12 = vld [vmem:[#allocation6 + $0x160] sm:$0xff]  ;;  %v141_v13 = vld [vmem:[#allocation6 + $0x178] sm:$0xff]  ;;  %v92_v35 = vld [vmem:[#allocation3 + $0x8] sm:$0xff] }
  0x6d   :  { %2100 = vmatpush1.bf16.msra.mxu0 %v2932_v32  ;;  %v2989_v14 = vpack.c.bf16 %v141_v13, %v138_v12  ;;  %v142_v20 = vld [vmem:[#allocation8] sm:$0x7]  ;;  %v93_v56 = vld [vmem:[#allocation3 + $0x10] sm:$0xff]  ;;  %v322_v12 = vld [vmem:[#allocation3 + $0x18] sm:$0xff] }
  0x6e   :  { %2102 = vmatprep.subr.bf16.mxu0 %v2935_v33  ;;  %2125 = vmatpush3.bf16.msra.mxu1 %v2948_v46  ;;  %v3028_v24 = vrot.slane %v142_v20, %v146_v19  ;;  %v3030_v25 = vrot.slane %v142_v20, %v150_v23  ;;  %v91_v26 = vld [vmem:[#allocation3] sm:$0xff]  ;;  %v3034_v48 = vrot.slane %v142_v20, %v154_v47 }
  0x6f   :  { %2126 = vmatprep.subr.bf16.mxu1 %v2799_v0 }
  0x71   :  { %2104 = vmatpush1.bf16.msra.mxu0 %v2942_v41 }
  0x72   :  { %2106 = vmatprep.subr.bf16.mxu0 %v2945_v42  ;;  %2128 = vmatpush3.bf16.msra.mxu1 %v2958_v55 }
  0x73   :  { %2129 = vmatprep.subr.bf16.mxu1 %v2799_v0 }
  0x75   :  { %2108 = vmatpush1.bf16.msra.mxu0 %v2952_v50 }
  0x76   :  { %2110 = vmatprep.subr.bf16.mxu0 %v2955_v51  ;;  %2131 = vmatpush3.bf16.msra.mxu1 %v2968_v63 }
  0x77   :  { %2132 = vmatprep.subr.bf16.mxu1 %v2799_v0 }
  0x79   :  { %2112 = vmatpush1.bf16.msra.mxu0 %v2962_v59 }
  0x7a   :  { %2114 = vmatprep.subr.bf16.mxu0 %v2965_v60  ;;  %2134 = vmatpush3.bf16.msra.mxu1 %v2976_v6 }
  0x7b   :  { %2135 = vmatprep.subr.bf16.mxu1 %v2799_v0 }
  0x7d   :  { %2116 = vmatpush1.bf16.msra.mxu0 %v2972_v4 }
  0x7e   :  { %2142 = vmatprep.subr.bf16.mxu0 %v2910_v5  ;;  %2137 = vmatpush3.bf16.msra.mxu1 %v2981_v11 }
  0x7f   :  { %2138 = vmatprep.subr.bf16.mxu1 %v2799_v0 }
  0x80   :  { %224 = vmatmul.mubr.f32.vlgmr.msra.gmra.mrb[0].mxu0 %v2800_v1 }
  0x81   :  { %2144 = vmatpush1.bf16.msra.mxu0 %v2912_v9  ;;  %389 = vmatprep.mubr.f32.mxu0 %v2800_v1 }
  0x82   :  { %2146 = vmatprep.subr.bf16.mxu0 %v2914_v10  ;;  %2140 = vmatpush3.bf16.msra.mxu1 %v2989_v14 }
  0x83   :  { %2173 = vmatprep.subr.bf16.mxu1 %v2799_v0 }
  0x85   :  { %2148 = vmatpush1.bf16.msra.mxu0 %v2918_v15  ;;  %1803 = vmatmul.mubr.f32.vlgmr.msra.gmra.mrb[0].mxu1 %v2800_v1 }
  0x86   :  { %2150 = vmatprep.subr.bf16.mxu0 %v2921_v16  ;;  %2175 = vmatpush3.bf16.msra.mxu1 %v2929_v29 }
  0x87   :  { %2176 = vmatprep.subr.bf16.mxu1 %v2799_v0  ;;  %1837 = vmatprep.mubr.msk.f32.mxu1 %vm2801_vm0, %v2800_v1 }
  0x89   :  { %2152 = vmatpush1.bf16.msra.mxu0 %v2924_v21 }
  0x8a   :  { %2154 = vmatprep.subr.bf16.mxu0 %v2927_v22  ;;  %2178 = vmatpush3.bf16.msra.mxu1 %v2938_v37 }
  0x8b   :  { %2179 = vmatprep.subr.bf16.mxu1 %v2799_v0 }
  0x8d   :  { %2156 = vmatpush1.bf16.msra.mxu0 %v2932_v32 }
  0x8e   :  { %2158 = vmatprep.subr.bf16.mxu0 %v2935_v33  ;;  %2181 = vmatpush3.bf16.msra.mxu1 %v2948_v46 }
  0x8f   :  { %2182 = vmatprep.subr.bf16.mxu1 %v2799_v0 }
  0x91   :  { %2160 = vmatpush1.bf16.msra.mxu0 %v2942_v41 }
  0x92   :  { %2162 = vmatprep.subr.bf16.mxu0 %v2945_v42  ;;  %2184 = vmatpush3.bf16.msra.mxu1 %v2958_v55 }
  0x93   :  { %2185 = vmatprep.subr.bf16.mxu1 %v2799_v0 }
  0x95   :  { %2164 = vmatpush1.bf16.msra.mxu0 %v2952_v50 }
  0x96   :  { %2166 = vmatprep.subr.bf16.mxu0 %v2955_v51  ;;  %2187 = vmatpush3.bf16.msra.mxu1 %v2968_v63 }
  0x97   :  { %2188 = vmatprep.subr.bf16.mxu1 %v2799_v0 }
  0x99   :  { %2168 = vmatpush1.bf16.msra.mxu0 %v2962_v59 }
  0x9a   :  { %2170 = vmatprep.subr.bf16.mxu0 %v2965_v60  ;;  %2190 = vmatpush3.bf16.msra.mxu1 %v2976_v6 }
  0x9b   :  { %2191 = vmatprep.subr.bf16.mxu1 %v2799_v0 }
  0x9d   :  { %2172 = vmatpush1.bf16.msra.mxu0 %v2972_v4 }
  0x9e   :  { %2198 = vmatprep.subr.bf16.mxu0 %v2910_v5  ;;  %2193 = vmatpush3.bf16.msra.mxu1 %v2981_v11 }
  0x9f   :  { %2194 = vmatprep.subr.bf16.mxu1 %v2799_v0 }
  0xa2   :  { %2196 = vmatpush3.bf16.msra.mxu1 %v2989_v14 }
  0xa3   :  { %2229 = vmatprep.subr.bf16.mxu1 %v2799_v0 }
 0x153   :  { %v225_v27 = vpop.f32.mrb[0].mxu0 }
 0x154   :  { %v226_v28 = vadd.f32 %v225_v27, %v3028_v24  ;;  %v227_v30 = vpop.f32.mrb[1].mxu0  ;;  %v323_v27 = vld [vmem:[#allocation3 + $0x20] sm:$0xff] }
 0x155   :  { %v228_v31 = vadd.f32 %v227_v30, %v3030_v25 }
 0x156   :  { %v300_v34 = vadd.f32 %v226_v28, %v91_v26 }
 0x157   :  { %v307_v38 = vadd.f32 %v228_v31, %v92_v35 }
 0x158   :  { %v1600_v36 = vmul.f32 -1.442695, %v300_v34  ;;  %v296_v39 = vpop.f32.mrb[0].mxu1 }
 0x159   :  { %v1601_v40 = vmul.f32 -1.442695, %v307_v38  ;;  %v1804_v43 = vpop.f32.mrb[1].mxu1  ;;  %v297_v53 = vadd.f32 %v296_v39, %v3034_v48 }
 0x15a   :  { %2570 = vpow2.f32 %v1600_v36  ;;  %v324_v43 = vld [vmem:[#allocation3 + $0x28] sm:$0xff] }
 0x15b   :  { %2572 = vpow2.f32 %v1601_v40 }
 0x164   :  { %v2571_v44 = vpop.eup %2570 }
 0x165   :  { %v304_v45 = vadd.f32 1.0, %v2571_v44  ;;  %v2573_v49 = vpop.eup %2572 }
 0x166   :  { %v311_v52 = vadd.f32 1.0, %v2573_v49 }
 0x167   :  { %2574 = vrcp.f32 %v304_v45 }
 0x168   :  { %2576 = vrcp.f32 %v311_v52 }
 0x171   :  { %v2575_v54 = vpop.eup %2574 }
 0x172   :  { %v314_v57 = vmul.f32 %v2575_v54, %v297_v53  ;;  %v2577_v61 = vpop.eup %2576 }
 0x173   :  { %v317_v62 = vsub.f32 1.0, %v2577_v61  ;;  %v319_v7 = vmul.f32 0.0, %v2577_v61 }
 0x174   :  { %v315_v58 = vadd.f32 %v314_v57, %v93_v56  ;;  %v488_v57 = vld [vmem:[#allocation3 + $0x30] sm:$0xff] }
 0x176   :  { %2578 = vtanh.f32 %v315_v58 }
 0x180   :  { %v2579_v2 = vpop.eup %2578 }
 0x181   :  { %v318_v3 = vmul.f32 %v2579_v2, %v317_v62 }
 0x183   :  { %v3037_v8 = vadd.f32 %v319_v7, %v318_v3 }
 0x185   :  { %390 = vmatmul.mubr.f32.vlgmr.msra.gmra.mrb[2].mxu0 %v3037_v8  ;;  %1838 = vmatmul.mubr.f32.vlgmr.msra.gmra.mrb[2].mxu1 %v3037_v8 }
 0x186   :  { %2200 = vmatpush1.bf16.msra.mxu0 %v2912_v9  ;;  %2231 = vmatpush3.bf16.msra.mxu1 %v2929_v29 }
 0x187   :  { %2202 = vmatprep.subr.bf16.mxu0 %v2914_v10  ;;  %2232 = vmatprep.subr.bf16.mxu1 %v2799_v0 }
 0x188   :  { %555 = vmatprep.mubr.f32.mxu0 %v2800_v1  ;;  %1872 = vmatprep.mubr.msk.f32.mxu1 %vm2801_vm0, %v2800_v1 }
 0x18a   :  { %2204 = vmatpush1.bf16.msra.mxu0 %v2918_v15  ;;  %2234 = vmatpush3.bf16.msra.mxu1 %v2938_v37 }
 0x18b   :  { %2206 = vmatprep.subr.bf16.mxu0 %v2921_v16  ;;  %2235 = vmatprep.subr.bf16.mxu1 %v2799_v0 }
 0x18e   :  { %2208 = vmatpush1.bf16.msra.mxu0 %v2924_v21  ;;  %2237 = vmatpush3.bf16.msra.mxu1 %v2948_v46 }
 0x18f   :  { %2210 = vmatprep.subr.bf16.mxu0 %v2927_v22  ;;  %2238 = vmatprep.subr.bf16.mxu1 %v2799_v0 }
 0x192   :  { %2212 = vmatpush1.bf16.msra.mxu0 %v2932_v32  ;;  %2240 = vmatpush3.bf16.msra.mxu1 %v2958_v55 }
 0x193   :  { %2214 = vmatprep.subr.bf16.mxu0 %v2935_v33  ;;  %2241 = vmatprep.subr.bf16.mxu1 %v2799_v0 }
 0x196   :  { %2216 = vmatpush1.bf16.msra.mxu0 %v2942_v41  ;;  %2243 = vmatpush3.bf16.msra.mxu1 %v2968_v63 }
 0x197   :  { %2218 = vmatprep.subr.bf16.mxu0 %v2945_v42  ;;  %2244 = vmatprep.subr.bf16.mxu1 %v2799_v0 }
 0x19a   :  { %2220 = vmatpush1.bf16.msra.mxu0 %v2952_v50  ;;  %2246 = vmatpush3.bf16.msra.mxu1 %v2976_v6 }
 0x19b   :  { %2222 = vmatprep.subr.bf16.mxu0 %v2955_v51  ;;  %2247 = vmatprep.subr.bf16.mxu1 %v2799_v0 }
 0x19e   :  { %2224 = vmatpush1.bf16.msra.mxu0 %v2962_v59  ;;  %2249 = vmatpush3.bf16.msra.mxu1 %v2981_v11 }
 0x19f   :  { %2226 = vmatprep.subr.bf16.mxu0 %v2965_v60  ;;  %2250 = vmatprep.subr.bf16.mxu1 %v2799_v0 }
 0x1a2   :  { %2228 = vmatpush1.bf16.msra.mxu0 %v2972_v4  ;;  %2252 = vmatpush3.bf16.msra.mxu1 %v2989_v14 }
 0x1a3   :  { %2254 = vmatprep.subr.bf16.mxu0 %v2910_v5  ;;  %2285 = vmatprep.subr.bf16.mxu1 %v2799_v0 }
 0x258   :  { %v391_v13 = vpop.f32.mrb[2].mxu0  ;;  %v462_v17 = vpop.f32.mrb[2].mxu1 }
 0x259   :  { %v392_v18 = vadd.f32 %v391_v13, %v3028_v24  ;;  %v393_v19 = vpop.f32.mrb[3].mxu0  ;;  %v1839_v20 = vpop.f32.mrb[3].mxu1  ;;  %v463_v39 = vadd.f32 %v462_v17, %v3034_v48 }
 0x25a   :  { %v394_v23 = vadd.f32 %v393_v19, %v3030_v25 }
 0x25b   :  { %v466_v26 = vadd.f32 %v392_v18, %v322_v12  ;;  %v489_v12 = vld [vmem:[#allocation3 + $0x38] sm:$0xff] }
 0x25c   :  { %v473_v30 = vadd.f32 %v394_v23, %v323_v27 }
 0x25d   :  { %v1602_v28 = vmul.f32 -1.442695, %v466_v26 }
 0x25e   :  { %v1603_v31 = vmul.f32 -1.442695, %v473_v30  ;;  %v490_v30 = vld [vmem:[#allocation3 + $0x40] sm:$0xff] }
 0x25f   :  { %2580 = vpow2.f32 %v1602_v28 }
 0x260   :  { %2582 = vpow2.f32 %v1603_v31 }
 0x269   :  { %v2581_v34 = vpop.eup %2580 }
 0x26a   :  { %v470_v35 = vadd.f32 1.0, %v2581_v34  ;;  %v2583_v36 = vpop.eup %2582 }
 0x26b   :  { %v477_v38 = vadd.f32 1.0, %v2583_v36 }
 0x26c   :  { %2584 = vrcp.f32 %v470_v35 }
 0x26d   :  { %2586 = vrcp.f32 %v477_v38 }
 0x276   :  { %v2585_v40 = vpop.eup %2584 }
 0x277   :  { %v480_v44 = vmul.f32 %v2585_v40, %v463_v39  ;;  %v2587_v47 = vpop.eup %2586 }
 0x278   :  { %v483_v49 = vsub.f32 1.0, %v2587_v47  ;;  %v485_v54 = vmul.f32 %v2587_v47, %v3037_v8 }
 0x279   :  { %v481_v45 = vadd.f32 %v480_v44, %v324_v43  ;;  %v654_v44 = vld [vmem:[#allocation3 + $0x48] sm:$0xff] }
 0x27b   :  { %2588 = vtanh.f32 %v481_v45 }
 0x285   :  { %v2589_v52 = vpop.eup %2588 }
 0x286   :  { %v484_v53 = vmul.f32 %v2589_v52, %v483_v49 }
 0x288   :  { %v3080_v56 = vadd.f32 %v485_v54, %v484_v53 }
 0x28a   :  { %556 = vmatmul.mubr.f32.vlgmr.msra.gmra.mrb[4].mxu0 %v3080_v56  ;;  %1873 = vmatmul.mubr.f32.vlgmr.msra.gmra.mrb[4].mxu1 %v3080_v56 }
 0x28b   :  { %2256 = vmatpush1.bf16.msra.mxu0 %v2912_v9  ;;  %2287 = vmatpush3.bf16.msra.mxu1 %v2929_v29 }
 0x28c   :  { %2258 = vmatprep.subr.bf16.mxu0 %v2914_v10  ;;  %2288 = vmatprep.subr.bf16.mxu1 %v2799_v0 }
 0x28d   :  { %721 = vmatprep.mubr.f32.mxu0 %v2800_v1  ;;  %1907 = vmatprep.mubr.msk.f32.mxu1 %vm2801_vm0, %v2800_v1 }
 0x28f   :  { %2260 = vmatpush1.bf16.msra.mxu0 %v2918_v15  ;;  %2290 = vmatpush3.bf16.msra.mxu1 %v2938_v37 }
 0x290   :  { %2262 = vmatprep.subr.bf16.mxu0 %v2921_v16  ;;  %2291 = vmatprep.subr.bf16.mxu1 %v2799_v0 }
 0x293   :  { %2264 = vmatpush1.bf16.msra.mxu0 %v2924_v21  ;;  %2293 = vmatpush3.bf16.msra.mxu1 %v2948_v46 }
 0x294   :  { %2266 = vmatprep.subr.bf16.mxu0 %v2927_v22  ;;  %2294 = vmatprep.subr.bf16.mxu1 %v2799_v0 }
 0x297   :  { %2268 = vmatpush1.bf16.msra.mxu0 %v2932_v32  ;;  %2296 = vmatpush3.bf16.msra.mxu1 %v2958_v55 }
 0x298   :  { %2270 = vmatprep.subr.bf16.mxu0 %v2935_v33  ;;  %2297 = vmatprep.subr.bf16.mxu1 %v2799_v0 }
 0x29b   :  { %2272 = vmatpush1.bf16.msra.mxu0 %v2942_v41  ;;  %2299 = vmatpush3.bf16.msra.mxu1 %v2968_v63 }
 0x29c   :  { %2274 = vmatprep.subr.bf16.mxu0 %v2945_v42  ;;  %2300 = vmatprep.subr.bf16.mxu1 %v2799_v0 }
 0x29f   :  { %2276 = vmatpush1.bf16.msra.mxu0 %v2952_v50  ;;  %2302 = vmatpush3.bf16.msra.mxu1 %v2976_v6 }
 0x2a0   :  { %2278 = vmatprep.subr.bf16.mxu0 %v2955_v51  ;;  %2303 = vmatprep.subr.bf16.mxu1 %v2799_v0 }
 0x2a3   :  { %2280 = vmatpush1.bf16.msra.mxu0 %v2962_v59  ;;  %2305 = vmatpush3.bf16.msra.mxu1 %v2981_v11 }
 0x2a4   :  { %2282 = vmatprep.subr.bf16.mxu0 %v2965_v60  ;;  %2306 = vmatprep.subr.bf16.mxu1 %v2799_v0 }
 0x2a7   :  { %2284 = vmatpush1.bf16.msra.mxu0 %v2972_v4  ;;  %2308 = vmatpush3.bf16.msra.mxu1 %v2989_v14 }
 0x2a8   :  { %2310 = vmatprep.subr.bf16.mxu0 %v2910_v5  ;;  %2341 = vmatprep.subr.bf16.mxu1 %v2799_v0 }
 0x35d   :  { %v557_v58 = vpop.f32.mrb[4].mxu0  ;;  %v628_v61 = vpop.f32.mrb[4].mxu1 }
 0x35e   :  { %v558_v62 = vadd.f32 %v557_v58, %v3028_v24  ;;  %v559_v2 = vpop.f32.mrb[5].mxu0  ;;  %v1874_v3 = vpop.f32.mrb[5].mxu1  ;;  %v629_v27 = vadd.f32 %v628_v61, %v3034_v48 }
 0x35f   :  { %v560_v7 = vadd.f32 %v559_v2, %v3030_v25 }
 0x360   :  { %v632_v8 = vadd.f32 %v558_v62, %v488_v57  ;;  %v655_v57 = vld [vmem:[#allocation3 + $0x50] sm:$0xff] }
 0x361   :  { %v639_v17 = vadd.f32 %v560_v7, %v489_v12 }
 0x362   :  { %v1604_v13 = vmul.f32 -1.442695, %v632_v8 }
 0x363   :  { %v1605_v18 = vmul.f32 -1.442695, %v639_v17  ;;  %v656_v17 = vld [vmem:[#allocation3 + $0x58] sm:$0xff] }
 0x364   :  { %2590 = vpow2.f32 %v1604_v13 }
 0x365   :  { %2592 = vpow2.f32 %v1605_v18 }
 0x36e   :  { %v2591_v19 = vpop.eup %2590 }
 0x36f   :  { %v636_v20 = vadd.f32 1.0, %v2591_v19  ;;  %v2593_v23 = vpop.eup %2592 }
 0x370   :  { %v643_v26 = vadd.f32 1.0, %v2593_v23 }
 0x371   :  { %2594 = vrcp.f32 %v636_v20 }
 0x372   :  { %2596 = vrcp.f32 %v643_v26 }
 0x37b   :  { %v2595_v28 = vpop.eup %2594 }
 0x37c   :  { %v646_v31 = vmul.f32 %v2595_v28, %v629_v27  ;;  %v2597_v35 = vpop.eup %2596 }
 0x37d   :  { %v649_v36 = vsub.f32 1.0, %v2597_v35  ;;  %v651_v40 = vmul.f32 %v2597_v35, %v3080_v56 }
 0x37e   :  { %v647_v34 = vadd.f32 %v646_v31, %v490_v30  ;;  %v820_v31 = vld [vmem:[#allocation3 + $0x60] sm:$0xff] }
 0x380   :  { %2598 = vtanh.f32 %v647_v34 }
 0x38a   :  { %v2599_v38 = vpop.eup %2598 }
 0x38b   :  { %v650_v39 = vmul.f32 %v2599_v38, %v649_v36 }
 0x38d   :  { %v3123_v43 = vadd.f32 %v651_v40, %v650_v39 }
 0x38f   :  { %722 = vmatmul.mubr.f32.vlgmr.msra.gmra.mrb[6].mxu0 %v3123_v43  ;;  %1908 = vmatmul.mubr.f32.vlgmr.msra.gmra.mrb[6].mxu1 %v3123_v43 }
 0x390   :  { %2312 = vmatpush1.bf16.msra.mxu0 %v2912_v9  ;;  %2343 = vmatpush3.bf16.msra.mxu1 %v2929_v29 }
 0x391   :  { %2314 = vmatprep.subr.bf16.mxu0 %v2914_v10  ;;  %2344 = vmatprep.subr.bf16.mxu1 %v2799_v0 }
 0x392   :  { %887 = vmatprep.mubr.f32.mxu0 %v2800_v1  ;;  %1942 = vmatprep.mubr.msk.f32.mxu1 %vm2801_vm0, %v2800_v1 }
 0x394   :  { %2316 = vmatpush1.bf16.msra.mxu0 %v2918_v15  ;;  %2346 = vmatpush3.bf16.msra.mxu1 %v2938_v37 }
 0x395   :  { %2318 = vmatprep.subr.bf16.mxu0 %v2921_v16  ;;  %2347 = vmatprep.subr.bf16.mxu1 %v2799_v0 }
 0x398   :  { %2320 = vmatpush1.bf16.msra.mxu0 %v2924_v21  ;;  %2349 = vmatpush3.bf16.msra.mxu1 %v2948_v46 }
 0x399   :  { %2322 = vmatprep.subr.bf16.mxu0 %v2927_v22  ;;  %2350 = vmatprep.subr.bf16.mxu1 %v2799_v0 }
 0x39c   :  { %2324 = vmatpush1.bf16.msra.mxu0 %v2932_v32  ;;  %2352 = vmatpush3.bf16.msra.mxu1 %v2958_v55 }
 0x39d   :  { %2326 = vmatprep.subr.bf16.mxu0 %v2935_v33  ;;  %2353 = vmatprep.subr.bf16.mxu1 %v2799_v0 }
 0x3a0   :  { %2328 = vmatpush1.bf16.msra.mxu0 %v2942_v41  ;;  %2355 = vmatpush3.bf16.msra.mxu1 %v2968_v63 }
 0x3a1   :  { %2330 = vmatprep.subr.bf16.mxu0 %v2945_v42  ;;  %2356 = vmatprep.subr.bf16.mxu1 %v2799_v0 }
 0x3a4   :  { %2332 = vmatpush1.bf16.msra.mxu0 %v2952_v50  ;;  %2358 = vmatpush3.bf16.msra.mxu1 %v2976_v6 }
 0x3a5   :  { %2334 = vmatprep.subr.bf16.mxu0 %v2955_v51  ;;  %2359 = vmatprep.subr.bf16.mxu1 %v2799_v0 }
 0x3a8   :  { %2336 = vmatpush1.bf16.msra.mxu0 %v2962_v59  ;;  %2361 = vmatpush3.bf16.msra.mxu1 %v2981_v11 }
 0x3a9   :  { %2338 = vmatprep.subr.bf16.mxu0 %v2965_v60  ;;  %2362 = vmatprep.subr.bf16.mxu1 %v2799_v0 }
 0x3ac   :  { %2340 = vmatpush1.bf16.msra.mxu0 %v2972_v4  ;;  %2364 = vmatpush3.bf16.msra.mxu1 %v2989_v14 }
 0x3ad   :  { %2366 = vmatprep.subr.bf16.mxu0 %v2910_v5  ;;  %2397 = vmatprep.subr.bf16.mxu1 %v2799_v0 }
 0x462   :  { %v723_v45 = vpop.f32.mrb[6].mxu0  ;;  %v794_v47 = vpop.f32.mrb[6].mxu1 }
 0x463   :  { %v724_v49 = vadd.f32 %v723_v45, %v3028_v24  ;;  %v725_v52 = vpop.f32.mrb[7].mxu0  ;;  %v1909_v53 = vpop.f32.mrb[7].mxu1  ;;  %v795_v12 = vadd.f32 %v794_v47, %v3034_v48 }
 0x464   :  { %v726_v54 = vadd.f32 %v725_v52, %v3030_v25 }
 0x465   :  { %v798_v56 = vadd.f32 %v724_v49, %v654_v44  ;;  %v821_v44 = vld [vmem:[#allocation3 + $0x68] sm:$0xff] }
 0x466   :  { %v805_v61 = vadd.f32 %v726_v54, %v655_v57 }
 0x467   :  { %v1606_v58 = vmul.f32 -1.442695, %v798_v56 }
 0x468   :  { %v1607_v62 = vmul.f32 -1.442695, %v805_v61  ;;  %v822_v61 = vld [vmem:[#allocation3 + $0x70] sm:$0xff] }
 0x469   :  { %2600 = vpow2.f32 %v1606_v58 }
 0x46a   :  { %2602 = vpow2.f32 %v1607_v62 }
 0x473   :  { %v2601_v2 = vpop.eup %2600 }
 0x474   :  { %v802_v3 = vadd.f32 1.0, %v2601_v2  ;;  %v2603_v7 = vpop.eup %2602 }
 0x475   :  { %v809_v8 = vadd.f32 1.0, %v2603_v7 }
 0x476   :  { %2604 = vrcp.f32 %v802_v3 }
 0x477   :  { %2606 = vrcp.f32 %v809_v8 }
 0x480   :  { %v2605_v13 = vpop.eup %2604 }
 0x481   :  { %v812_v18 = vmul.f32 %v2605_v13, %v795_v12  ;;  %v2607_v20 = vpop.eup %2606 }
 0x482   :  { %v815_v23 = vsub.f32 1.0, %v2607_v20  ;;  %v817_v28 = vmul.f32 %v2607_v20, %v3123_v43 }
 0x483   :  { %v813_v19 = vadd.f32 %v812_v18, %v656_v17  ;;  %v986_v18 = vld [vmem:[#allocation3 + $0x78] sm:$0xff] }
 0x485   :  { %2608 = vtanh.f32 %v813_v19 }
 0x48f   :  { %v2609_v26 = vpop.eup %2608 }
 0x490   :  { %v816_v27 = vmul.f32 %v2609_v26, %v815_v23 }
 0x492   :  { %v3166_v30 = vadd.f32 %v817_v28, %v816_v27 }
 0x494   :  { %888 = vmatmul.mubr.f32.vlgmr.msra.gmra.mrb[8].mxu0 %v3166_v30  ;;  %1943 = vmatmul.mubr.f32.vlgmr.msra.gmra.mrb[8].mxu1 %v3166_v30 }
 0x495   :  { %2368 = vmatpush1.bf16.msra.mxu0 %v2912_v9  ;;  %2399 = vmatpush3.bf16.msra.mxu1 %v2929_v29 }
 0x496   :  { %2370 = vmatprep.subr.bf16.mxu0 %v2914_v10  ;;  %2400 = vmatprep.subr.bf16.mxu1 %v2799_v0 }
 0x497   :  { %1053 = vmatprep.mubr.f32.mxu0 %v2800_v1  ;;  %1977 = vmatprep.mubr.msk.f32.mxu1 %vm2801_vm0, %v2800_v1 }
 0x499   :  { %2372 = vmatpush1.bf16.msra.mxu0 %v2918_v15  ;;  %2402 = vmatpush3.bf16.msra.mxu1 %v2938_v37 }
 0x49a   :  { %2374 = vmatprep.subr.bf16.mxu0 %v2921_v16  ;;  %2403 = vmatprep.subr.bf16.mxu1 %v2799_v0 }
 0x49d   :  { %2376 = vmatpush1.bf16.msra.mxu0 %v2924_v21  ;;  %2405 = vmatpush3.bf16.msra.mxu1 %v2948_v46 }
 0x49e   :  { %2378 = vmatprep.subr.bf16.mxu0 %v2927_v22  ;;  %2406 = vmatprep.subr.bf16.mxu1 %v2799_v0 }
 0x4a1   :  { %2380 = vmatpush1.bf16.msra.mxu0 %v2932_v32  ;;  %2408 = vmatpush3.bf16.msra.mxu1 %v2958_v55 }
 0x4a2   :  { %2382 = vmatprep.subr.bf16.mxu0 %v2935_v33  ;;  %2409 = vmatprep.subr.bf16.mxu1 %v2799_v0 }
 0x4a5   :  { %2384 = vmatpush1.bf16.msra.mxu0 %v2942_v41  ;;  %2411 = vmatpush3.bf16.msra.mxu1 %v2968_v63 }
 0x4a6   :  { %2386 = vmatprep.subr.bf16.mxu0 %v2945_v42  ;;  %2412 = vmatprep.subr.bf16.mxu1 %v2799_v0 }
 0x4a9   :  { %2388 = vmatpush1.bf16.msra.mxu0 %v2952_v50  ;;  %2414 = vmatpush3.bf16.msra.mxu1 %v2976_v6 }
 0x4aa   :  { %2390 = vmatprep.subr.bf16.mxu0 %v2955_v51  ;;  %2415 = vmatprep.subr.bf16.mxu1 %v2799_v0 }
 0x4ad   :  { %2392 = vmatpush1.bf16.msra.mxu0 %v2962_v59  ;;  %2417 = vmatpush3.bf16.msra.mxu1 %v2981_v11 }
 0x4ae   :  { %2394 = vmatprep.subr.bf16.mxu0 %v2965_v60  ;;  %2418 = vmatprep.subr.bf16.mxu1 %v2799_v0 }
 0x4b1   :  { %2396 = vmatpush1.bf16.msra.mxu0 %v2972_v4  ;;  %2420 = vmatpush3.bf16.msra.mxu1 %v2989_v14 }
 0x4b2   :  { %2422 = vmatprep.subr.bf16.mxu0 %v2910_v5  ;;  %2453 = vmatprep.subr.bf16.mxu1 %v2799_v0 }
 0x567   :  { %v889_v34 = vpop.f32.mrb[8].mxu0  ;;  %v960_v35 = vpop.f32.mrb[8].mxu1 }
 0x568   :  { %v890_v36 = vadd.f32 %v889_v34, %v3028_v24  ;;  %v891_v38 = vpop.f32.mrb[9].mxu0  ;;  %v1944_v39 = vpop.f32.mrb[9].mxu1  ;;  %v961_v57 = vadd.f32 %v960_v35, %v3034_v48 }
 0x569   :  { %v892_v40 = vadd.f32 %v891_v38, %v3030_v25 }
 0x56a   :  { %v964_v43 = vadd.f32 %v890_v36, %v820_v31  ;;  %v987_v31 = vld [vmem:[#allocation3 + $0x80] sm:$0xff] }
 0x56b   :  { %v971_v47 = vadd.f32 %v892_v40, %v821_v44 }
 0x56c   :  { %v1608_v45 = vmul.f32 -1.442695, %v964_v43 }
 0x56d   :  { %v1609_v49 = vmul.f32 -1.442695, %v971_v47 }
 0x56e   :  { %2610 = vpow2.f32 %v1608_v45  ;;  %v988_v45 = vld [vmem:[#allocation3 + $0x88] sm:$0xff] }
 0x56f   :  { %2612 = vpow2.f32 %v1609_v49 }
 0x578   :  { %v2611_v52 = vpop.eup %2610 }
 0x579   :  { %v968_v53 = vadd.f32 1.0, %v2611_v52  ;;  %v2613_v54 = vpop.eup %2612 }
 0x57a   :  { %v975_v56 = vadd.f32 1.0, %v2613_v54 }
 0x57b   :  { %2614 = vrcp.f32 %v968_v53 }
 0x57c   :  { %2616 = vrcp.f32 %v975_v56 }
 0x585   :  { %v2615_v58 = vpop.eup %2614 }
 0x586   :  { %v978_v62 = vmul.f32 %v2615_v58, %v961_v57  ;;  %v2617_v3 = vpop.eup %2616 }
 0x587   :  { %v981_v7 = vsub.f32 1.0, %v2617_v3  ;;  %v983_v13 = vmul.f32 %v2617_v3, %v3166_v30 }
 0x588   :  { %v979_v2 = vadd.f32 %v978_v62, %v822_v61 }
 0x58a   :  { %2618 = vtanh.f32 %v979_v2 }
 0x594   :  { %v2619_v8 = vpop.eup %2618 }
 0x595   :  { %v982_v12 = vmul.f32 %v2619_v8, %v981_v7  ;;  %v1488_v7 = vld [vmem:[#allocation9] sm:$0xff]  ;;  %v1489_v8 = vld [vmem:[#allocation9 + $0x8] sm:$0xff] }
 0x597   :  { %v3209_v17 = vadd.f32 %v983_v13, %v982_v12  ;;  %v2534_v12 = vpack.c.bf16 %v1489_v8, %v1488_v7  ;;  %v1490_v13 = vld [vmem:[#allocation9 + $0x10] sm:$0xff] }
 0x599   :  { %1054 = vmatmul.mubr.f32.vlgmr.msra.gmra.mrb[10].mxu0 %v3209_v17  ;;  %1978 = vmatmul.mubr.f32.vlgmr.msra.gmra.mrb[10].mxu1 %v3209_v17 }
 0x59a   :  { %2424 = vmatpush1.bf16.msra.mxu0 %v2912_v9  ;;  %2455 = vmatpush3.bf16.msra.mxu1 %v2929_v29 }
 0x59b   :  { %2426 = vmatprep.subr.bf16.mxu0 %v2914_v10  ;;  %2456 = vmatprep.subr.bf16.mxu1 %v2799_v0 }
 0x59c   :  { %1219 = vmatprep.mubr.f32.mxu0 %v2800_v1  ;;  %2012 = vmatprep.mubr.msk.f32.mxu1 %vm2801_vm0, %v2800_v1 }
 0x59e   :  { %2428 = vmatpush1.bf16.msra.mxu0 %v2918_v15  ;;  %2458 = vmatpush3.bf16.msra.mxu1 %v2938_v37 }
 0x59f   :  { %2430 = vmatprep.subr.bf16.mxu0 %v2921_v16  ;;  %2459 = vmatprep.subr.bf16.mxu1 %v2799_v0 }
 0x5a2   :  { %2432 = vmatpush1.bf16.msra.mxu0 %v2924_v21  ;;  %2461 = vmatpush3.bf16.msra.mxu1 %v2948_v46 }
 0x5a3   :  { %2434 = vmatprep.subr.bf16.mxu0 %v2927_v22  ;;  %2462 = vmatprep.subr.bf16.mxu1 %v2799_v0 }
 0x5a6   :  { %2436 = vmatpush1.bf16.msra.mxu0 %v2932_v32  ;;  %2464 = vmatpush3.bf16.msra.mxu1 %v2958_v55 }
 0x5a7   :  { %2438 = vmatprep.subr.bf16.mxu0 %v2935_v33  ;;  %2465 = vmatprep.subr.bf16.mxu1 %v2799_v0 }
 0x5aa   :  { %2440 = vmatpush1.bf16.msra.mxu0 %v2942_v41  ;;  %2467 = vmatpush3.bf16.msra.mxu1 %v2968_v63 }
 0x5ab   :  { %2442 = vmatprep.subr.bf16.mxu0 %v2945_v42  ;;  %2468 = vmatprep.subr.bf16.mxu1 %v2799_v0 }
 0x5ae   :  { %2444 = vmatpush1.bf16.msra.mxu0 %v2952_v50  ;;  %2470 = vmatpush3.bf16.msra.mxu1 %v2976_v6 }
 0x5af   :  { %2446 = vmatprep.subr.bf16.mxu0 %v2955_v51  ;;  %2471 = vmatprep.subr.bf16.mxu1 %v2799_v0 }
 0x5b2   :  { %2448 = vmatpush1.bf16.msra.mxu0 %v2962_v59  ;;  %2473 = vmatpush3.bf16.msra.mxu1 %v2981_v11 }
 0x5b3   :  { %2450 = vmatprep.subr.bf16.mxu0 %v2965_v60  ;;  %2474 = vmatprep.subr.bf16.mxu1 %v2799_v0 }
 0x5b6   :  { %2452 = vmatpush1.bf16.msra.mxu0 %v2972_v4  ;;  %2476 = vmatpush3.bf16.msra.mxu1 %v2989_v14 }
 0x5b7   :  { %2478 = vmatprep.subr.bf16.mxu0 %v2910_v5  ;;  %2509 = vmatprep.subr.bf16.mxu1 %v2799_v0 }
 0x66c   :  { %v1055_v19 = vpop.f32.mrb[10].mxu0  ;;  %v1126_v20 = vpop.f32.mrb[10].mxu1 }
 0x66d   :  { %v1056_v23 = vadd.f32 %v1055_v19, %v3028_v24  ;;  %v1057_v26 = vpop.f32.mrb[11].mxu0  ;;  %v1979_v27 = vpop.f32.mrb[11].mxu1  ;;  %v1127_v43 = vadd.f32 %v1126_v20, %v3034_v48  ;;  %v1492_v19 = vld [vmem:[#allocation9 + $0x20] sm:$0xff]  ;;  %v1493_v20 = vld [vmem:[#allocation9 + $0x28] sm:$0xff] }
 0x66e   :  { %v1058_v28 = vadd.f32 %v1057_v26, %v3030_v25  ;;  %v1494_v26 = vld [vmem:[#allocation9 + $0x30] sm:$0xff] }
 0x66f   :  { %v1130_v30 = vadd.f32 %v1056_v23, %v986_v18  ;;  %v2540_v23 = vpack.c.bf16 %v1493_v20, %v1492_v19 }
 0x670   :  { %v1137_v35 = vadd.f32 %v1058_v28, %v987_v31  ;;  %v1496_v28 = vld [vmem:[#allocation9 + $0x40] sm:$0xff] }
 0x671   :  { %v1610_v34 = vmul.f32 -1.442695, %v1130_v30  ;;  %v1497_v30 = vld [vmem:[#allocation9 + $0x48] sm:$0xff] }
 0x672   :  { %v1611_v36 = vmul.f32 -1.442695, %v1137_v35  ;;  %v2546_v31 = vpack.c.bf16 %v1497_v30, %v1496_v28  ;;  %v1499_v35 = vld [vmem:[#allocation9 + $0x58] sm:$0xff] }
 0x673   :  { %2620 = vpow2.f32 %v1610_v34  ;;  %v1498_v34 = vld [vmem:[#allocation9 + $0x50] sm:$0xff] }
 0x674   :  { %2622 = vpow2.f32 %v1611_v36  ;;  %v2549_v36 = vpack.c.bf16 %v1499_v35, %v1498_v34 }
 0x67d   :  { %v2621_v38 = vpop.eup %2620 }
 0x67e   :  { %v1134_v5 = vadd.f32 1.0, %v2621_v38  ;;  %v2623_v39 = vpop.eup %2622  ;;  %v1500_v38 = vld [vmem:[#allocation9 + $0x60] sm:$0xff] }
 0x67f   :  { %v1141_v40 = vadd.f32 1.0, %v2623_v39 }
 0x680   :  { %2624 = vrcp.f32 %v1134_v5  ;;  %v1501_v5 = vld [vmem:[#allocation9 + $0x68] sm:$0xff] }
 0x681   :  { %2626 = vrcp.f32 %v1141_v40  ;;  %v2552_v39 = vpack.c.bf16 %v1501_v5, %v1500_v38  ;;  %v1502_v40 = vld [vmem:[#allocation9 + $0x70] sm:$0xff] }
 0x68a   :  { %v2625_v44 = vpop.eup %2624 }
 0x68b   :  { %v1144_v47 = vmul.f32 %v2625_v44, %v1127_v43  ;;  %v2627_v52 = vpop.eup %2626  ;;  %v1503_v43 = vld [vmem:[#allocation9 + $0x78] sm:$0xff] }
 0x68c   :  { %v1147_v53 = vsub.f32 1.0, %v2627_v52  ;;  %v1149_v57 = vmul.f32 %v2627_v52, %v3209_v17  ;;  %v1491_v17 = vld [vmem:[#allocation9 + $0x18] sm:$0xff]  ;;  %v2555_v44 = vpack.c.bf16 %v1503_v43, %v1502_v40 }
 0x68d   :  { %v1145_v49 = vadd.f32 %v1144_v47, %v988_v45  ;;  %v2537_v18 = vpack.c.bf16 %v1491_v17, %v1490_v13  ;;  %v1318_v45 = vld [vmem:[#allocation3 + $0xa8] sm:$0xff] }
 0x68f   :  { %2628 = vtanh.f32 %v1145_v49 }
 0x699   :  { %v2629_v54 = vpop.eup %2628 }
 0x69a   :  { %v1148_v56 = vmul.f32 %v2629_v54, %v1147_v53 }
 0x69c   :  { %v3252_v58 = vadd.f32 %v1149_v57, %v1148_v56 }
 0x69e   :  { %1220 = vmatmul.mubr.f32.vlgmr.msra.gmra.mrb[12].mxu0 %v3252_v58  ;;  %2013 = vmatmul.mubr.f32.vlgmr.msra.gmra.mrb[12].mxu1 %v3252_v58 }
 0x69f   :  { %2480 = vmatpush1.bf16.msra.mxu0 %v2912_v9  ;;  %2511 = vmatpush3.bf16.msra.mxu1 %v2929_v29  ;;  %v1152_v9 = vld [vmem:[#allocation3 + $0x90] sm:$0xff] }
 0x6a0   :  { %2482 = vmatprep.subr.bf16.mxu0 %v2914_v10  ;;  %2512 = vmatprep.subr.bf16.mxu1 %v2799_v0 }
 0x6a1   :  { %1385 = vmatprep.mubr.f32.mxu0 %v2800_v1  ;;  %2047 = vmatprep.mubr.msk.f32.mxu1 %vm2801_vm0, %v2800_v1 }
 0x6a3   :  { %2484 = vmatpush1.bf16.msra.mxu0 %v2918_v15  ;;  %2514 = vmatpush3.bf16.msra.mxu1 %v2938_v37 }
 0x6a4   :  { %2486 = vmatprep.subr.bf16.mxu0 %v2921_v16  ;;  %2515 = vmatprep.subr.bf16.mxu1 %v2799_v0 }
 0x6a7   :  { %2488 = vmatpush1.bf16.msra.mxu0 %v2924_v21  ;;  %2517 = vmatpush3.bf16.msra.mxu1 %v2948_v46 }
 0x6a8   :  { %2490 = vmatprep.subr.bf16.mxu0 %v2927_v22  ;;  %2518 = vmatprep.subr.bf16.mxu1 %v2799_v0 }
 0x6ab   :  { %2492 = vmatpush1.bf16.msra.mxu0 %v2932_v32  ;;  %2520 = vmatpush3.bf16.msra.mxu1 %v2958_v55 }
 0x6ac   :  { %2494 = vmatprep.subr.bf16.mxu0 %v2935_v33  ;;  %2521 = vmatprep.subr.bf16.mxu1 %v2799_v0  ;;  %v1153_v33 = vld [vmem:[#allocation3 + $0x98] sm:$0xff] }
 0x6af   :  { %2496 = vmatpush1.bf16.msra.mxu0 %v2942_v41  ;;  %2523 = vmatpush3.bf16.msra.mxu1 %v2968_v63  ;;  %v1154_v63 = vld [vmem:[#allocation3 + $0xa0] sm:$0xff] }
 0x6b0   :  { %2498 = vmatprep.subr.bf16.mxu0 %v2945_v42  ;;  %2524 = vmatprep.subr.bf16.mxu1 %v2799_v0 }
 0x6b3   :  { %2500 = vmatpush1.bf16.msra.mxu0 %v2952_v50  ;;  %2526 = vmatpush3.bf16.msra.mxu1 %v2976_v6 }
 0x6b4   :  { %2502 = vmatprep.subr.bf16.mxu0 %v2955_v51  ;;  %2527 = vmatprep.subr.bf16.mxu1 %v2799_v0 }
 0x6b7   :  { %2504 = vmatpush1.bf16.msra.mxu0 %v2962_v59  ;;  %2529 = vmatpush3.bf16.msra.mxu1 %v2981_v11 }
 0x6b8   :  { %2506 = vmatprep.subr.bf16.mxu0 %v2965_v60  ;;  %2530 = vmatprep.subr.bf16.mxu1 %v2799_v0 }
 0x6bb   :  { %2508 = vmatpush1.bf16.msra.mxu0 %v2972_v4  ;;  %2532 = vmatpush3.bf16.msra.mxu1 %v2989_v14 }
 0x6bc   :  { %2533 = vmatprep.subr.bf16.mxu0 %v2799_v0 }
 0x771   :  { %v1221_v10 = vpop.f32.mrb[12].mxu0  ;;  %v1292_v15 = vpop.f32.mrb[12].mxu1 }
 0x772   :  { %v1222_v16 = vadd.f32 %v1221_v10, %v3028_v24  ;;  %v1223_v21 = vpop.f32.mrb[13].mxu0  ;;  %v2014_v22 = vpop.f32.mrb[13].mxu1  ;;  %v1293_v59 = vadd.f32 %v1292_v15, %v3034_v48 }
 0x773   :  { %v1224_v29 = vadd.f32 %v1223_v21, %v3030_v25 }
 0x774   :  { %v1296_v32 = vadd.f32 %v1222_v16, %v1152_v9 }
 0x775   :  { %v1303_v41 = vadd.f32 %v1224_v29, %v1153_v33 }
 0x776   :  { %v1612_v37 = vmul.f32 -1.442695, %v1296_v32 }
 0x777   :  { %v1613_v42 = vmul.f32 -1.442695, %v1303_v41 }
 0x778   :  { %2630 = vpow2.f32 %v1612_v37 }
 0x779   :  { %2632 = vpow2.f32 %v1613_v42 }
 0x782   :  { %v2631_v46 = vpop.eup %2630 }
 0x783   :  { %v1300_v50 = vadd.f32 1.0, %v2631_v46  ;;  %v2633_v51 = vpop.eup %2632 }
 0x784   :  { %v1307_v55 = vadd.f32 1.0, %v2633_v51 }
 0x785   :  { %2634 = vrcp.f32 %v1300_v50 }
 0x786   :  { %2636 = vrcp.f32 %v1307_v55  ;;  %v1616_v55 = vld [vmem:[#allocation11] ss:$0 sm:$0xff] }
 0x78f   :  { %v2635_v60 = vpop.eup %2634 }
 0x790   :  { %v1310_v4 = vmul.f32 %v2635_v60, %v1293_v59  ;;  %v2637_v11 = vpop.eup %2636 }
 0x791   :  { %v1313_v14 = vsub.f32 1.0, %v2637_v11  ;;  %v1315_v2 = vmul.f32 %v2637_v11, %v3252_v58  ;;  %v1319_v58 = vld [vmem:[#allocation3 + $0xb0] sm:$0xff] }
 0x792   :  { %v1311_v6 = vadd.f32 %v1310_v4, %v1154_v63 }
 0x794   :  { %2638 = vtanh.f32 %v1311_v6 }
 0x79e   :  { %v2639_v61 = vpop.eup %2638 }
 0x79f   :  { %v1314_v62 = vmul.f32 %v2639_v61, %v1313_v14 }
 0x7a1   :  { %v3294_v3 = vadd.f32 %v1315_v2, %v1314_v62 }
 0x7a3   :  { %1386 = vmatmul.mubr.f32.vlgmr.msra.gmra.mrb[14].mxu0 %v3294_v3  ;;  %2048 = vmatmul.mubr.f32.vlgmr.msra.gmra.mrb[14].mxu1 %v3294_v3 }
 0x7a4   :  { %2082 = vmatprep.mubr.msk.f32.mxu0 %vm2801_vm0, %v2800_v1  ;;  %2535 = vmatpush3.bf16.msra.mxu0 %v2534_v12  ;;  %v1495_v1 = vld [vmem:[#allocation9 + $0x38] sm:$0xff] }
 0x7a5   :  { %2536 = vmatprep.subr.bf16.mxu0 %v2799_v0  ;;  %v2543_v27 = vpack.c.bf16 %v1495_v1, %v1494_v26 }
 0x7a8   :  { %2538 = vmatpush3.bf16.msra.mxu0 %v2537_v18 }
 0x7a9   :  { %2539 = vmatprep.subr.bf16.mxu0 %v2799_v0 }
 0x7ac   :  { %2541 = vmatpush3.bf16.msra.mxu0 %v2540_v23 }
 0x7ad   :  { %2542 = vmatprep.subr.bf16.mxu0 %v2799_v0 }
 0x7b0   :  { %2544 = vmatpush3.bf16.msra.mxu0 %v2543_v27 }
 0x7b1   :  { %2545 = vmatprep.subr.bf16.mxu0 %v2799_v0 }
 0x7b4   :  { %2547 = vmatpush3.bf16.msra.mxu0 %v2546_v31 }
 0x7b5   :  { %2548 = vmatprep.subr.bf16.mxu0 %v2799_v0 }
 0x7b8   :  { %2550 = vmatpush3.bf16.msra.mxu0 %v2549_v36 }
 0x7b9   :  { %2551 = vmatprep.subr.bf16.mxu0 %v2799_v0 }
 0x7bc   :  { %2553 = vmatpush3.bf16.msra.mxu0 %v2552_v39 }
 0x7bd   :  { %2554 = vmatprep.subr.bf16.mxu0 %v2799_v0 }
 0x7c0   :  { %2556 = vmatpush3.bf16.msra.mxu0 %v2555_v44 }
 0x876   :  { %v1387_v47 = vpop.f32.mrb[14].mxu0  ;;  %v1458_v49 = vpop.f32.mrb[14].mxu1 }
 0x877   :  { %v1388_v52 = vadd.f32 %v1387_v47, %v3028_v24  ;;  %v1389_v53 = vpop.f32.mrb[15].mxu0  ;;  %v2049_v54 = vpop.f32.mrb[15].mxu1  ;;  %v1459_v29 = vadd.f32 %v1458_v49, %v3034_v48  ;;  %v1320_v24 = vld [vmem:[#allocation3 + $0xb8] sm:$0xff] }
 0x878   :  { %v1390_v56 = vadd.f32 %v1389_v53, %v3030_v25 }
 0x879   :  { %v1462_v57 = vadd.f32 %v1388_v52, %v1318_v45 }
 0x87a   :  { %v1469_v10 = vadd.f32 %v1390_v56, %v1319_v58 }
 0x87b   :  { %v1614_v9 = vmul.f32 -1.442695, %v1462_v57 }
 0x87c   :  { %v1615_v15 = vmul.f32 -1.442695, %v1469_v10 }
 0x87d   :  { %2640 = vpow2.f32 %v1614_v9 }
 0x87e   :  { %2642 = vpow2.f32 %v1615_v15 }
 0x887   :  { %v2641_v16 = vpop.eup %2640 }
 0x888   :  { %v1466_v21 = vadd.f32 1.0, %v2641_v16  ;;  %v2643_v0 = vpop.eup %2642 }
 0x889   :  { %v1473_v22 = vadd.f32 1.0, %v2643_v0 }
 0x88a   :  { %2644 = vrcp.f32 %v1466_v21 }
 0x88b   :  { %2646 = vrcp.f32 %v1473_v22 }
 0x894   :  { %v2645_v32 = vpop.eup %2644 }
 0x895   :  { %v1476_v33 = vmul.f32 %v2645_v32, %v1459_v29  ;;  %v2647_v25 = vpop.eup %2646 }
 0x896   :  { %v1479_v41 = vsub.f32 1.0, %v2647_v25  ;;  %v1481_v50 = vmul.f32 %v2647_v25, %v3294_v3 }
 0x897   :  { %v1477_v37 = vadd.f32 %v1476_v33, %v1320_v24 }
 0x899   :  { %2648 = vtanh.f32 %v1477_v37 }
 0x8a3   :  { %v2649_v42 = vpop.eup %2648 }
 0x8a4   :  { %v1480_v46 = vmul.f32 %v2649_v42, %v1479_v41 }
 0x8a6   :  { %v1482_v51 = vadd.f32 %v1481_v50, %v1480_v46 }
 0x8a8   :  { %2083 = vmatmul.mubr.f32.vlgmr.msra.gmra.mrb[16].mxu0 %v1482_v51 }
 0x97b   :  { %v1577_v59 = vpop.f32.mrb[16].mxu0 }
 0x97c   :  { %v1578_v48 = vadd.f32 %v1616_v55, %v1577_v59  ;;  %v2084_v60 = vpop.f32.mrb[17].mxu0 }
 0x97e   :  { %1582 = vst.msk [vmem:[#allocation12] sm:$0xff] %vm1581_vm1, %v1578_v48 }
 0x97f   :  { %2771 = shalt.err (!%p2768_p2)
}
 0x980   :  { %s2772_s9 = scalar_lea.hbm %s3328_s5, 128 }
 0x981   :  { %p2773_p3 = scmp.ne.s32.totalorder %s3328_s5, %s2772_s9  ;;  %p2776_p4 = scmp.lt.u32.totalorder %s2772_s9, %s3328_s5 }
 0x983   :  { %p2778_p5 = pnand %p2776_p4, %p2773_p3 }
 0x985   :  { %2781 = shalt.err (!%p2778_p5)
}
 0x986   :  { %1592 = dma.vmem_to_hbm [thread:$0]  %s1590_s7, 128, %s3328_s5, [#allocation5]  }
 0x987   :  { %2788 = dma.done.wait [#allocation5], 128  }
 0x988   :  { %2789 = vsyncadd [#allocation5], 4294967168 }
 0x989   :  { %1596 = vsyncpa [#allocation4], 1 }
 0x98a   :  { %1597 = vsyncpa [#allocation7], 1 }
 0x98b   :  { %1598 = vsyncpa [#allocation10], 1 }
 0x98c   :  { %1599 = vsyncpa [#allocation5], 1 }

// kernel: _lambda_.5
= control target key start
LH: loop header
LB: loop body
LE: loop exit
PB: predicated region body
PF: predicated region fallthrough
CT: control target
= control target key end

     0   :  { %8 = vsyncpa [#allocation4], 0  ;;  %s3536_s0 = inlined_call_operand.hbm [shape: f32[8,8,384], index: 0, kind: input, shape index: {}]   ;;  %s3537_s1 = inlined_call_operand.hbm [shape: f32[128,384], index: 1, kind: input, shape index: {}]   ;;  %s3538_s2 = inlined_call_operand.hbm [shape: f32[1,384], index: 2, kind: input, shape index: {}]   ;;  %s3539_s3 = inlined_call_operand.hbm [shape: f32[8,8,128], index: 3, kind: output, shape index: {}]  }
   0x1   :  { %9 = vsyncpa [#allocation7], 0 }
   0x2   :  { %10 = vsyncpa [#allocation5], 0  ;;  %s3006_s12 = smov [#allocation6]   ;;  %s3007_s14 = smov [#allocation3]  }
   0x3   :  { %s28_s13 = sshll.u32 %s3006_s12, 4  ;;  %s16_s15 = sshll.u32 %s3007_s14, 4  ;;  %s29_s13 = int_to_ptr.vmem [resolvable:$true] %s28_s13  ;;  %s3037_s15 = int_to_ptr.vmem [resolvable:$true] %s16_s15 }
   0x4   :  { %s2912_s18 = scalar_lea.hbm %s3537_s1, 6144 }
   0x5   :  { %p2913_p0 = scmp.ne.s32.totalorder %s3537_s1, %s2912_s18  ;;  %p2916_p1 = scmp.lt.u32.totalorder %s2912_s18, %s3537_s1 }
   0x7   :  { %p2918_p2 = pnand %p2916_p1, %p2913_p0 }
   0x9   :  { %2921 = shalt.err (!%p2918_p2)
}
   0xa   :  { %s2922_s23 = scalar_lea.vmem %s29_s13, 6144  ;;  %p2927_p4 = scmp.lt.s32.totalorder %s29_s13, %s29_s13 }
   0xb   :  { %p2923_p3 = scmp.ne.s32.totalorder %s29_s13, %s2922_s23  ;;  %p2928_p5 = scmp.lt.s32.totalorder %s2922_s23, %s2922_s23 }
   0xd   :  { %p2929_p6 = por %p2928_p5, %p2927_p4 }
   0xf   :  { %p2930_p7 = pnand %p2929_p6, %p2923_p3 }
  0x11   :  { %2933 = shalt.err (!%p2930_p7)
}
  0x12   :  { %s3008_s24 = smov 384   ;;  %s3009_s25 = smov 24  }
  0x13   :  { %34 = dma.hbm_to_vmem [thread:$0]  %s3537_s1, 6144, %s29_s13, [#allocation7], %s3008_s24, %s3008_s24, %s3009_s25  }
  0x14   :  { %s2934_s30 = scalar_lea.hbm %s3536_s0, 3072 }
  0x15   :  { %p2935_p8 = scmp.ne.s32.totalorder %s3536_s0, %s2934_s30  ;;  %p2938_p9 = scmp.lt.u32.totalorder %s2934_s30, %s3536_s0 }
  0x17   :  { %p2940_p10 = pnand %p2938_p9, %p2935_p8 }
  0x19   :  { %2943 = shalt.err (!%p2940_p10)
}
  0x1a   :  { %s2944_s8 = scalar_lea.vmem %s3037_s15, 3072  ;;  %p2949_p12 = scmp.lt.s32.totalorder %s3037_s15, %s3037_s15 }
  0x1b   :  { %p2945_p11 = scmp.ne.s32.totalorder %s3037_s15, %s2944_s8  ;;  %p2950_p13 = scmp.lt.s32.totalorder %s2944_s8, %s2944_s8 }
  0x1d   :  { %p2951_p0 = por %p2950_p13, %p2949_p12 }
  0x1f   :  { %p2952_p1 = pnand %p2951_p0, %p2945_p11 }
  0x21   :  { %2955 = shalt.err (!%p2952_p1)
}
  0x22   :  { %22 = dma.hbm_to_vmem [thread:$0]  %s3536_s0, 3072, %s3037_s15, [#allocation4], %s3008_s24, %s3008_s24, %s3009_s25  }
  0x23   :  { %s3010_s10 = smov [#allocation8]   ;;  %s2956_s14 = scalar_lea.hbm %s3538_s2, 48 }
  0x24   :  { %s41_s11 = sshll.u32 %s3010_s10, 4  ;;  %p2957_p2 = scmp.ne.s32.totalorder %s3538_s2, %s2956_s14  ;;  %s42_s11 = int_to_ptr.vmem [resolvable:$true] %s41_s11 }
  0x25   :  { %p2960_p3 = scmp.lt.u32.totalorder %s2956_s14, %s3538_s2 }
  0x27   :  { %p2962_p4 = pnand %p2960_p3, %p2957_p2 }
  0x29   :  { %2965 = shalt.err (!%p2962_p4)
}
  0x2a   :  { %s2966_s20 = scalar_lea.vmem %s42_s11, 48  ;;  %s2970_s0 = scalar_lea.vmem %s42_s11, 64 }
  0x2b   :  { %p2967_p5 = scmp.ne.s32.totalorder %s42_s11, %s2966_s20  ;;  %p2971_p6 = scmp.lt.s32.totalorder %s42_s11, %s42_s11 }
  0x2c   :  { %p2972_p7 = scmp.lt.s32.totalorder %s2970_s0, %s2966_s20 }
  0x2e   :  { %p2973_p8 = por %p2972_p7, %p2971_p6 }
  0x30   :  { %p2974_p9 = pnand %p2973_p8, %p2967_p5 }
  0x32   :  { %2977 = shalt.err (!%p2974_p9)
}
  0x33   :  { %44 = dma.hbm_to_vmem [thread:$0]  %s3538_s2, 48, %s42_s11, [#allocation7]  }
  0x34   :  { %3000 = dma.done.wait [#allocation4], 3072  }
  0x35   :  { %3001 = vsyncadd [#allocation4], 4294964224 }
  0x36   :  { %3002 = dma.done.wait [#allocation7], 6192  }
  0x37   :  { %3003 = vsyncadd [#allocation7], 4294961104  ;;  %v3011_v0 = vmov 0.0|0.0   ;;  %v3012_v1 = vmov 0.0   ;;  %vm3013_vm0 = vmmov 0   ;;  %v64_v2 = vld [vmem:[#allocation6 + $0x8] sm:$0xff] }
  0x38   :  { %2405 = vmatprep.subr.bf16.mxu1 %v3011_v0  ;;  %192 = vmatprep.mubr.f32.mxu0 %v3012_v1  ;;  %v67_v3 = vld [vmem:[#allocation6 + $0x20] sm:$0xff]  ;;  %v66_v6 = vld [vmem:[#allocation6 + $0x18] sm:$0xff]  ;;  %v73_v8 = vld [vmem:[#allocation6 + $0x50] sm:$0xff]  ;;  %s3014_s2 = smov [#allocation9]  }
  0x39   :  { %2125 = vmatprep.mubr.msk.f32.mxu1 %vm3013_vm0, %v3012_v1  ;;  %v63_v4 = vld [vmem:[#allocation6] sm:$0xff]  ;;  %v3084_v5 = vpack.c.bf16 %v67_v3, %v64_v2  ;;  %v70_v7 = vld [vmem:[#allocation6 + $0x38] sm:$0xff]  ;;  %v69_v11 = vld [vmem:[#allocation6 + $0x30] sm:$0xff]  ;;  %s1928_s22 = sshll.u32 %s3014_s2, 4  ;;  %s1929_s22 = int_to_ptr.vmem [resolvable:$true] %s1928_s22 }
  0x3a   :  { %v3086_v9 = vpack.c.bf16 %v66_v6, %v63_v4  ;;  %v3088_v10 = vpack.c.bf16 %v73_v8, %v70_v7  ;;  %v72_v12 = vld [vmem:[#allocation6 + $0x48] sm:$0xff]  ;;  %v79_v14 = vld [vmem:[#allocation6 + $0x80] sm:$0xff]  ;;  %v78_v18 = vld [vmem:[#allocation6 + $0x78] sm:$0xff]  ;;  %s2978_s23 = scalar_lea.vmem %s1929_s22, 1024  ;;  %p2983_p11 = scmp.lt.s32.totalorder %s1929_s22, %s1929_s22 }
  0x3b   :  { %v76_v13 = vld [vmem:[#allocation6 + $0x68] sm:$0xff]  ;;  %2374 = vmatprep.subr.bf16.mxu0 %v3084_v5  ;;  %v3092_v15 = vpack.c.bf16 %v72_v12, %v69_v11  ;;  %v75_v17 = vld [vmem:[#allocation6 + $0x60] sm:$0xff]  ;;  %v82_v19 = vld [vmem:[#allocation6 + $0x98] sm:$0xff]  ;;  %p2979_p10 = scmp.ne.s32.totalorder %s1929_s22, %s2978_s23  ;;  %p2984_p12 = scmp.lt.s32.totalorder %s2978_s23, %s2978_s23 }
  0x3c   :  { %2376 = vmatpush1.bf16.msra.mxu0 %v3086_v9  ;;  %v3095_v16 = vpack.c.bf16 %v79_v14, %v76_v13  ;;  %v85_v20 = vld [vmem:[#allocation6 + $0xb0] sm:$0xff]  ;;  %v3098_v21 = vpack.c.bf16 %v78_v18, %v75_v17  ;;  %v84_v24 = vld [vmem:[#allocation6 + $0xa8] sm:$0xff]  ;;  %v91_v26 = vld [vmem:[#allocation6 + $0xe0] sm:$0xff]  ;;  %v113_v17 = vlaneseq }
  0x3d   :  { %2378 = vmatprep.subr.bf16.mxu0 %v3088_v10  ;;  %v3101_v22 = vpack.c.bf16 %v85_v20, %v82_v19  ;;  %v81_v23 = vld [vmem:[#allocation6 + $0x90] sm:$0xff]  ;;  %v88_v25 = vld [vmem:[#allocation6 + $0xc8] sm:$0xff]  ;;  %v71_v30 = vld [vmem:[#allocation6 + $0x40] sm:$0xff]  ;;  %p2985_p13 = por %p2984_p12, %p2983_p11 }
  0x3e   :  { %v65_v27 = vld [vmem:[#allocation6 + $0x10] sm:$0xff]  ;;  %v68_v28 = vld [vmem:[#allocation6 + $0x28] sm:$0xff]  ;;  %v74_v31 = vld [vmem:[#allocation6 + $0x58] sm:$0xff]  ;;  %v3106_v32 = vpack.c.bf16 %v84_v24, %v81_v23  ;;  %v3109_v33 = vpack.c.bf16 %v91_v26, %v88_v25  ;;  %v114_v18 = vshrl.u32 %v113_v17, 7 }
  0x3f   :  { %v3103_v29 = vpack.c.bf16 %v68_v28, %v65_v27  ;;  %v87_v34 = vld [vmem:[#allocation6 + $0xc0] sm:$0xff]  ;;  %v90_v35 = vld [vmem:[#allocation6 + $0xd8] sm:$0xff]  ;;  %v3112_v37 = vpack.c.bf16 %v74_v31, %v71_v30  ;;  %v97_v38 = vld [vmem:[#allocation6 + $0x110] sm:$0xff]  ;;  %p2986_p0 = pnand %p2985_p13, %p2979_p10 }
  0x40   :  { %2380 = vmatpush1.bf16.msra.mxu0 %v3092_v15  ;;  %v94_v36 = vld [vmem:[#allocation6 + $0xf8] sm:$0xff]  ;;  %v77_v39 = vld [vmem:[#allocation6 + $0x70] sm:$0xff]  ;;  %v80_v40 = vld [vmem:[#allocation6 + $0x88] sm:$0xff]  ;;  %v3116_v41 = vpack.c.bf16 %v90_v35, %v87_v34  ;;  %v3202_v19 = vsub.s32 0, %v114_v18  ;;  %v3204_v23 = vsub.s32 1, %v114_v18 }
  0x41   :  { %2382 = vmatprep.subr.bf16.mxu0 %v3095_v16  ;;  %2407 = vmatpush3.bf16.msra.mxu1 %v3103_v29  ;;  %v3119_v42 = vpack.c.bf16 %v97_v38, %v94_v36  ;;  %v93_v43 = vld [vmem:[#allocation6 + $0xf0] sm:$0xff]  ;;  %v96_v44 = vld [vmem:[#allocation6 + $0x108] sm:$0xff]  ;;  %v3122_v46 = vpack.c.bf16 %v80_v40, %v77_v39  ;;  %v103_v47 = vld [vmem:[#allocation6 + $0x140] sm:$0xff] }
  0x42   :  { %2408 = vmatprep.subr.bf16.mxu1 %v3011_v0  ;;  %v100_v45 = vld [vmem:[#allocation6 + $0x128] sm:$0xff]  ;;  %v83_v48 = vld [vmem:[#allocation6 + $0xa0] sm:$0xff]  ;;  %v86_v49 = vld [vmem:[#allocation6 + $0xb8] sm:$0xff]  ;;  %v3126_v50 = vpack.c.bf16 %v96_v44, %v93_v43 }
  0x43   :  { %v3129_v51 = vpack.c.bf16 %v103_v47, %v100_v45  ;;  %v99_v52 = vld [vmem:[#allocation6 + $0x120] sm:$0xff]  ;;  %v102_v53 = vld [vmem:[#allocation6 + $0x138] sm:$0xff]  ;;  %v3132_v55 = vpack.c.bf16 %v86_v49, %v83_v48  ;;  %v109_v56 = vld [vmem:[#allocation6 + $0x170] sm:$0xff]  ;;  %v3208_v47 = vsub.s32 2, %v114_v18 }
  0x44   :  { %2384 = vmatpush1.bf16.msra.mxu0 %v3098_v21  ;;  %v106_v54 = vld [vmem:[#allocation6 + $0x158] sm:$0xff]  ;;  %v89_v57 = vld [vmem:[#allocation6 + $0xd0] sm:$0xff]  ;;  %v92_v58 = vld [vmem:[#allocation6 + $0xe8] sm:$0xff]  ;;  %v3136_v59 = vpack.c.bf16 %v102_v53, %v99_v52 }
  0x45   :  { %2386 = vmatprep.subr.bf16.mxu0 %v3101_v22  ;;  %2410 = vmatpush3.bf16.msra.mxu1 %v3112_v37  ;;  %v3139_v60 = vpack.c.bf16 %v109_v56, %v106_v54  ;;  %v105_v61 = vld [vmem:[#allocation6 + $0x150] sm:$0xff]  ;;  %v108_v62 = vld [vmem:[#allocation6 + $0x168] sm:$0xff]  ;;  %v3142_v63 = vpack.c.bf16 %v92_v58, %v89_v57  ;;  %v95_v2 = vld [vmem:[#allocation6 + $0x100] sm:$0xff] }
  0x46   :  { %2411 = vmatprep.subr.bf16.mxu1 %v3011_v0  ;;  %v98_v3 = vld [vmem:[#allocation6 + $0x118] sm:$0xff]  ;;  %v3146_v4 = vpack.c.bf16 %v108_v62, %v105_v61  ;;  %v101_v7 = vld [vmem:[#allocation6 + $0x130] sm:$0xff]  ;;  %v104_v8 = vld [vmem:[#allocation6 + $0x148] sm:$0xff] }
  0x47   :  { %v3150_v6 = vpack.c.bf16 %v98_v3, %v95_v2  ;;  %v3155_v11 = vpack.c.bf16 %v104_v8, %v101_v7  ;;  %v107_v12 = vld [vmem:[#allocation6 + $0x160] sm:$0xff]  ;;  %v110_v13 = vld [vmem:[#allocation6 + $0x178] sm:$0xff]  ;;  %v61_v35 = vld [vmem:[#allocation3 + $0x8] sm:$0xff] }
  0x48   :  { %2388 = vmatpush1.bf16.msra.mxu0 %v3106_v32  ;;  %v3163_v14 = vpack.c.bf16 %v110_v13, %v107_v12  ;;  %v111_v20 = vld [vmem:[#allocation8] sm:$0x7]  ;;  %v62_v56 = vld [vmem:[#allocation3 + $0x10] sm:$0xff]  ;;  %v292_v18 = vld [vmem:[#allocation3 + $0x18] sm:$0xff] }
  0x49   :  { %2390 = vmatprep.subr.bf16.mxu0 %v3109_v33  ;;  %2413 = vmatpush3.bf16.msra.mxu1 %v3122_v46  ;;  %v116_v24 = vrot.slane %v111_v20, %v3202_v19  ;;  %v120_v25 = vrot.slane %v111_v20, %v3204_v23  ;;  %v60_v26 = vld [vmem:[#allocation3] sm:$0xff]  ;;  %v124_v48 = vrot.slane %v111_v20, %v3208_v47 }
  0x4a   :  { %2414 = vmatprep.subr.bf16.mxu1 %v3011_v0  ;;  %v343_v12 = vld [vmem:[#allocation8] sm:$0x7] }
  0x4b   :  { %v348_v13 = vrot.slane %v343_v12, %v3202_v19  ;;  %v352_v17 = vrot.slane %v343_v12, %v3204_v23 }
  0x4c   :  { %2392 = vmatpush1.bf16.msra.mxu0 %v3116_v41 }
  0x4d   :  { %2394 = vmatprep.subr.bf16.mxu0 %v3119_v42  ;;  %2416 = vmatpush3.bf16.msra.mxu1 %v3132_v55 }
  0x4e   :  { %2417 = vmatprep.subr.bf16.mxu1 %v3011_v0 }
  0x50   :  { %2396 = vmatpush1.bf16.msra.mxu0 %v3126_v50 }
  0x51   :  { %2398 = vmatprep.subr.bf16.mxu0 %v3129_v51  ;;  %2419 = vmatpush3.bf16.msra.mxu1 %v3142_v63 }
  0x52   :  { %2420 = vmatprep.subr.bf16.mxu1 %v3011_v0 }
  0x54   :  { %2400 = vmatpush1.bf16.msra.mxu0 %v3136_v59 }
  0x55   :  { %2402 = vmatprep.subr.bf16.mxu0 %v3139_v60  ;;  %2422 = vmatpush3.bf16.msra.mxu1 %v3150_v6 }
  0x56   :  { %2423 = vmatprep.subr.bf16.mxu1 %v3011_v0 }
  0x58   :  { %2404 = vmatpush1.bf16.msra.mxu0 %v3146_v4 }
  0x59   :  { %2430 = vmatprep.subr.bf16.mxu0 %v3084_v5  ;;  %2425 = vmatpush3.bf16.msra.mxu1 %v3155_v11 }
  0x5a   :  { %2426 = vmatprep.subr.bf16.mxu1 %v3011_v0 }
  0x5b   :  { %193 = vmatmul.mubr.f32.vlgmr.msra.gmra.mrb[0].mxu0 %v3012_v1 }
  0x5c   :  { %2432 = vmatpush1.bf16.msra.mxu0 %v3086_v9  ;;  %424 = vmatprep.mubr.f32.mxu0 %v3012_v1 }
  0x5d   :  { %2434 = vmatprep.subr.bf16.mxu0 %v3088_v10  ;;  %2428 = vmatpush3.bf16.msra.mxu1 %v3163_v14 }
  0x5e   :  { %2461 = vmatprep.subr.bf16.mxu1 %v3011_v0 }
  0x60   :  { %2436 = vmatpush1.bf16.msra.mxu0 %v3092_v15  ;;  %2126 = vmatmul.mubr.f32.vlgmr.msra.gmra.mrb[0].mxu1 %v3012_v1 }
  0x61   :  { %2438 = vmatprep.subr.bf16.mxu0 %v3095_v16  ;;  %2463 = vmatpush3.bf16.msra.mxu1 %v3103_v29 }
  0x62   :  { %2464 = vmatprep.subr.bf16.mxu1 %v3011_v0  ;;  %2160 = vmatprep.mubr.msk.f32.mxu1 %vm3013_vm0, %v3012_v1 }
  0x64   :  { %2440 = vmatpush1.bf16.msra.mxu0 %v3098_v21 }
  0x65   :  { %2442 = vmatprep.subr.bf16.mxu0 %v3101_v22  ;;  %2466 = vmatpush3.bf16.msra.mxu1 %v3112_v37 }
  0x66   :  { %2467 = vmatprep.subr.bf16.mxu1 %v3011_v0 }
  0x68   :  { %2444 = vmatpush1.bf16.msra.mxu0 %v3106_v32 }
  0x69   :  { %2446 = vmatprep.subr.bf16.mxu0 %v3109_v33  ;;  %2469 = vmatpush3.bf16.msra.mxu1 %v3122_v46 }
  0x6a   :  { %2470 = vmatprep.subr.bf16.mxu1 %v3011_v0 }
  0x6c   :  { %2448 = vmatpush1.bf16.msra.mxu0 %v3116_v41 }
  0x6d   :  { %2450 = vmatprep.subr.bf16.mxu0 %v3119_v42  ;;  %2472 = vmatpush3.bf16.msra.mxu1 %v3132_v55 }
  0x6e   :  { %2473 = vmatprep.subr.bf16.mxu1 %v3011_v0 }
  0x70   :  { %2452 = vmatpush1.bf16.msra.mxu0 %v3126_v50 }
  0x71   :  { %2454 = vmatprep.subr.bf16.mxu0 %v3129_v51  ;;  %2475 = vmatpush3.bf16.msra.mxu1 %v3142_v63 }
  0x72   :  { %2476 = vmatprep.subr.bf16.mxu1 %v3011_v0 }
  0x74   :  { %2456 = vmatpush1.bf16.msra.mxu0 %v3136_v59 }
  0x75   :  { %2458 = vmatprep.subr.bf16.mxu0 %v3139_v60  ;;  %2478 = vmatpush3.bf16.msra.mxu1 %v3150_v6 }
  0x76   :  { %2479 = vmatprep.subr.bf16.mxu1 %v3011_v0 }
  0x78   :  { %2460 = vmatpush1.bf16.msra.mxu0 %v3146_v4 }
  0x79   :  { %2486 = vmatprep.subr.bf16.mxu0 %v3084_v5  ;;  %2481 = vmatpush3.bf16.msra.mxu1 %v3155_v11 }
  0x7a   :  { %2482 = vmatprep.subr.bf16.mxu1 %v3011_v0 }
  0x7d   :  { %2484 = vmatpush3.bf16.msra.mxu1 %v3163_v14 }
  0x7e   :  { %2517 = vmatprep.subr.bf16.mxu1 %v3011_v0 }
 0x12e   :  { %v194_v27 = vpop.f32.mrb[0].mxu0 }
 0x12f   :  { %v195_v28 = vadd.f32 %v194_v27, %v116_v24  ;;  %v196_v30 = vpop.f32.mrb[1].mxu0 }
 0x130   :  { %v197_v31 = vadd.f32 %v196_v30, %v120_v25 }
 0x131   :  { %v269_v34 = vadd.f32 %v195_v28, %v60_v26 }
 0x132   :  { %v276_v38 = vadd.f32 %v197_v31, %v61_v35  ;;  %v293_v31 = vld [vmem:[#allocation3 + $0x20] sm:$0xff] }
 0x133   :  { %v1941_v36 = vmul.f32 -1.442695, %v269_v34  ;;  %v265_v39 = vpop.f32.mrb[0].mxu1 }
 0x134   :  { %v1942_v40 = vmul.f32 -1.442695, %v276_v38  ;;  %v2127_v43 = vpop.f32.mrb[1].mxu1  ;;  %v266_v53 = vadd.f32 %v265_v39, %v124_v48  ;;  %v294_v48 = vld [vmem:[#allocation3 + $0x28] sm:$0xff] }
 0x135   :  { %2832 = vpow2.f32 %v1941_v36 }
 0x136   :  { %2834 = vpow2.f32 %v1942_v40  ;;  %v356_v40 = vrot.slane %v343_v12, %v3208_v47 }
 0x13f   :  { %v2833_v44 = vpop.eup %2832 }
 0x140   :  { %v273_v45 = vadd.f32 1.0, %v2833_v44  ;;  %v2835_v49 = vpop.eup %2834 }
 0x141   :  { %v280_v52 = vadd.f32 1.0, %v2835_v49 }
 0x142   :  { %2836 = vrcp.f32 %v273_v45 }
 0x143   :  { %2838 = vrcp.f32 %v280_v52 }
 0x14c   :  { %v2837_v54 = vpop.eup %2836 }
 0x14d   :  { %v283_v57 = vmul.f32 %v2837_v54, %v266_v53  ;;  %v2839_v61 = vpop.eup %2838 }
 0x14e   :  { %v286_v62 = vsub.f32 1.0, %v2839_v61  ;;  %v288_v7 = vmul.f32 0.0, %v2839_v61 }
 0x14f   :  { %v284_v58 = vadd.f32 %v283_v57, %v62_v56 }
 0x151   :  { %2840 = vtanh.f32 %v284_v58 }
 0x15b   :  { %v2841_v2 = vpop.eup %2840 }
 0x15c   :  { %v287_v3 = vmul.f32 %v2841_v2, %v286_v62  ;;  %v527_v2 = vld [vmem:[#allocation3 + $0x40] sm:$0xff] }
 0x15e   :  { %v3211_v8 = vadd.f32 %v288_v7, %v287_v3 }
 0x160   :  { %290 = vst [vmem:[#allocation9] sm:$0xff] %v3211_v8  ;;  %425 = vmatmul.mubr.f32.vlgmr.msra.gmra.mrb[2].mxu0 %v3211_v8  ;;  %2161 = vmatmul.mubr.f32.vlgmr.msra.gmra.mrb[2].mxu1 %v3211_v8 }
 0x161   :  { %2488 = vmatpush1.bf16.msra.mxu0 %v3086_v9  ;;  %2519 = vmatpush3.bf16.msra.mxu1 %v3103_v29 }
 0x162   :  { %2490 = vmatprep.subr.bf16.mxu0 %v3088_v10  ;;  %2520 = vmatprep.subr.bf16.mxu1 %v3011_v0 }
 0x163   :  { %657 = vmatprep.mubr.f32.mxu0 %v3012_v1  ;;  %2195 = vmatprep.mubr.msk.f32.mxu1 %vm3013_vm0, %v3012_v1 }
 0x165   :  { %2492 = vmatpush1.bf16.msra.mxu0 %v3092_v15  ;;  %2522 = vmatpush3.bf16.msra.mxu1 %v3112_v37 }
 0x166   :  { %2494 = vmatprep.subr.bf16.mxu0 %v3095_v16  ;;  %2523 = vmatprep.subr.bf16.mxu1 %v3011_v0 }
 0x169   :  { %2496 = vmatpush1.bf16.msra.mxu0 %v3098_v21  ;;  %2525 = vmatpush3.bf16.msra.mxu1 %v3122_v46 }
 0x16a   :  { %2498 = vmatprep.subr.bf16.mxu0 %v3101_v22  ;;  %2526 = vmatprep.subr.bf16.mxu1 %v3011_v0 }
 0x16d   :  { %2500 = vmatpush1.bf16.msra.mxu0 %v3106_v32  ;;  %2528 = vmatpush3.bf16.msra.mxu1 %v3132_v55 }
 0x16e   :  { %2502 = vmatprep.subr.bf16.mxu0 %v3109_v33  ;;  %2529 = vmatprep.subr.bf16.mxu1 %v3011_v0 }
 0x171   :  { %2504 = vmatpush1.bf16.msra.mxu0 %v3116_v41  ;;  %2531 = vmatpush3.bf16.msra.mxu1 %v3142_v63 }
 0x172   :  { %2506 = vmatprep.subr.bf16.mxu0 %v3119_v42  ;;  %2532 = vmatprep.subr.bf16.mxu1 %v3011_v0 }
 0x175   :  { %2508 = vmatpush1.bf16.msra.mxu0 %v3126_v50  ;;  %2534 = vmatpush3.bf16.msra.mxu1 %v3150_v6 }
 0x176   :  { %2510 = vmatprep.subr.bf16.mxu0 %v3129_v51  ;;  %2535 = vmatprep.subr.bf16.mxu1 %v3011_v0 }
 0x179   :  { %2512 = vmatpush1.bf16.msra.mxu0 %v3136_v59  ;;  %2537 = vmatpush3.bf16.msra.mxu1 %v3155_v11 }
 0x17a   :  { %2514 = vmatprep.subr.bf16.mxu0 %v3139_v60  ;;  %2538 = vmatprep.subr.bf16.mxu1 %v3011_v0 }
 0x17d   :  { %2516 = vmatpush1.bf16.msra.mxu0 %v3146_v4  ;;  %2540 = vmatpush3.bf16.msra.mxu1 %v3163_v14 }
 0x17e   :  { %2542 = vmatprep.subr.bf16.mxu0 %v3084_v5  ;;  %2573 = vmatprep.subr.bf16.mxu1 %v3011_v0 }
 0x233   :  { %v426_v20 = vpop.f32.mrb[2].mxu0  ;;  %v497_v24 = vpop.f32.mrb[2].mxu1 }
 0x234   :  { %v427_v25 = vadd.f32 %v426_v20, %v348_v13  ;;  %v428_v26 = vpop.f32.mrb[3].mxu0  ;;  %v2162_v27 = vpop.f32.mrb[3].mxu1  ;;  %v498_v44 = vadd.f32 %v497_v24, %v356_v40  ;;  %v995_v24 = vld [vmem:[#allocation6 + $0x8] sm:$0xff]  ;;  %v1006_v40 = vld [vmem:[#allocation6 + $0x60] sm:$0xff] }
 0x235   :  { %v429_v28 = vadd.f32 %v428_v26, %v352_v17  ;;  %v994_v27 = vld [vmem:[#allocation6] sm:$0xff] }
 0x236   :  { %v501_v30 = vadd.f32 %v427_v25, %v292_v18  ;;  %v998_v25 = vld [vmem:[#allocation6 + $0x20] sm:$0xff] }
 0x237   :  { %v508_v35 = vadd.f32 %v429_v28, %v293_v31  ;;  %v3310_v26 = vpack.c.bf16 %v998_v25, %v995_v24  ;;  %v997_v28 = vld [vmem:[#allocation6 + $0x18] sm:$0xff]  ;;  %v1004_v31 = vld [vmem:[#allocation6 + $0x50] sm:$0xff] }
 0x238   :  { %v1943_v34 = vmul.f32 -1.442695, %v501_v30  ;;  %v3312_v30 = vpack.c.bf16 %v997_v28, %v994_v27  ;;  %v1036_v27 = vld [vmem:[#allocation6 + $0x150] sm:$0xff]  ;;  %v1039_v28 = vld [vmem:[#allocation6 + $0x168] sm:$0xff] }
 0x239   :  { %v1944_v5 = vmul.f32 -1.442695, %v508_v35  ;;  %v1000_v35 = vld [vmem:[#allocation6 + $0x30] sm:$0xff] }
 0x23a   :  { %2842 = vpow2.f32 %v1943_v34 }
 0x23b   :  { %2844 = vpow2.f32 %v1944_v5 }
 0x244   :  { %v2843_v36 = vpop.eup %2842 }
 0x245   :  { %v505_v38 = vadd.f32 1.0, %v2843_v36  ;;  %v2845_v39 = vpop.eup %2844  ;;  %v1007_v36 = vld [vmem:[#allocation6 + $0x68] sm:$0xff] }
 0x246   :  { %v512_v43 = vadd.f32 1.0, %v2845_v39 }
 0x247   :  { %2846 = vrcp.f32 %v505_v38  ;;  %v1010_v38 = vld [vmem:[#allocation6 + $0x80] sm:$0xff] }
 0x248   :  { %2848 = vrcp.f32 %v512_v43  ;;  %v3322_v39 = vpack.c.bf16 %v1010_v38, %v1007_v36  ;;  %v1009_v43 = vld [vmem:[#allocation6 + $0x78] sm:$0xff]  ;;  %v809_v36 = vld [vmem:[#allocation8] sm:$0x7] }
 0x249   :  { %v814_v38 = vrot.slane %v809_v36, %v3202_v19 }
 0x251   :  { %v2847_v45 = vpop.eup %2846 }
 0x252   :  { %v515_v49 = vmul.f32 %v2847_v45, %v498_v44  ;;  %v2849_v53 = vpop.eup %2848  ;;  %v1008_v44 = vld [vmem:[#allocation6 + $0x70] sm:$0xff]  ;;  %v3324_v45 = vpack.c.bf16 %v1009_v43, %v1006_v40  ;;  %v818_v40 = vrot.slane %v809_v36, %v3204_v23  ;;  %v758_v43 = vld [vmem:[#allocation3 + $0x48] sm:$0xff] }
 0x253   :  { %v518_v54 = vsub.f32 1.0, %v2849_v53  ;;  %v520_v58 = vmul.f32 %v2849_v53, %v3211_v8  ;;  %v1016_v53 = vld [vmem:[#allocation6 + $0xb0] sm:$0xff] }
 0x254   :  { %v516_v52 = vadd.f32 %v515_v49, %v294_v48  ;;  %v1011_v48 = vld [vmem:[#allocation6 + $0x88] sm:$0xff] }
 0x255   :  { %v3327_v49 = vpack.c.bf16 %v1011_v48, %v1008_v44 }
 0x256   :  { %2850 = vtanh.f32 %v516_v52  ;;  %v1013_v52 = vld [vmem:[#allocation6 + $0x98] sm:$0xff] }
 0x260   :  { %v2851_v56 = vpop.eup %2850 }
 0x261   :  { %v519_v57 = vmul.f32 %v2851_v56, %v518_v54  ;;  %v3331_v54 = vpack.c.bf16 %v1016_v53, %v1013_v52  ;;  %v1012_v56 = vld [vmem:[#allocation6 + $0x90] sm:$0xff] }
 0x263   :  { %v3255_v61 = vadd.f32 %v520_v58, %v519_v57  ;;  %v1015_v57 = vld [vmem:[#allocation6 + $0xa8] sm:$0xff]  ;;  %v1014_v58 = vld [vmem:[#allocation6 + $0xa0] sm:$0xff] }
 0x265   :  { %523 = vst [vmem:[#allocation9 + $0x8] sm:$0xff] %v3255_v61  ;;  %658 = vmatmul.mubr.f32.vlgmr.msra.gmra.mrb[4].mxu0 %v3255_v61  ;;  %2196 = vmatmul.mubr.f32.vlgmr.msra.gmra.mrb[4].mxu1 %v3255_v61 }
 0x266   :  { %2544 = vmatpush1.bf16.msra.mxu0 %v3086_v9  ;;  %2575 = vmatpush3.bf16.msra.mxu1 %v3103_v29  ;;  %v576_v9 = vld [vmem:[#allocation8] sm:$0x7] }
 0x267   :  { %2546 = vmatprep.subr.bf16.mxu0 %v3088_v10  ;;  %2576 = vmatprep.subr.bf16.mxu1 %v3011_v0  ;;  %v581_v10 = vrot.slane %v576_v9, %v3202_v19 }
 0x268   :  { %890 = vmatprep.mubr.f32.mxu0 %v3012_v1  ;;  %2230 = vmatprep.mubr.msk.f32.mxu1 %vm3013_vm0, %v3012_v1 }
 0x26a   :  { %2548 = vmatpush1.bf16.msra.mxu0 %v3092_v15  ;;  %2578 = vmatpush3.bf16.msra.mxu1 %v3112_v37  ;;  %v585_v15 = vrot.slane %v576_v9, %v3204_v23 }
 0x26b   :  { %2550 = vmatprep.subr.bf16.mxu0 %v3095_v16  ;;  %2579 = vmatprep.subr.bf16.mxu1 %v3011_v0  ;;  %v525_v16 = vld [vmem:[#allocation3 + $0x30] sm:$0xff] }
 0x26e   :  { %2552 = vmatpush1.bf16.msra.mxu0 %v3098_v21  ;;  %2581 = vmatpush3.bf16.msra.mxu1 %v3122_v46 }
 0x26f   :  { %2554 = vmatprep.subr.bf16.mxu0 %v3101_v22  ;;  %2582 = vmatprep.subr.bf16.mxu1 %v3011_v0 }
 0x272   :  { %2556 = vmatpush1.bf16.msra.mxu0 %v3106_v32  ;;  %2584 = vmatpush3.bf16.msra.mxu1 %v3132_v55 }
 0x273   :  { %2558 = vmatprep.subr.bf16.mxu0 %v3109_v33  ;;  %2585 = vmatprep.subr.bf16.mxu1 %v3011_v0 }
 0x276   :  { %2560 = vmatpush1.bf16.msra.mxu0 %v3116_v41  ;;  %2587 = vmatpush3.bf16.msra.mxu1 %v3142_v63 }
 0x277   :  { %2562 = vmatprep.subr.bf16.mxu0 %v3119_v42  ;;  %2588 = vmatprep.subr.bf16.mxu1 %v3011_v0 }
 0x27a   :  { %2564 = vmatpush1.bf16.msra.mxu0 %v3126_v50  ;;  %2590 = vmatpush3.bf16.msra.mxu1 %v3150_v6  ;;  %v526_v50 = vld [vmem:[#allocation3 + $0x38] sm:$0xff]  ;;  %v589_v6 = vrot.slane %v576_v9, %v3208_v47 }
 0x27b   :  { %2566 = vmatprep.subr.bf16.mxu0 %v3129_v51  ;;  %2591 = vmatprep.subr.bf16.mxu1 %v3011_v0  ;;  %v1017_v9 = vld [vmem:[#allocation6 + $0xb8] sm:$0xff] }
 0x27e   :  { %2568 = vmatpush1.bf16.msra.mxu0 %v3136_v59  ;;  %2593 = vmatpush3.bf16.msra.mxu1 %v3155_v11 }
 0x27f   :  { %2570 = vmatprep.subr.bf16.mxu0 %v3139_v60  ;;  %2594 = vmatprep.subr.bf16.mxu1 %v3011_v0 }
 0x282   :  { %2572 = vmatpush1.bf16.msra.mxu0 %v3146_v4  ;;  %2596 = vmatpush3.bf16.msra.mxu1 %v3163_v14 }
 0x283   :  { %2629 = vmatprep.subr.bf16.mxu1 %v3011_v0  ;;  %2598 = vmatprep.subr.bf16.mxu0 %v3310_v26 }
 0x338   :  { %v659_v21 = vpop.f32.mrb[4].mxu0  ;;  %v730_v22 = vpop.f32.mrb[4].mxu1 }
 0x339   :  { %v660_v32 = vadd.f32 %v659_v21, %v581_v10  ;;  %v661_v33 = vpop.f32.mrb[5].mxu0  ;;  %v2197_v41 = vpop.f32.mrb[5].mxu1  ;;  %v731_v14 = vadd.f32 %v730_v22, %v589_v6  ;;  %v3337_v10 = vpack.c.bf16 %v1017_v9, %v1014_v58  ;;  %v1018_v22 = vld [vmem:[#allocation6 + $0xc0] sm:$0xff]  ;;  %v759_v9 = vld [vmem:[#allocation3 + $0x50] sm:$0xff] }
 0x33a   :  { %v662_v42 = vadd.f32 %v661_v33, %v585_v15  ;;  %v1019_v15 = vld [vmem:[#allocation6 + $0xc8] sm:$0xff]  ;;  %v1020_v33 = vld [vmem:[#allocation6 + $0xd0] sm:$0xff] }
 0x33b   :  { %v734_v46 = vadd.f32 %v660_v32, %v525_v16  ;;  %v1022_v16 = vld [vmem:[#allocation6 + $0xe0] sm:$0xff]  ;;  %v1021_v32 = vld [vmem:[#allocation6 + $0xd8] sm:$0xff] }
 0x33c   :  { %v741_v55 = vadd.f32 %v662_v42, %v526_v50  ;;  %v3341_v21 = vpack.c.bf16 %v1022_v16, %v1019_v15  ;;  %v3344_v41 = vpack.c.bf16 %v1021_v32, %v1018_v22  ;;  %v1023_v42 = vld [vmem:[#allocation6 + $0xe8] sm:$0xff]  ;;  %v1025_v50 = vld [vmem:[#allocation6 + $0xf8] sm:$0xff] }
 0x33d   :  { %v1945_v51 = vmul.f32 -1.442695, %v734_v46  ;;  %v3347_v46 = vpack.c.bf16 %v1023_v42, %v1020_v33 }
 0x33e   :  { %v1946_v59 = vmul.f32 -1.442695, %v741_v55  ;;  %v1024_v55 = vld [vmem:[#allocation6 + $0xf0] sm:$0xff] }
 0x33f   :  { %2852 = vpow2.f32 %v1945_v51  ;;  %v1028_v51 = vld [vmem:[#allocation6 + $0x110] sm:$0xff] }
 0x340   :  { %2854 = vpow2.f32 %v1946_v59  ;;  %v3351_v59 = vpack.c.bf16 %v1028_v51, %v1025_v50  ;;  %v822_v50 = vrot.slane %v809_v36, %v3208_v47  ;;  %v1042_v36 = vld [vmem:[#allocation8] sm:$0x7] }
 0x349   :  { %v2853_v60 = vpop.eup %2852 }
 0x34a   :  { %v738_v63 = vadd.f32 1.0, %v2853_v60  ;;  %v2855_v4 = vpop.eup %2854  ;;  %v1027_v60 = vld [vmem:[#allocation6 + $0x108] sm:$0xff] }
 0x34b   :  { %v745_v11 = vadd.f32 1.0, %v2855_v4  ;;  %v1029_v4 = vld [vmem:[#allocation6 + $0x118] sm:$0xff]  ;;  %v3354_v6 = vpack.c.bf16 %v1027_v60, %v1024_v55 }
 0x34c   :  { %2856 = vrcp.f32 %v738_v63  ;;  %v1026_v63 = vld [vmem:[#allocation6 + $0x100] sm:$0xff] }
 0x34d   :  { %2858 = vrcp.f32 %v745_v11  ;;  %v3356_v11 = vpack.c.bf16 %v1029_v4, %v1026_v63  ;;  %v760_v63 = vld [vmem:[#allocation3 + $0x58] sm:$0xff] }
 0x356   :  { %v2857_v62 = vpop.eup %2856 }
 0x357   :  { %v748_v3 = vmul.f32 %v2857_v62, %v731_v14  ;;  %v2859_v8 = vpop.eup %2858  ;;  %v1031_v14 = vld [vmem:[#allocation6 + $0x128] sm:$0xff]  ;;  %v1034_v62 = vld [vmem:[#allocation6 + $0x140] sm:$0xff] }
 0x358   :  { %v751_v12 = vsub.f32 1.0, %v2859_v8  ;;  %v753_v18 = vmul.f32 %v2859_v8, %v3255_v61  ;;  %v3334_v61 = vpack.c.bf16 %v1015_v57, %v1012_v56  ;;  %v1032_v8 = vld [vmem:[#allocation6 + $0x130] sm:$0xff] }
 0x359   :  { %v749_v7 = vadd.f32 %v748_v3, %v527_v2  ;;  %v1030_v2 = vld [vmem:[#allocation6 + $0x120] sm:$0xff]  ;;  %v3359_v3 = vpack.c.bf16 %v1034_v62, %v1031_v14 }
 0x35b   :  { %2860 = vtanh.f32 %v749_v7  ;;  %v1033_v7 = vld [vmem:[#allocation6 + $0x138] sm:$0xff] }
 0x365   :  { %v2861_v13 = vpop.eup %2860 }
 0x366   :  { %v752_v17 = vmul.f32 %v2861_v13, %v751_v12  ;;  %v1035_v12 = vld [vmem:[#allocation6 + $0x148] sm:$0xff]  ;;  %v3362_v13 = vpack.c.bf16 %v1033_v7, %v1030_v2 }
 0x367   :  { %v3366_v24 = vpack.c.bf16 %v1035_v12, %v1032_v8 }
 0x368   :  { %v3298_v20 = vadd.f32 %v753_v18, %v752_v17  ;;  %v1037_v17 = vld [vmem:[#allocation6 + $0x158] sm:$0xff]  ;;  %v1040_v18 = vld [vmem:[#allocation6 + $0x170] sm:$0xff] }
 0x369   :  { %v3368_v25 = vpack.c.bf16 %v1040_v18, %v1037_v17  ;;  %v1232_v18 = vld [vmem:[#allocation6 + $0x28] sm:$0xff] }
 0x36a   :  { %756 = vst [vmem:[#allocation9 + $0x10] sm:$0xff] %v3298_v20  ;;  %891 = vmatmul.mubr.f32.vlgmr.msra.gmra.mrb[6].mxu0 %v3298_v20  ;;  %2231 = vmatmul.mubr.f32.vlgmr.msra.gmra.mrb[6].mxu1 %v3298_v20 }
 0x36b   :  { %2631 = vmatpush3.bf16.msra.mxu1 %v3103_v29  ;;  %1123 = vmatprep.mubr.f32.mxu0 %v3012_v1  ;;  %v1001_v29 = vld [vmem:[#allocation6 + $0x38] sm:$0xff] }
 0x36c   :  { %2632 = vmatprep.subr.bf16.mxu1 %v3011_v0  ;;  %2265 = vmatprep.mubr.msk.f32.mxu1 %vm3013_vm0, %v3012_v1  ;;  %v3316_v34 = vpack.c.bf16 %v1004_v31, %v1001_v29  ;;  %v1038_v29 = vld [vmem:[#allocation6 + $0x160] sm:$0xff]  ;;  %v1041_v31 = vld [vmem:[#allocation6 + $0x178] sm:$0xff] }
 0x36d   :  { %2600 = vmatpush1.bf16.msra.mxu0 %v3312_v30 }
 0x36e   :  { %2602 = vmatprep.subr.bf16.mxu0 %v3316_v34 }
 0x36f   :  { %2634 = vmatpush3.bf16.msra.mxu1 %v3112_v37  ;;  %v1003_v37 = vld [vmem:[#allocation6 + $0x48] sm:$0xff] }
 0x370   :  { %2635 = vmatprep.subr.bf16.mxu1 %v3011_v0  ;;  %v3318_v5 = vpack.c.bf16 %v1003_v37, %v1000_v35  ;;  %v3372_v35 = vpack.c.bf16 %v1039_v28, %v1036_v27  ;;  %v3376_v37 = vpack.c.bf16 %v1041_v31, %v1038_v29  ;;  %v1235_v28 = vld [vmem:[#allocation6 + $0x40] sm:$0xff]  ;;  %v1238_v29 = vld [vmem:[#allocation6 + $0x58] sm:$0xff] }
 0x371   :  { %v3415_v31 = vpack.c.bf16 %v1238_v29, %v1235_v28  ;;  %v1224_v29 = vld [vmem:[#allocation3 + $0x78] sm:$0xff] }
 0x372   :  { %2604 = vmatpush1.bf16.msra.mxu0 %v3318_v5 }
 0x373   :  { %2606 = vmatprep.subr.bf16.mxu0 %v3322_v39  ;;  %2637 = vmatpush3.bf16.msra.mxu1 %v3327_v49 }
 0x374   :  { %2638 = vmatprep.subr.bf16.mxu1 %v3011_v0 }
 0x376   :  { %2608 = vmatpush1.bf16.msra.mxu0 %v3324_v45 }
 0x377   :  { %2610 = vmatprep.subr.bf16.mxu0 %v3331_v54  ;;  %2640 = vmatpush3.bf16.msra.mxu1 %v3337_v10 }
 0x378   :  { %2641 = vmatprep.subr.bf16.mxu1 %v3011_v0 }
 0x37a   :  { %2612 = vmatpush1.bf16.msra.mxu0 %v3334_v61 }
 0x37b   :  { %2614 = vmatprep.subr.bf16.mxu0 %v3341_v21  ;;  %2643 = vmatpush3.bf16.msra.mxu1 %v3347_v46 }
 0x37c   :  { %2644 = vmatprep.subr.bf16.mxu1 %v3011_v0 }
 0x37e   :  { %2616 = vmatpush1.bf16.msra.mxu0 %v3344_v41 }
 0x37f   :  { %2618 = vmatprep.subr.bf16.mxu0 %v3351_v59  ;;  %2646 = vmatpush3.bf16.msra.mxu1 %v3356_v11 }
 0x380   :  { %2647 = vmatprep.subr.bf16.mxu1 %v3011_v0 }
 0x382   :  { %2620 = vmatpush1.bf16.msra.mxu0 %v3354_v6 }
 0x383   :  { %2622 = vmatprep.subr.bf16.mxu0 %v3359_v3  ;;  %2649 = vmatpush3.bf16.msra.mxu1 %v3366_v24 }
 0x384   :  { %2650 = vmatprep.subr.bf16.mxu1 %v3011_v0 }
 0x386   :  { %2624 = vmatpush1.bf16.msra.mxu0 %v3362_v13 }
 0x387   :  { %2626 = vmatprep.subr.bf16.mxu0 %v3368_v25  ;;  %2652 = vmatpush3.bf16.msra.mxu1 %v3376_v37 }
 0x388   :  { %2685 = vmatprep.subr.bf16.mxu1 %v3011_v0 }
 0x38a   :  { %2628 = vmatpush1.bf16.msra.mxu0 %v3372_v35 }
 0x38b   :  { %2654 = vmatprep.subr.bf16.mxu0 %v3310_v26 }
 0x43d   :  { %v892_v44 = vpop.f32.mrb[6].mxu0  ;;  %v963_v48 = vpop.f32.mrb[6].mxu1 }
 0x43e   :  { %v893_v52 = vadd.f32 %v892_v44, %v814_v38  ;;  %v894_v53 = vpop.f32.mrb[7].mxu0  ;;  %v2232_v56 = vpop.f32.mrb[7].mxu1  ;;  %v964_v55 = vadd.f32 %v963_v48, %v822_v50  ;;  %v1047_v38 = vrot.slane %v1042_v36, %v3202_v19  ;;  %v1055_v50 = vrot.slane %v1042_v36, %v3208_v47 }
 0x43f   :  { %v895_v57 = vadd.f32 %v894_v53, %v818_v40  ;;  %v1051_v40 = vrot.slane %v1042_v36, %v3204_v23 }
 0x440   :  { %v967_v58 = vadd.f32 %v893_v52, %v758_v43  ;;  %v991_v43 = vld [vmem:[#allocation3 + $0x60] sm:$0xff] }
 0x441   :  { %v974_v16 = vadd.f32 %v895_v57, %v759_v9  ;;  %v992_v9 = vld [vmem:[#allocation3 + $0x68] sm:$0xff] }
 0x442   :  { %v1947_v15 = vmul.f32 -1.442695, %v967_v58 }
 0x443   :  { %v1948_v22 = vmul.f32 -1.442695, %v974_v16 }
 0x444   :  { %2862 = vpow2.f32 %v1947_v15 }
 0x445   :  { %2864 = vpow2.f32 %v1948_v22 }
 0x44e   :  { %v2863_v32 = vpop.eup %2862 }
 0x44f   :  { %v971_v33 = vadd.f32 1.0, %v2863_v32  ;;  %v2865_v42 = vpop.eup %2864 }
 0x450   :  { %v978_v51 = vadd.f32 1.0, %v2865_v42 }
 0x451   :  { %2866 = vrcp.f32 %v971_v33 }
 0x452   :  { %2868 = vrcp.f32 %v978_v51 }
 0x45b   :  { %v2867_v60 = vpop.eup %2866 }
 0x45c   :  { %v981_v4 = vmul.f32 %v2867_v60, %v964_v55  ;;  %v2869_v62 = vpop.eup %2868 }
 0x45d   :  { %v984_v2 = vsub.f32 1.0, %v2869_v62  ;;  %v986_v12 = vmul.f32 %v2869_v62, %v3298_v20  ;;  %v1229_v20 = vld [vmem:[#allocation6 + $0x10] sm:$0xff] }
 0x45e   :  { %v982_v14 = vadd.f32 %v981_v4, %v760_v63  ;;  %v3411_v27 = vpack.c.bf16 %v1232_v18, %v1229_v20  ;;  %v993_v63 = vld [vmem:[#allocation3 + $0x70] sm:$0xff] }
 0x460   :  { %2870 = vtanh.f32 %v982_v14 }
 0x46a   :  { %v2871_v7 = vpop.eup %2870 }
 0x46b   :  { %v985_v8 = vmul.f32 %v2871_v7, %v984_v2 }
 0x46d   :  { %v3387_v17 = vadd.f32 %v986_v12, %v985_v8 }
 0x46f   :  { %989 = vst [vmem:[#allocation9 + $0x18] sm:$0xff] %v3387_v17  ;;  %1124 = vmatmul.mubr.f32.vlgmr.msra.gmra.mrb[8].mxu0 %v3387_v17  ;;  %2266 = vmatmul.mubr.f32.vlgmr.msra.gmra.mrb[8].mxu1 %v3387_v17 }
 0x470   :  { %2656 = vmatpush1.bf16.msra.mxu0 %v3312_v30  ;;  %1356 = vmatprep.mubr.f32.mxu0 %v3012_v1 }
 0x471   :  { %2658 = vmatprep.subr.bf16.mxu0 %v3316_v34  ;;  %2300 = vmatprep.mubr.msk.f32.mxu1 %vm3013_vm0, %v3012_v1 }
 0x472   :  { %2687 = vmatpush3.bf16.msra.mxu1 %v3411_v27 }
 0x473   :  { %2688 = vmatprep.subr.bf16.mxu1 %v3011_v0 }
 0x474   :  { %2660 = vmatpush1.bf16.msra.mxu0 %v3318_v5 }
 0x475   :  { %2662 = vmatprep.subr.bf16.mxu0 %v3322_v39 }
 0x476   :  { %2690 = vmatpush3.bf16.msra.mxu1 %v3415_v31 }
 0x477   :  { %2691 = vmatprep.subr.bf16.mxu1 %v3011_v0 }
 0x478   :  { %2664 = vmatpush1.bf16.msra.mxu0 %v3324_v45 }
 0x479   :  { %2666 = vmatprep.subr.bf16.mxu0 %v3331_v54 }
 0x47a   :  { %2693 = vmatpush3.bf16.msra.mxu1 %v3327_v49 }
 0x47b   :  { %2694 = vmatprep.subr.bf16.mxu1 %v3011_v0 }
 0x47c   :  { %2668 = vmatpush1.bf16.msra.mxu0 %v3334_v61 }
 0x47d   :  { %2670 = vmatprep.subr.bf16.mxu0 %v3341_v21 }
 0x47e   :  { %2696 = vmatpush3.bf16.msra.mxu1 %v3337_v10 }
 0x47f   :  { %2697 = vmatprep.subr.bf16.mxu1 %v3011_v0 }
 0x480   :  { %2672 = vmatpush1.bf16.msra.mxu0 %v3344_v41 }
 0x481   :  { %2674 = vmatprep.subr.bf16.mxu0 %v3351_v59 }
 0x482   :  { %2699 = vmatpush3.bf16.msra.mxu1 %v3347_v46 }
 0x483   :  { %2700 = vmatprep.subr.bf16.mxu1 %v3011_v0 }
 0x484   :  { %2676 = vmatpush1.bf16.msra.mxu0 %v3354_v6 }
 0x485   :  { %2678 = vmatprep.subr.bf16.mxu0 %v3359_v3 }
 0x486   :  { %2702 = vmatpush3.bf16.msra.mxu1 %v3356_v11 }
 0x487   :  { %2703 = vmatprep.subr.bf16.mxu1 %v3011_v0 }
 0x488   :  { %2680 = vmatpush1.bf16.msra.mxu0 %v3362_v13 }
 0x489   :  { %2682 = vmatprep.subr.bf16.mxu0 %v3368_v25 }
 0x48a   :  { %2705 = vmatpush3.bf16.msra.mxu1 %v3366_v24 }
 0x48b   :  { %2706 = vmatprep.subr.bf16.mxu1 %v3011_v0 }
 0x48c   :  { %2684 = vmatpush1.bf16.msra.mxu0 %v3372_v35 }
 0x48d   :  { %2710 = vmatprep.subr.bf16.mxu0 %v3310_v26 }
 0x48e   :  { %2708 = vmatpush3.bf16.msra.mxu1 %v3376_v37 }
 0x48f   :  { %2741 = vmatprep.subr.bf16.mxu1 %v3011_v0 }
 0x542   :  { %v1125_v44 = vpop.f32.mrb[8].mxu0  ;;  %v1196_v48 = vpop.f32.mrb[8].mxu1 }
 0x543   :  { %v1126_v52 = vadd.f32 %v1125_v44, %v1047_v38  ;;  %v1127_v53 = vpop.f32.mrb[9].mxu0  ;;  %v2267_v56 = vpop.f32.mrb[9].mxu1  ;;  %v1197_v55 = vadd.f32 %v1196_v48, %v1055_v50 }
 0x544   :  { %v1128_v57 = vadd.f32 %v1127_v53, %v1051_v40  ;;  %v1225_v53 = vld [vmem:[#allocation3 + $0x80] sm:$0xff] }
 0x545   :  { %v1200_v58 = vadd.f32 %v1126_v52, %v991_v43 }
 0x546   :  { %v1207_v16 = vadd.f32 %v1128_v57, %v992_v9 }
 0x547   :  { %v1949_v15 = vmul.f32 -1.442695, %v1200_v58 }
 0x548   :  { %v1950_v22 = vmul.f32 -1.442695, %v1207_v16 }
 0x549   :  { %2872 = vpow2.f32 %v1949_v15 }
 0x54a   :  { %2874 = vpow2.f32 %v1950_v22 }
 0x553   :  { %v2873_v32 = vpop.eup %2872 }
 0x554   :  { %v1204_v33 = vadd.f32 1.0, %v2873_v32  ;;  %v2875_v42 = vpop.eup %2874 }
 0x555   :  { %v1211_v51 = vadd.f32 1.0, %v2875_v42  ;;  %v1226_v42 = vld [vmem:[#allocation3 + $0x88] sm:$0xff] }
 0x556   :  { %2876 = vrcp.f32 %v1204_v33 }
 0x557   :  { %2878 = vrcp.f32 %v1211_v51 }
 0x560   :  { %v2877_v60 = vpop.eup %2876 }
 0x561   :  { %v1214_v4 = vmul.f32 %v2877_v60, %v1197_v55  ;;  %v2879_v62 = vpop.eup %2878 }
 0x562   :  { %v1217_v2 = vsub.f32 1.0, %v2879_v62  ;;  %v1219_v12 = vmul.f32 %v2879_v62, %v3387_v17  ;;  %v1275_v17 = vld [vmem:[#allocation8] sm:$0x7] }
 0x563   :  { %v1215_v14 = vadd.f32 %v1214_v4, %v993_v63  ;;  %v1280_v18 = vrot.slane %v1275_v17, %v3202_v19  ;;  %v1284_v28 = vrot.slane %v1275_v17, %v3204_v23  ;;  %v1288_v16 = vrot.slane %v1275_v17, %v3208_v47 }
 0x565   :  { %2880 = vtanh.f32 %v1215_v14 }
 0x56f   :  { %v2881_v7 = vpop.eup %2880 }
 0x570   :  { %v1218_v8 = vmul.f32 %v2881_v7, %v1217_v2 }
 0x572   :  { %v3435_v20 = vadd.f32 %v1219_v12, %v1218_v8 }
 0x574   :  { %1222 = vst [vmem:[#allocation9 + $0x20] sm:$0xff] %v3435_v20  ;;  %1357 = vmatmul.mubr.f32.vlgmr.msra.gmra.mrb[10].mxu0 %v3435_v20  ;;  %2301 = vmatmul.mubr.f32.vlgmr.msra.gmra.mrb[10].mxu1 %v3435_v20 }
 0x575   :  { %2712 = vmatpush1.bf16.msra.mxu0 %v3312_v30  ;;  %2743 = vmatpush3.bf16.msra.mxu1 %v3411_v27 }
 0x576   :  { %2714 = vmatprep.subr.bf16.mxu0 %v3316_v34  ;;  %2744 = vmatprep.subr.bf16.mxu1 %v3011_v0 }
 0x577   :  { %1589 = vmatprep.mubr.f32.mxu0 %v3012_v1  ;;  %2335 = vmatprep.mubr.msk.f32.mxu1 %vm3013_vm0, %v3012_v1 }
 0x579   :  { %2716 = vmatpush1.bf16.msra.mxu0 %v3318_v5  ;;  %2746 = vmatpush3.bf16.msra.mxu1 %v3415_v31 }
 0x57a   :  { %2718 = vmatprep.subr.bf16.mxu0 %v3322_v39  ;;  %2747 = vmatprep.subr.bf16.mxu1 %v3011_v0 }
 0x57d   :  { %2720 = vmatpush1.bf16.msra.mxu0 %v3324_v45  ;;  %2749 = vmatpush3.bf16.msra.mxu1 %v3327_v49 }
 0x57e   :  { %2722 = vmatprep.subr.bf16.mxu0 %v3331_v54  ;;  %2750 = vmatprep.subr.bf16.mxu1 %v3011_v0 }
 0x581   :  { %2724 = vmatpush1.bf16.msra.mxu0 %v3334_v61  ;;  %2752 = vmatpush3.bf16.msra.mxu1 %v3337_v10 }
 0x582   :  { %2726 = vmatprep.subr.bf16.mxu0 %v3341_v21  ;;  %2753 = vmatprep.subr.bf16.mxu1 %v3011_v0 }
 0x585   :  { %2728 = vmatpush1.bf16.msra.mxu0 %v3344_v41  ;;  %2755 = vmatpush3.bf16.msra.mxu1 %v3347_v46 }
 0x586   :  { %2730 = vmatprep.subr.bf16.mxu0 %v3351_v59  ;;  %2756 = vmatprep.subr.bf16.mxu1 %v3011_v0 }
 0x589   :  { %2732 = vmatpush1.bf16.msra.mxu0 %v3354_v6  ;;  %2758 = vmatpush3.bf16.msra.mxu1 %v3356_v11 }
 0x58a   :  { %2734 = vmatprep.subr.bf16.mxu0 %v3359_v3  ;;  %2759 = vmatprep.subr.bf16.mxu1 %v3011_v0 }
 0x58d   :  { %2736 = vmatpush1.bf16.msra.mxu0 %v3362_v13  ;;  %2761 = vmatpush3.bf16.msra.mxu1 %v3366_v24 }
 0x58e   :  { %2738 = vmatprep.subr.bf16.mxu0 %v3368_v25  ;;  %2762 = vmatprep.subr.bf16.mxu1 %v3011_v0 }
 0x591   :  { %2740 = vmatpush1.bf16.msra.mxu0 %v3372_v35  ;;  %2764 = vmatpush3.bf16.msra.mxu1 %v3376_v37 }
 0x592   :  { %2766 = vmatprep.subr.bf16.mxu0 %v3310_v26  ;;  %2797 = vmatprep.subr.bf16.mxu1 %v3011_v0 }
 0x647   :  { %v1358_v36 = vpop.f32.mrb[10].mxu0  ;;  %v1429_v38 = vpop.f32.mrb[10].mxu1 }
 0x648   :  { %v1359_v40 = vadd.f32 %v1358_v36, %v1280_v18  ;;  %v1360_v43 = vpop.f32.mrb[11].mxu0  ;;  %v2302_v44 = vpop.f32.mrb[11].mxu1  ;;  %v1430_v32 = vadd.f32 %v1429_v38, %v1288_v16  ;;  %v1741_v18 = vld [vmem:[#allocation8] sm:$0x7]  ;;  %v1690_v36 = vld [vmem:[#allocation3 + $0xa8] sm:$0xff] }
 0x649   :  { %v1361_v48 = vadd.f32 %v1360_v43, %v1284_v28  ;;  %v1746_v28 = vrot.slane %v1741_v18, %v3202_v19 }
 0x64a   :  { %v1433_v52 = vadd.f32 %v1359_v40, %v1224_v29  ;;  %v1750_v29 = vrot.slane %v1741_v18, %v3204_v23 }
 0x64b   :  { %v1440_v57 = vadd.f32 %v1361_v48, %v1225_v53 }
 0x64c   :  { %v1951_v56 = vmul.f32 -1.442695, %v1433_v52 }
 0x64d   :  { %v1952_v26 = vmul.f32 -1.442695, %v1440_v57 }
 0x64e   :  { %2882 = vpow2.f32 %v1951_v56  ;;  %v1691_v56 = vld [vmem:[#allocation3 + $0xb0] sm:$0xff] }
 0x64f   :  { %2884 = vpow2.f32 %v1952_v26 }
 0x658   :  { %v2883_v58 = vpop.eup %2882 }
 0x659   :  { %v1437_v9 = vadd.f32 1.0, %v2883_v58  ;;  %v2885_v15 = vpop.eup %2884 }
 0x65a   :  { %v1444_v22 = vadd.f32 1.0, %v2885_v15 }
 0x65b   :  { %2886 = vrcp.f32 %v1437_v9 }
 0x65c   :  { %2888 = vrcp.f32 %v1444_v22 }
 0x665   :  { %v2887_v33 = vpop.eup %2886 }
 0x666   :  { %v1447_v50 = vmul.f32 %v2887_v33, %v1430_v32  ;;  %v2889_v55 = vpop.eup %2888  ;;  %v1692_v33 = vld [vmem:[#allocation3 + $0xb8] sm:$0xff] }
 0x667   :  { %v1450_v60 = vsub.f32 1.0, %v2889_v55  ;;  %v1452_v14 = vmul.f32 %v2889_v55, %v3435_v20 }
 0x668   :  { %v1448_v51 = vadd.f32 %v1447_v50, %v1226_v42 }
 0x66a   :  { %2890 = vtanh.f32 %v1448_v51 }
 0x674   :  { %v2891_v63 = vpop.eup %2890 }
 0x675   :  { %v1451_v4 = vmul.f32 %v2891_v63, %v1450_v60 }
 0x677   :  { %v3479_v62 = vadd.f32 %v1452_v14, %v1451_v4 }
 0x679   :  { %1455 = vst [vmem:[#allocation9 + $0x28] sm:$0xff] %v3479_v62  ;;  %1590 = vmatmul.mubr.f32.vlgmr.msra.gmra.mrb[12].mxu0 %v3479_v62  ;;  %2336 = vmatmul.mubr.f32.vlgmr.msra.gmra.mrb[12].mxu1 %v3479_v62 }
 0x67a   :  { %2768 = vmatpush1.bf16.msra.mxu0 %v3312_v30  ;;  %2799 = vmatpush3.bf16.msra.mxu1 %v3411_v27 }
 0x67b   :  { %2770 = vmatprep.subr.bf16.mxu0 %v3316_v34  ;;  %2800 = vmatprep.subr.bf16.mxu1 %v3011_v0 }
 0x67c   :  { %1822 = vmatprep.mubr.f32.mxu0 %v3012_v1  ;;  %2370 = vmatprep.mubr.msk.f32.mxu1 %vm3013_vm0, %v3012_v1  ;;  %v1508_v1 = vld [vmem:[#allocation8] sm:$0x7] }
 0x67d   :  { %v1513_v30 = vrot.slane %v1508_v1, %v3202_v19  ;;  %v1517_v34 = vrot.slane %v1508_v1, %v3204_v23  ;;  %v1754_v23 = vrot.slane %v1741_v18, %v3208_v47 }
 0x67e   :  { %2772 = vmatpush1.bf16.msra.mxu0 %v3318_v5  ;;  %2802 = vmatpush3.bf16.msra.mxu1 %v3415_v31  ;;  %v1457_v5 = vld [vmem:[#allocation3 + $0x90] sm:$0xff] }
 0x67f   :  { %2774 = vmatprep.subr.bf16.mxu0 %v3322_v39  ;;  %2803 = vmatprep.subr.bf16.mxu1 %v3011_v0 }
 0x682   :  { %2776 = vmatpush1.bf16.msra.mxu0 %v3324_v45  ;;  %2805 = vmatpush3.bf16.msra.mxu1 %v3327_v49 }
 0x683   :  { %2778 = vmatprep.subr.bf16.mxu0 %v3331_v54  ;;  %2806 = vmatprep.subr.bf16.mxu1 %v3011_v0 }
 0x686   :  { %2780 = vmatpush1.bf16.msra.mxu0 %v3334_v61  ;;  %2808 = vmatpush3.bf16.msra.mxu1 %v3337_v10 }
 0x687   :  { %2782 = vmatprep.subr.bf16.mxu0 %v3341_v21  ;;  %2809 = vmatprep.subr.bf16.mxu1 %v3011_v0 }
 0x68a   :  { %2784 = vmatpush1.bf16.msra.mxu0 %v3344_v41  ;;  %2811 = vmatpush3.bf16.msra.mxu1 %v3347_v46  ;;  %v1458_v41 = vld [vmem:[#allocation3 + $0x98] sm:$0xff] }
 0x68b   :  { %2786 = vmatprep.subr.bf16.mxu0 %v3351_v59  ;;  %2812 = vmatprep.subr.bf16.mxu1 %v3011_v0 }
 0x68e   :  { %2788 = vmatpush1.bf16.msra.mxu0 %v3354_v6  ;;  %2814 = vmatpush3.bf16.msra.mxu1 %v3356_v11 }
 0x68f   :  { %2790 = vmatprep.subr.bf16.mxu0 %v3359_v3  ;;  %2815 = vmatprep.subr.bf16.mxu1 %v3011_v0 }
 0x692   :  { %2792 = vmatpush1.bf16.msra.mxu0 %v3362_v13  ;;  %2817 = vmatpush3.bf16.msra.mxu1 %v3366_v24  ;;  %v1521_v13 = vrot.slane %v1508_v1, %v3208_v47 }
 0x693   :  { %2794 = vmatprep.subr.bf16.mxu0 %v3368_v25  ;;  %2818 = vmatprep.subr.bf16.mxu1 %v3011_v0 }
 0x696   :  { %2796 = vmatpush1.bf16.msra.mxu0 %v3372_v35  ;;  %2820 = vmatpush3.bf16.msra.mxu1 %v3376_v37  ;;  %v1459_v37 = vld [vmem:[#allocation3 + $0xa0] sm:$0xff] }
 0x74c   :  { %v1591_v39 = vpop.f32.mrb[12].mxu0  ;;  %v1662_v45 = vpop.f32.mrb[12].mxu1 }
 0x74d   :  { %v1592_v49 = vadd.f32 %v1591_v39, %v1513_v30  ;;  %v1593_v54 = vpop.f32.mrb[13].mxu0  ;;  %v2337_v61 = vpop.f32.mrb[13].mxu1  ;;  %v1663_v25 = vadd.f32 %v1662_v45, %v1521_v13 }
 0x74e   :  { %v1594_v10 = vadd.f32 %v1593_v54, %v1517_v34 }
 0x74f   :  { %v1666_v21 = vadd.f32 %v1592_v49, %v1457_v5 }
 0x750   :  { %v1673_v0 = vadd.f32 %v1594_v10, %v1458_v41 }
 0x751   :  { %v1953_v46 = vmul.f32 -1.442695, %v1666_v21 }
 0x752   :  { %v1954_v59 = vmul.f32 -1.442695, %v1673_v0 }
 0x753   :  { %2892 = vpow2.f32 %v1953_v46 }
 0x754   :  { %2894 = vpow2.f32 %v1954_v59 }
 0x75d   :  { %v2893_v6 = vpop.eup %2892 }
 0x75e   :  { %v1670_v11 = vadd.f32 1.0, %v2893_v6  ;;  %v2895_v3 = vpop.eup %2894 }
 0x75f   :  { %v1677_v24 = vadd.f32 1.0, %v2895_v3 }
 0x760   :  { %2896 = vrcp.f32 %v1670_v11 }
 0x761   :  { %2898 = vrcp.f32 %v1677_v24 }
 0x76a   :  { %v2897_v35 = vpop.eup %2896 }
 0x76b   :  { %v1680_v27 = vmul.f32 %v2897_v35, %v1663_v25  ;;  %v2899_v2 = vpop.eup %2898 }
 0x76c   :  { %v1683_v7 = vsub.f32 1.0, %v2899_v2  ;;  %v1685_v20 = vmul.f32 %v2899_v2, %v3479_v62 }
 0x76d   :  { %v1681_v31 = vadd.f32 %v1680_v27, %v1459_v37 }
 0x76f   :  { %2900 = vtanh.f32 %v1681_v31 }
 0x779   :  { %v2901_v8 = vpop.eup %2900 }
 0x77a   :  { %v1684_v12 = vmul.f32 %v2901_v8, %v1683_v7 }
 0x77c   :  { %v1686_v17 = vadd.f32 %v1685_v20, %v1684_v12 }
 0x77e   :  { %1688 = vst [vmem:[#allocation9 + $0x30] sm:$0xff] %v1686_v17  ;;  %1823 = vmatmul.mubr.f32.vlgmr.msra.gmra.mrb[14].mxu0 %v1686_v17  ;;  %2371 = vmatmul.mubr.f32.vlgmr.msra.gmra.mrb[14].mxu1 %v1686_v17 }
 0x851   :  { %v1824_v38 = vpop.f32.mrb[14].mxu0  ;;  %v1895_v40 = vpop.f32.mrb[14].mxu1 }
 0x852   :  { %v1825_v43 = vadd.f32 %v1824_v38, %v1746_v28  ;;  %v1826_v44 = vpop.f32.mrb[15].mxu0  ;;  %v2372_v48 = vpop.f32.mrb[15].mxu1  ;;  %v1896_v22 = vadd.f32 %v1895_v40, %v1754_v23 }
 0x853   :  { %v1827_v52 = vadd.f32 %v1826_v44, %v1750_v29 }
 0x854   :  { %v1899_v53 = vadd.f32 %v1825_v43, %v1690_v36 }
 0x855   :  { %v1906_v26 = vadd.f32 %v1827_v52, %v1691_v56 }
 0x856   :  { %v1955_v57 = vmul.f32 -1.442695, %v1899_v53 }
 0x857   :  { %v1956_v58 = vmul.f32 -1.442695, %v1906_v26 }
 0x858   :  { %2902 = vpow2.f32 %v1955_v57 }
 0x859   :  { %2904 = vpow2.f32 %v1956_v58 }
 0x862   :  { %v2903_v9 = vpop.eup %2902 }
 0x863   :  { %v1903_v15 = vadd.f32 1.0, %v2903_v9  ;;  %v2905_v19 = vpop.eup %2904 }
 0x864   :  { %v1910_v16 = vadd.f32 1.0, %v2905_v19 }
 0x865   :  { %2906 = vrcp.f32 %v1903_v15 }
 0x866   :  { %2908 = vrcp.f32 %v1910_v16 }
 0x86f   :  { %v2907_v32 = vpop.eup %2906 }
 0x870   :  { %v1913_v42 = vmul.f32 %v2907_v32, %v1896_v22  ;;  %v2909_v51 = vpop.eup %2908 }
 0x871   :  { %v1916_v55 = vsub.f32 1.0, %v2909_v51  ;;  %v1918_v4 = vmul.f32 %v2909_v51, %v1686_v17 }
 0x872   :  { %v1914_v50 = vadd.f32 %v1913_v42, %v1692_v33 }
 0x874   :  { %2910 = vtanh.f32 %v1914_v50 }
 0x87e   :  { %v2911_v60 = vpop.eup %2910 }
 0x87f   :  { %v1917_v63 = vmul.f32 %v2911_v60, %v1916_v55 }
 0x881   :  { %v1919_v14 = vadd.f32 %v1918_v4, %v1917_v63 }
 0x883   :  { %1921 = vst [vmem:[#allocation9 + $0x38] sm:$0xff] %v1919_v14 }
 0x884   :  { %2989 = shalt.err (!%p2986_p0)
}
 0x885   :  { %s2990_s26 = scalar_lea.hbm %s3539_s3, 1024 }
 0x886   :  { %p2991_p1 = scmp.ne.s32.totalorder %s3539_s3, %s2990_s26  ;;  %p2994_p2 = scmp.lt.u32.totalorder %s2990_s26, %s3539_s3 }
 0x888   :  { %p2996_p3 = pnand %p2994_p2, %p2991_p1 }
 0x88a   :  { %2999 = shalt.err (!%p2996_p3)
}
 0x88b   :  { %s3015_s4 = smov 128   ;;  %s3016_s5 = smov 8  }
 0x88c   :  { %1934 = dma.vmem_to_hbm [thread:$0]  %s1929_s22, 1024, %s3539_s3, [#allocation5], %s3015_s4, %s3015_s4, %s3016_s5  }
 0x88d   :  { %3004 = dma.done.wait [#allocation5], 1024  }
 0x88e   :  { %3005 = vsyncadd [#allocation5], 4294966272 }
 0x88f   :  { %1938 = vsyncpa [#allocation4], 1 }
 0x890   :  { %1939 = vsyncpa [#allocation7], 1 }
 0x891   :  { %1940 = vsyncpa [#allocation5], 1 }

</bundles_post_ra>
